<compile_context>
chip_gen: v7x
topology: tpu7x:2x2x1
jax: 0.10.0
libtpu: 0.0.40
codegen_flags: <defaults>
</compile_context>

<pallas_src>
import functools
import math

import jax
import jax.numpy as jnp
from jax.experimental import pallas as pl
from jax.experimental.pallas import tpu as pltpu

NUM_HEADS = 2
LN_EPS = 1e-5


# ----------------------------------------- Pallas kernel -----------------------------------------
def _layer_norm(z, g, b):
    """PyTorch LayerNorm over last dim (biased variance, eps inside rsqrt)."""
    mean = jnp.mean(z, axis=-1, keepdims=True)
    var = jnp.mean((z - mean) ** 2, axis=-1, keepdims=True)
    return (z - mean) * jax.lax.rsqrt(var + LN_EPS) * g + b


def transformer_kernel(
        x_ref,
        # encoder (stacked over layers)
        e_wqkv, e_bqkv, e_wo, e_bo, e_g1, e_b1, e_w1, e_bf1, e_w2, e_bf2, e_g2, e_b2,
        # decoder (stacked over layers)
        d_sa_wqkv, d_sa_bqkv, d_sa_wo, d_sa_bo,
        d_ca_wq, d_ca_bq, d_ca_wkv, d_ca_bkv, d_ca_wo, d_ca_bo,
        d_g1, d_b1, d_g2, d_b2, d_g3, d_b3,
        d_w1, d_bf1, d_w2, d_bf2,
        # final projection
        fc_w, fc_b,
        out_ref,
        *, batch, seq_len, num_heads, num_layers):
    BS, D = x_ref.shape
    dk = D // num_heads
    scale = 1.0 / math.sqrt(dk)

    def attend(q, k, v, wo, bo):
        """softmax(q k^T / sqrt(dk)) v per (batch, head), folded through Wo (no concat)."""
        outs = []
        for b in range(batch):                      # static unroll (batch is tiny)
            r0 = b * seq_len
            acc = None
            for h in range(num_heads):              # static unroll (num_heads = 2)
                c0 = h * dk
                qh = q[r0:r0 + seq_len, c0:c0 + dk]
                kh = k[r0:r0 + seq_len, c0:c0 + dk]
                vh = v[r0:r0 + seq_len, c0:c0 + dk]
                s = jnp.dot(qh, kh.T, preferred_element_type=jnp.float32) * scale
                s = s - jnp.max(s, axis=-1, keepdims=True)
                p = jnp.exp(s)
                p = p * pl.reciprocal(jnp.sum(p, axis=-1, keepdims=True), approx=True)
                oh = jnp.dot(p, vh, preferred_element_type=jnp.float32)
                # accumulate this head's slice of the output projection
                ph = jnp.dot(oh, wo[c0:c0 + dk, :], preferred_element_type=jnp.float32)
                acc = ph if acc is None else acc + ph
            outs.append(acc)
        return jnp.concatenate(outs, axis=0) + bo   # sublane concat (8-row aligned)

    def ffn(xx, w1, b1, w2, b2):
        h = jnp.dot(xx, w1, preferred_element_type=jnp.float32) + b1
        h = jnp.maximum(h, 0.0)
        return jnp.dot(h, w2, preferred_element_type=jnp.float32) + b2

    x = x_ref[...]                                  # (B*S, D)

    # ----------------------------------- encoder stack -----------------------------------
    enc = x
    for l in range(num_layers):
        qkv = jnp.dot(enc, e_wqkv[l], preferred_element_type=jnp.float32) + e_bqkv[l]
        q, k, v = qkv[:, 0:D], qkv[:, D:2 * D], qkv[:, 2 * D:3 * D]
        attn = attend(q, k, v, e_wo[l], e_bo[l])
        enc = _layer_norm(enc + attn, e_g1[l], e_b1[l])            # fused add & LN
        ff = ffn(enc, e_w1[l], e_bf1[l], e_w2[l], e_bf2[l])
        enc = _layer_norm(enc + ff, e_g2[l], e_b2[l])              # fused add & LN

    # --------------- decoder stack (each layer reads the same enc; last wins) -------------
    dec = enc
    for l in range(num_layers):
        qkv = jnp.dot(enc, d_sa_wqkv[l], preferred_element_type=jnp.float32) + d_sa_bqkv[l]
        q, k, v = qkv[:, 0:D], qkv[:, D:2 * D], qkv[:, 2 * D:3 * D]
        attn = attend(q, k, v, d_sa_wo[l], d_sa_bo[l])
        x1 = _layer_norm(enc + attn, d_g1[l], d_b1[l])
        # cross-attention: q from x1, k/v from enc
        q2 = jnp.dot(x1, d_ca_wq[l], preferred_element_type=jnp.float32) + d_ca_bq[l]
        kv = jnp.dot(enc, d_ca_wkv[l], preferred_element_type=jnp.float32) + d_ca_bkv[l]
        k2, v2 = kv[:, 0:D], kv[:, D:2 * D]
        attn2 = attend(q2, k2, v2, d_ca_wo[l], d_ca_bo[l])
        x2 = _layer_norm(x1 + attn2, d_g2[l], d_b2[l])
        ff = ffn(x2, d_w1[l], d_bf1[l], d_w2[l], d_bf2[l])
        dec = _layer_norm(x2 + ff, d_g3[l], d_b3[l])

    # ------------------------------ final projection (lane-dense slab) --------------------
    out_ref[...] = jnp.dot(dec, fc_w[...], preferred_element_type=jnp.float32) + fc_b[...]


# ------------------------------------------- wrapper ---------------------------------------------
def transformer_forward(x, params):
    B, S, D = x.shape
    enc, dec, fc = params["enc"], params["dec"], params["fc"]
    L = enc["wqkv"].shape[0]
    d_out = fc["w"].shape[1]

    x2d = x.reshape(B * S, D)
    args = (x2d,
            enc["wqkv"], enc["bqkv"], enc["wo"], enc["bo"],
            enc["g1"], enc["b1"], enc["w1"], enc["bf1"],
            enc["w2"], enc["bf2"], enc["g2"], enc["b2"],
            dec["sa_wqkv"], dec["sa_bqkv"], dec["sa_wo"], dec["sa_bo"],
            dec["ca_wq"], dec["ca_bq"], dec["ca_wkv"], dec["ca_bkv"],
            dec["ca_wo"], dec["ca_bo"],
            dec["g1"], dec["b1"], dec["g2"], dec["b2"], dec["g3"], dec["b3"],
            dec["w1"], dec["bf1"], dec["w2"], dec["bf2"],
            fc["w"], fc["b"])

    kernel = functools.partial(transformer_kernel, batch=B, seq_len=S,
                               num_heads=NUM_HEADS, num_layers=L)
    vmem_spec = pl.BlockSpec(memory_space=pltpu.MemorySpace.VMEM)
    out2d = pl.pallas_call(
        kernel,
        out_shape=jax.ShapeDtypeStruct((B * S, d_out), jnp.float32),
        in_specs=[vmem_spec] * len(args),
        out_specs=vmem_spec,
    )(*args)
    return out2d.reshape(B, S, d_out)


# -------------------------------------- parameter creation ---------------------------------------
def _init_linear(key, d_in, d_out, scale=0.02):
    kw, kb = jax.random.split(key)
    w = jax.random.normal(kw, (d_in, d_out), jnp.float32) * scale
    b = jax.random.normal(kb, (1, d_out), jnp.float32) * scale
    return w, b


def init_transformer_params(key, d_model, d_ff, d_output, num_layers):
    def mha_fused_qkv(k):
        k1, k2, k3, k4 = jax.random.split(k, 4)
        wq, bq = _init_linear(k1, d_model, d_model)
        wk, bk = _init_linear(k2, d_model, d_model)
        wv, bv = _init_linear(k3, d_model, d_model)
        wo, bo = _init_linear(k4, d_model, d_model)
        return (jnp.concatenate([wq, wk, wv], axis=1),
                jnp.concatenate([bq, bk, bv], axis=1), wo, bo)

    ones = lambda: jnp.ones((1, d_model), jnp.float32)
    zeros = lambda: jnp.zeros((1, d_model), jnp.float32)

    enc = {k: [] for k in ("wqkv", "bqkv", "wo", "bo", "g1", "b1",
                           "w1", "bf1", "w2", "bf2", "g2", "b2")}
    dec = {k: [] for k in ("sa_wqkv", "sa_bqkv", "sa_wo", "sa_bo",
                           "ca_wq", "ca_bq", "ca_wkv", "ca_bkv", "ca_wo", "ca_bo",
                           "g1", "b1", "g2", "b2", "g3", "b3",
                           "w1", "bf1", "w2", "bf2")}

    keys = jax.random.split(key, 2 * num_layers + 1)
    for i in range(num_layers):
        ka, kf = jax.random.split(keys[i], 2)
        wqkv, bqkv, wo, bo = mha_fused_qkv(ka)
        enc["wqkv"].append(wqkv); enc["bqkv"].append(bqkv)
        enc["wo"].append(wo); enc["bo"].append(bo)
        enc["g1"].append(ones()); enc["b1"].append(zeros())
        k1, k2 = jax.random.split(kf)
        w1, bf1 = _init_linear(k1, d_model, d_ff)
        w2, bf2 = _init_linear(k2, d_ff, d_model)
        enc["w1"].append(w1); enc["bf1"].append(bf1)
        enc["w2"].append(w2); enc["bf2"].append(bf2)
        enc["g2"].append(ones()); enc["b2"].append(zeros())

    for i in range(num_layers):
        ksa, kca, kf = jax.random.split(keys[num_layers + i], 3)
        wqkv, bqkv, wo, bo = mha_fused_qkv(ksa)
        dec["sa_wqkv"].append(wqkv); dec["sa_bqkv"].append(bqkv)
        dec["sa_wo"].append(wo); dec["sa_bo"].append(bo)
        kq, kk, kv, ko = jax.random.split(kca, 4)
        cwq, cbq = _init_linear(kq, d_model, d_model)
        cwk, cbk = _init_linear(kk, d_model, d_model)
        cwv, cbv = _init_linear(kv, d_model, d_model)
        cwo, cbo = _init_linear(ko, d_model, d_model)
        dec["ca_wq"].append(cwq); dec["ca_bq"].append(cbq)
        dec["ca_wkv"].append(jnp.concatenate([cwk, cwv], axis=1))
        dec["ca_bkv"].append(jnp.concatenate([cbk, cbv], axis=1))
        dec["ca_wo"].append(cwo); dec["ca_bo"].append(cbo)
        dec["g1"].append(ones()); dec["b1"].append(zeros())
        dec["g2"].append(ones()); dec["b2"].append(zeros())
        dec["g3"].append(ones()); dec["b3"].append(zeros())
        k1, k2 = jax.random.split(kf)
        w1, bf1 = _init_linear(k1, d_model, d_ff)
        w2, bf2 = _init_linear(k2, d_ff, d_model)
        dec["w1"].append(w1); dec["bf1"].append(bf1)
        dec["w2"].append(w2); dec["bf2"].append(bf2)

    fw, fb = _init_linear(keys[-1], d_model, d_output)
    stack = lambda d: {k: jnp.stack(v) for k, v in d.items()}
    return dict(enc=stack(enc), dec=stack(dec), fc=dict(w=fw, b=fb))


# ----------------------------------- pure-JAX reference (check) ----------------------------------
def _ref_ln(z, g, b):
    m = jnp.mean(z, axis=-1, keepdims=True)
    v = jnp.mean((z - m) ** 2, axis=-1, keepdims=True)
    return (z - m) / jnp.sqrt(v + LN_EPS) * g + b


def _ref_mha(xq, xkv, wq, bq, wk, bk, wv, bv, wo, bo):
    hp = jax.lax.Precision.HIGHEST
    q = jnp.einsum("bsd,de->bse", xq, wq, precision=hp) + bq
    k = jnp.einsum("bsd,de->bse", xkv, wk, precision=hp) + bk
    v = jnp.einsum("bsd,de->bse", xkv, wv, precision=hp) + bv
    B, S, D = q.shape
    dk = D // NUM_HEADS
    qh = q.reshape(B, S, NUM_HEADS, dk).transpose(0, 2, 1, 3)
    kh = k.reshape(B, S, NUM_HEADS, dk).transpose(0, 2, 1, 3)
    vh = v.reshape(B, S, NUM_HEADS, dk).transpose(0, 2, 1, 3)
    s = jnp.einsum("bhqd,bhkd->bhqk", qh, kh, precision=hp) / math.sqrt(dk)
    p = jax.nn.softmax(s, axis=-1)
    o = jnp.einsum("bhqk,bhkd->bhqd", p, vh, precision=hp)
    o = o.transpose(0, 2, 1, 3).reshape(B, S, D)
    return jnp.einsum("bsd,de->bse", o, wo, precision=hp) + bo


def _ref_ffn(x, w1, b1, w2, b2):
    hp = jax.lax.Precision.HIGHEST
    h = jnp.maximum(jnp.einsum("bsd,df->bsf", x, w1, precision=hp) + b1, 0.0)
    return jnp.einsum("bsf,fd->bsd", h, w2, precision=hp) + b2


def _ref_forward(x, params):
    hp = jax.lax.Precision.HIGHEST
    D = x.shape[-1]
    ep, dp = params["enc"], params["dec"]
    L = ep["wqkv"].shape[0]

    enc = x
    for l in range(L):
        wqkv, bqkv = ep["wqkv"][l], ep["bqkv"][l]
        attn = _ref_mha(enc, enc,
                        wqkv[:, :D], bqkv[:, :D],
                        wqkv[:, D:2 * D], bqkv[:, D:2 * D],
                        wqkv[:, 2 * D:], bqkv[:, 2 * D:],
                        ep["wo"][l], ep["bo"][l])
        enc = _ref_ln(enc + attn, ep["g1"][l], ep["b1"][l])
        ff = _ref_ffn(enc, ep["w1"][l], ep["bf1"][l], ep["w2"][l], ep["bf2"][l])
        enc = _ref_ln(enc + ff, ep["g2"][l], ep["b2"][l])

    dec = enc
    for l in range(L):
        wqkv, bqkv = dp["sa_wqkv"][l], dp["sa_bqkv"][l]
        attn = _ref_mha(enc, enc,
                        wqkv[:, :D], bqkv[:, :D],
                        wqkv[:, D:2 * D], bqkv[:, D:2 * D],
                        wqkv[:, 2 * D:], bqkv[:, 2 * D:],
                        dp["sa_wo"][l], dp["sa_bo"][l])
        x1 = _ref_ln(enc + attn, dp["g1"][l], dp["b1"][l])
        wkv, bkv = dp["ca_wkv"][l], dp["ca_bkv"][l]
        attn2 = _ref_mha(x1, enc,
                         dp["ca_wq"][l], dp["ca_bq"][l],
                         wkv[:, :D], bkv[:, :D],
                         wkv[:, D:], bkv[:, D:],
                         dp["ca_wo"][l], dp["ca_bo"][l])
        x2 = _ref_ln(x1 + attn2, dp["g2"][l], dp["b2"][l])
        ff = _ref_ffn(x2, dp["w1"][l], dp["bf1"][l], dp["w2"][l], dp["bf2"][l])
        dec = _ref_ln(x2 + ff, dp["g3"][l], dp["b3"][l])

    return jnp.einsum("bsd,do->bso", dec, params["fc"]["w"], precision=hp) + params["fc"]["b"]


# --------------------------------------------- main ----------------------------------------------
if __name__ == "__main__":
    # Small test shapes consistent with the module's forward: x : (batch, seq_len, d_model)
    batch, seq_len, d_model = 2, 8, 32
    d_ff, d_output, num_layers = 64, 15, 2

    key = jax.random.PRNGKey(0)
    k_params, k_x = jax.random.split(key)
    params = init_transformer_params(k_params, d_model, d_ff, d_output, num_layers)
    x = jax.random.normal(k_x, (batch, seq_len, d_model), jnp.float32)

    out = transformer_forward(x, params)
    out = jax.block_until_ready(out)

    assert out.shape == (batch, seq_len, d_output), out.shape
    assert bool(jnp.all(jnp.isfinite(out)))

    ref = _ref_forward(x, params)
    max_err = float(jnp.max(jnp.abs(out - ref)))
    assert max_err < 1e-2, f"mismatch vs reference: {max_err}"

    print("KERNEL_OK")
</pallas_src>

<mosaic_0001>
module attributes {stable_mosaic.version = 11 : i64} {
  func.func @transformer_kernel(%arg0: memref<16x32xf32, #tpu.memory_space<vmem>>, %arg1: memref<2x32x96xf32, #tpu.memory_space<vmem>>, %arg2: memref<2x1x96xf32, #tpu.memory_space<vmem>>, %arg3: memref<2x32x32xf32, #tpu.memory_space<vmem>>, %arg4: memref<2x1x32xf32, #tpu.memory_space<vmem>>, %arg5: memref<2x1x32xf32, #tpu.memory_space<vmem>>, %arg6: memref<2x1x32xf32, #tpu.memory_space<vmem>>, %arg7: memref<2x32x64xf32, #tpu.memory_space<vmem>>, %arg8: memref<2x1x64xf32, #tpu.memory_space<vmem>>, %arg9: memref<2x64x32xf32, #tpu.memory_space<vmem>>, %arg10: memref<2x1x32xf32, #tpu.memory_space<vmem>>, %arg11: memref<2x1x32xf32, #tpu.memory_space<vmem>>, %arg12: memref<2x1x32xf32, #tpu.memory_space<vmem>>, %arg13: memref<2x32x96xf32, #tpu.memory_space<vmem>>, %arg14: memref<2x1x96xf32, #tpu.memory_space<vmem>>, %arg15: memref<2x32x32xf32, #tpu.memory_space<vmem>>, %arg16: memref<2x1x32xf32, #tpu.memory_space<vmem>>, %arg17: memref<2x32x32xf32, #tpu.memory_space<vmem>>, %arg18: memref<2x1x32xf32, #tpu.memory_space<vmem>>, %arg19: memref<2x32x64xf32, #tpu.memory_space<vmem>>, %arg20: memref<2x1x64xf32, #tpu.memory_space<vmem>>, %arg21: memref<2x32x32xf32, #tpu.memory_space<vmem>>, %arg22: memref<2x1x32xf32, #tpu.memory_space<vmem>>, %arg23: memref<2x1x32xf32, #tpu.memory_space<vmem>>, %arg24: memref<2x1x32xf32, #tpu.memory_space<vmem>>, %arg25: memref<2x1x32xf32, #tpu.memory_space<vmem>>, %arg26: memref<2x1x32xf32, #tpu.memory_space<vmem>>, %arg27: memref<2x1x32xf32, #tpu.memory_space<vmem>>, %arg28: memref<2x1x32xf32, #tpu.memory_space<vmem>>, %arg29: memref<2x32x64xf32, #tpu.memory_space<vmem>>, %arg30: memref<2x1x64xf32, #tpu.memory_space<vmem>>, %arg31: memref<2x64x32xf32, #tpu.memory_space<vmem>>, %arg32: memref<2x1x32xf32, #tpu.memory_space<vmem>>, %arg33: memref<32x15xf32, #tpu.memory_space<vmem>>, %arg34: memref<1x15xf32, #tpu.memory_space<vmem>>, %arg35: memref<16x15xf32, #tpu.memory_space<vmem>>) attributes {dimension_semantics = [], scalar_prefetch = 0 : i64, scratch_operands = 0 : i64, tpu.core_type = #tpu.core_type<tc>} {
    %c0 = arith.constant 0 : index
    %c0_0 = arith.constant 0 : index
    %0 = vector.load %arg0[%c0, %c0_0] : memref<16x32xf32, #tpu.memory_space<vmem>>, vector<16x32xf32>
    %c0_1 = arith.constant 0 : index
    %c0_2 = arith.constant 0 : index
    %c0_3 = arith.constant 0 : index
    %1 = vector.load %arg1[%c0_1, %c0_2, %c0_3] : memref<2x32x96xf32, #tpu.memory_space<vmem>>, vector<1x32x96xf32>
    %2 = vector.shape_cast %1 : vector<1x32x96xf32> to vector<32x96xf32>
    %cst = arith.constant dense<0.000000e+00> : vector<16x96xf32>
    %3 = tpu.matmul %0, %2, %cst {dimension_numbers = #tpu.dot_dimension_numbers<[1], [0], [0], [1], [0, 0, 1, 1], [], []>} : vector<16x32xf32>, vector<32x96xf32>, vector<16x96xf32> -> vector<16x96xf32>
    %c0_4 = arith.constant 0 : index
    %c0_5 = arith.constant 0 : index
    %c0_6 = arith.constant 0 : index
    %4 = vector.load %arg2[%c0_4, %c0_5, %c0_6] : memref<2x1x96xf32, #tpu.memory_space<vmem>>, vector<1x1x96xf32>
    %5 = vector.shape_cast %4 : vector<1x1x96xf32> to vector<1x96xf32>
    %6 = vector.broadcast %5 : vector<1x96xf32> to vector<16x96xf32>
    %7 = arith.addf %3, %6 : vector<16x96xf32>
    %8 = vector.extract_strided_slice %7 {offsets = [0, 0], sizes = [16, 32], strides = [1, 1]} : vector<16x96xf32> to vector<16x32xf32>
    %9 = vector.extract_strided_slice %7 {offsets = [0, 32], sizes = [16, 32], strides = [1, 1]} : vector<16x96xf32> to vector<16x32xf32>
    %10 = vector.extract_strided_slice %7 {offsets = [0, 64], sizes = [16, 32], strides = [1, 1]} : vector<16x96xf32> to vector<16x32xf32>
    %c0_7 = arith.constant 0 : index
    %c0_8 = arith.constant 0 : index
    %c0_9 = arith.constant 0 : index
    %11 = vector.load %arg3[%c0_7, %c0_8, %c0_9] : memref<2x32x32xf32, #tpu.memory_space<vmem>>, vector<1x32x32xf32>
    %12 = vector.shape_cast %11 : vector<1x32x32xf32> to vector<32x32xf32>
    %c0_10 = arith.constant 0 : index
    %c0_11 = arith.constant 0 : index
    %c0_12 = arith.constant 0 : index
    %13 = vector.load %arg4[%c0_10, %c0_11, %c0_12] : memref<2x1x32xf32, #tpu.memory_space<vmem>>, vector<1x1x32xf32>
    %14 = vector.shape_cast %13 : vector<1x1x32xf32> to vector<1x32xf32>
    %15 = vector.extract_strided_slice %8 {offsets = [0, 0], sizes = [8, 16], strides = [1, 1]} : vector<16x32xf32> to vector<8x16xf32>
    %16 = vector.extract_strided_slice %9 {offsets = [0, 0], sizes = [8, 16], strides = [1, 1]} : vector<16x32xf32> to vector<8x16xf32>
    %17 = vector.extract_strided_slice %10 {offsets = [0, 0], sizes = [8, 16], strides = [1, 1]} : vector<16x32xf32> to vector<8x16xf32>
    %18 = tpu.transpose %16, [1, 0] : vector<8x16xf32> -> vector<16x8xf32>
    %cst_13 = arith.constant dense<0.000000e+00> : vector<8x8xf32>
    %19 = tpu.matmul %15, %18, %cst_13 {dimension_numbers = #tpu.dot_dimension_numbers<[1], [0], [0], [1], [0, 0, 1, 1], [], []>} : vector<8x16xf32>, vector<16x8xf32>, vector<8x8xf32> -> vector<8x8xf32>
    %cst_14 = arith.constant 2.500000e-01 : f32
    %20 = vector.broadcast %cst_14 : f32 to vector<8x8xf32>
    %21 = arith.mulf %19, %20 : vector<8x8xf32>
    %cst_15 = arith.constant dense<0xFF800000> : vector<8xf32>
    %22 = vector.multi_reduction <maximumf>, %21, %cst_15 [1] : vector<8x8xf32> to vector<8xf32>
    %23 = vector.shape_cast %22 : vector<8xf32> to vector<8x1xf32>
    %24 = vector.broadcast %23 : vector<8x1xf32> to vector<8x8xf32>
    %25 = arith.subf %21, %24 : vector<8x8xf32>
    %26 = math.exp %25 : vector<8x8xf32>
    %cst_16 = arith.constant dense<0.000000e+00> : vector<8xf32>
    %27 = vector.multi_reduction <add>, %26, %cst_16 [1] : vector<8x8xf32> to vector<8xf32>
    %28 = vector.shape_cast %27 : vector<8xf32> to vector<8x1xf32>
    %29 = tpu.reciprocal %28 {approx = true} : vector<8x1xf32> -> vector<8x1xf32>
    %30 = vector.broadcast %29 : vector<8x1xf32> to vector<8x8xf32>
    %31 = arith.mulf %26, %30 : vector<8x8xf32>
    %cst_17 = arith.constant dense<0.000000e+00> : vector<8x16xf32>
    %32 = tpu.matmul %31, %17, %cst_17 {dimension_numbers = #tpu.dot_dimension_numbers<[1], [0], [0], [1], [0, 0, 1, 1], [], []>} : vector<8x8xf32>, vector<8x16xf32>, vector<8x16xf32> -> vector<8x16xf32>
    %33 = vector.extract_strided_slice %12 {offsets = [0, 0], sizes = [16, 32], strides = [1, 1]} : vector<32x32xf32> to vector<16x32xf32>
    %cst_18 = arith.constant dense<0.000000e+00> : vector<8x32xf32>
    %34 = tpu.matmul %32, %33, %cst_18 {dimension_numbers = #tpu.dot_dimension_numbers<[1], [0], [0], [1], [0, 0, 1, 1], [], []>} : vector<8x16xf32>, vector<16x32xf32>, vector<8x32xf32> -> vector<8x32xf32>
    %35 = vector.extract_strided_slice %8 {offsets = [0, 16], sizes = [8, 16], strides = [1, 1]} : vector<16x32xf32> to vector<8x16xf32>
    %36 = vector.extract_strided_slice %9 {offsets = [0, 16], sizes = [8, 16], strides = [1, 1]} : vector<16x32xf32> to vector<8x16xf32>
    %37 = vector.extract_strided_slice %10 {offsets = [0, 16], sizes = [8, 16], strides = [1, 1]} : vector<16x32xf32> to vector<8x16xf32>
    %38 = tpu.transpose %36, [1, 0] : vector<8x16xf32> -> vector<16x8xf32>
    %cst_19 = arith.constant dense<0.000000e+00> : vector<8x8xf32>
    %39 = tpu.matmul %35, %38, %cst_19 {dimension_numbers = #tpu.dot_dimension_numbers<[1], [0], [0], [1], [0, 0, 1, 1], [], []>} : vector<8x16xf32>, vector<16x8xf32>, vector<8x8xf32> -> vector<8x8xf32>
    %cst_20 = arith.constant 2.500000e-01 : f32
    %40 = vector.broadcast %cst_20 : f32 to vector<8x8xf32>
    %41 = arith.mulf %39, %40 : vector<8x8xf32>
    %cst_21 = arith.constant dense<0xFF800000> : vector<8xf32>
    %42 = vector.multi_reduction <maximumf>, %41, %cst_21 [1] : vector<8x8xf32> to vector<8xf32>
    %43 = vector.shape_cast %42 : vector<8xf32> to vector<8x1xf32>
    %44 = vector.broadcast %43 : vector<8x1xf32> to vector<8x8xf32>
    %45 = arith.subf %41, %44 : vector<8x8xf32>
    %46 = math.exp %45 : vector<8x8xf32>
    %cst_22 = arith.constant dense<0.000000e+00> : vector<8xf32>
    %47 = vector.multi_reduction <add>, %46, %cst_22 [1] : vector<8x8xf32> to vector<8xf32>
    %48 = vector.shape_cast %47 : vector<8xf32> to vector<8x1xf32>
    %49 = tpu.reciprocal %48 {approx = true} : vector<8x1xf32> -> vector<8x1xf32>
    %50 = vector.broadcast %49 : vector<8x1xf32> to vector<8x8xf32>
    %51 = arith.mulf %46, %50 : vector<8x8xf32>
    %cst_23 = arith.constant dense<0.000000e+00> : vector<8x16xf32>
    %52 = tpu.matmul %51, %37, %cst_23 {dimension_numbers = #tpu.dot_dimension_numbers<[1], [0], [0], [1], [0, 0, 1, 1], [], []>} : vector<8x8xf32>, vector<8x16xf32>, vector<8x16xf32> -> vector<8x16xf32>
    %53 = vector.extract_strided_slice %12 {offsets = [16, 0], sizes = [16, 32], strides = [1, 1]} : vector<32x32xf32> to vector<16x32xf32>
    %cst_24 = arith.constant dense<0.000000e+00> : vector<8x32xf32>
    %54 = tpu.matmul %52, %53, %cst_24 {dimension_numbers = #tpu.dot_dimension_numbers<[1], [0], [0], [1], [0, 0, 1, 1], [], []>} : vector<8x16xf32>, vector<16x32xf32>, vector<8x32xf32> -> vector<8x32xf32>
    %55 = arith.addf %34, %54 : vector<8x32xf32>
    %56 = vector.extract_strided_slice %8 {offsets = [8, 0], sizes = [8, 16], strides = [1, 1]} : vector<16x32xf32> to vector<8x16xf32>
    %57 = vector.extract_strided_slice %9 {offsets = [8, 0], sizes = [8, 16], strides = [1, 1]} : vector<16x32xf32> to vector<8x16xf32>
    %58 = vector.extract_strided_slice %10 {offsets = [8, 0], sizes = [8, 16], strides = [1, 1]} : vector<16x32xf32> to vector<8x16xf32>
    %59 = tpu.transpose %57, [1, 0] : vector<8x16xf32> -> vector<16x8xf32>
    %cst_25 = arith.constant dense<0.000000e+00> : vector<8x8xf32>
    %60 = tpu.matmul %56, %59, %cst_25 {dimension_numbers = #tpu.dot_dimension_numbers<[1], [0], [0], [1], [0, 0, 1, 1], [], []>} : vector<8x16xf32>, vector<16x8xf32>, vector<8x8xf32> -> vector<8x8xf32>
    %cst_26 = arith.constant 2.500000e-01 : f32
    %61 = vector.broadcast %cst_26 : f32 to vector<8x8xf32>
    %62 = arith.mulf %60, %61 : vector<8x8xf32>
    %cst_27 = arith.constant dense<0xFF800000> : vector<8xf32>
    %63 = vector.multi_reduction <maximumf>, %62, %cst_27 [1] : vector<8x8xf32> to vector<8xf32>
    %64 = vector.shape_cast %63 : vector<8xf32> to vector<8x1xf32>
    %65 = vector.broadcast %64 : vector<8x1xf32> to vector<8x8xf32>
    %66 = arith.subf %62, %65 : vector<8x8xf32>
    %67 = math.exp %66 : vector<8x8xf32>
    %cst_28 = arith.constant dense<0.000000e+00> : vector<8xf32>
    %68 = vector.multi_reduction <add>, %67, %cst_28 [1] : vector<8x8xf32> to vector<8xf32>
    %69 = vector.shape_cast %68 : vector<8xf32> to vector<8x1xf32>
    %70 = tpu.reciprocal %69 {approx = true} : vector<8x1xf32> -> vector<8x1xf32>
    %71 = vector.broadcast %70 : vector<8x1xf32> to vector<8x8xf32>
    %72 = arith.mulf %67, %71 : vector<8x8xf32>
    %cst_29 = arith.constant dense<0.000000e+00> : vector<8x16xf32>
    %73 = tpu.matmul %72, %58, %cst_29 {dimension_numbers = #tpu.dot_dimension_numbers<[1], [0], [0], [1], [0, 0, 1, 1], [], []>} : vector<8x8xf32>, vector<8x16xf32>, vector<8x16xf32> -> vector<8x16xf32>
    %74 = vector.extract_strided_slice %12 {offsets = [0, 0], sizes = [16, 32], strides = [1, 1]} : vector<32x32xf32> to vector<16x32xf32>
    %cst_30 = arith.constant dense<0.000000e+00> : vector<8x32xf32>
    %75 = tpu.matmul %73, %74, %cst_30 {dimension_numbers = #tpu.dot_dimension_numbers<[1], [0], [0], [1], [0, 0, 1, 1], [], []>} : vector<8x16xf32>, vector<16x32xf32>, vector<8x32xf32> -> vector<8x32xf32>
    %76 = vector.extract_strided_slice %8 {offsets = [8, 16], sizes = [8, 16], strides = [1, 1]} : vector<16x32xf32> to vector<8x16xf32>
    %77 = vector.extract_strided_slice %9 {offsets = [8, 16], sizes = [8, 16], strides = [1, 1]} : vector<16x32xf32> to vector<8x16xf32>
    %78 = vector.extract_strided_slice %10 {offsets = [8, 16], sizes = [8, 16], strides = [1, 1]} : vector<16x32xf32> to vector<8x16xf32>
    %79 = tpu.transpose %77, [1, 0] : vector<8x16xf32> -> vector<16x8xf32>
    %cst_31 = arith.constant dense<0.000000e+00> : vector<8x8xf32>
    %80 = tpu.matmul %76, %79, %cst_31 {dimension_numbers = #tpu.dot_dimension_numbers<[1], [0], [0], [1], [0, 0, 1, 1], [], []>} : vector<8x16xf32>, vector<16x8xf32>, vector<8x8xf32> -> vector<8x8xf32>
    %cst_32 = arith.constant 2.500000e-01 : f32
    %81 = vector.broadcast %cst_32 : f32 to vector<8x8xf32>
    %82 = arith.mulf %80, %81 : vector<8x8xf32>
    %cst_33 = arith.constant dense<0xFF800000> : vector<8xf32>
    %83 = vector.multi_reduction <maximumf>, %82, %cst_33 [1] : vector<8x8xf32> to vector<8xf32>
    %84 = vector.shape_cast %83 : vector<8xf32> to vector<8x1xf32>
    %85 = vector.broadcast %84 : vector<8x1xf32> to vector<8x8xf32>
    %86 = arith.subf %82, %85 : vector<8x8xf32>
    %87 = math.exp %86 : vector<8x8xf32>
    %cst_34 = arith.constant dense<0.000000e+00> : vector<8xf32>
    %88 = vector.multi_reduction <add>, %87, %cst_34 [1] : vector<8x8xf32> to vector<8xf32>
    %89 = vector.shape_cast %88 : vector<8xf32> to vector<8x1xf32>
    %90 = tpu.reciprocal %89 {approx = true} : vector<8x1xf32> -> vector<8x1xf32>
    %91 = vector.broadcast %90 : vector<8x1xf32> to vector<8x8xf32>
    %92 = arith.mulf %87, %91 : vector<8x8xf32>
    %cst_35 = arith.constant dense<0.000000e+00> : vector<8x16xf32>
    %93 = tpu.matmul %92, %78, %cst_35 {dimension_numbers = #tpu.dot_dimension_numbers<[1], [0], [0], [1], [0, 0, 1, 1], [], []>} : vector<8x8xf32>, vector<8x16xf32>, vector<8x16xf32> -> vector<8x16xf32>
    %94 = vector.extract_strided_slice %12 {offsets = [16, 0], sizes = [16, 32], strides = [1, 1]} : vector<32x32xf32> to vector<16x32xf32>
    %cst_36 = arith.constant dense<0.000000e+00> : vector<8x32xf32>
    %95 = tpu.matmul %93, %94, %cst_36 {dimension_numbers = #tpu.dot_dimension_numbers<[1], [0], [0], [1], [0, 0, 1, 1], [], []>} : vector<8x16xf32>, vector<16x32xf32>, vector<8x32xf32> -> vector<8x32xf32>
    %96 = arith.addf %75, %95 : vector<8x32xf32>
    %97 = tpu.concatenate %55, %96 in 0 : vector<8x32xf32>, vector<8x32xf32> -> vector<16x32xf32>
    %98 = vector.broadcast %14 : vector<1x32xf32> to vector<16x32xf32>
    %99 = arith.addf %97, %98 : vector<16x32xf32>
    %100 = arith.addf %0, %99 : vector<16x32xf32>
    %c0_37 = arith.constant 0 : index
    %c0_38 = arith.constant 0 : index
    %c0_39 = arith.constant 0 : index
    %101 = vector.load %arg5[%c0_37, %c0_38, %c0_39] : memref<2x1x32xf32, #tpu.memory_space<vmem>>, vector<1x1x32xf32>
    %102 = vector.shape_cast %101 : vector<1x1x32xf32> to vector<1x32xf32>
    %c0_40 = arith.constant 0 : index
    %c0_41 = arith.constant 0 : index
    %c0_42 = arith.constant 0 : index
    %103 = vector.load %arg6[%c0_40, %c0_41, %c0_42] : memref<2x1x32xf32, #tpu.memory_space<vmem>>, vector<1x1x32xf32>
    %104 = vector.shape_cast %103 : vector<1x1x32xf32> to vector<1x32xf32>
    %cst_43 = arith.constant dense<0.000000e+00> : vector<16xf32>
    %105 = vector.multi_reduction <add>, %100, %cst_43 [1] : vector<16x32xf32> to vector<16xf32>
    %106 = vector.shape_cast %105 : vector<16xf32> to vector<16x1xf32>
    %cst_44 = arith.constant 3.200000e+01 : f32
    %107 = vector.broadcast %cst_44 : f32 to vector<16x1xf32>
    %108 = arith.divf %106, %107 : vector<16x1xf32>
    %109 = vector.broadcast %108 : vector<16x1xf32> to vector<16x32xf32>
    %110 = arith.subf %100, %109 : vector<16x32xf32>
    %111 = arith.mulf %110, %110 : vector<16x32xf32>
    %cst_45 = arith.constant dense<0.000000e+00> : vector<16xf32>
    %112 = vector.multi_reduction <add>, %111, %cst_45 [1] : vector<16x32xf32> to vector<16xf32>
    %113 = vector.shape_cast %112 : vector<16xf32> to vector<16x1xf32>
    %cst_46 = arith.constant 3.200000e+01 : f32
    %114 = vector.broadcast %cst_46 : f32 to vector<16x1xf32>
    %115 = arith.divf %113, %114 : vector<16x1xf32>
    %116 = vector.broadcast %108 : vector<16x1xf32> to vector<16x32xf32>
    %117 = arith.subf %100, %116 : vector<16x32xf32>
    %cst_47 = arith.constant 9.99999974E-6 : f32
    %118 = vector.broadcast %cst_47 : f32 to vector<16x1xf32>
    %119 = arith.addf %115, %118 : vector<16x1xf32>
    %120 = math.rsqrt %119 : vector<16x1xf32>
    %121 = vector.broadcast %120 : vector<16x1xf32> to vector<16x32xf32>
    %122 = arith.mulf %117, %121 : vector<16x32xf32>
    %123 = vector.broadcast %102 : vector<1x32xf32> to vector<16x32xf32>
    %124 = arith.mulf %122, %123 : vector<16x32xf32>
    %125 = vector.broadcast %104 : vector<1x32xf32> to vector<16x32xf32>
    %126 = arith.addf %124, %125 : vector<16x32xf32>
    %c0_48 = arith.constant 0 : index
    %c0_49 = arith.constant 0 : index
    %c0_50 = arith.constant 0 : index
    %127 = vector.load %arg7[%c0_48, %c0_49, %c0_50] : memref<2x32x64xf32, #tpu.memory_space<vmem>>, vector<1x32x64xf32>
    %128 = vector.shape_cast %127 : vector<1x32x64xf32> to vector<32x64xf32>
    %c0_51 = arith.constant 0 : index
    %c0_52 = arith.constant 0 : index
    %c0_53 = arith.constant 0 : index
    %129 = vector.load %arg8[%c0_51, %c0_52, %c0_53] : memref<2x1x64xf32, #tpu.memory_space<vmem>>, vector<1x1x64xf32>
    %130 = vector.shape_cast %129 : vector<1x1x64xf32> to vector<1x64xf32>
    %c0_54 = arith.constant 0 : index
    %c0_55 = arith.constant 0 : index
    %c0_56 = arith.constant 0 : index
    %131 = vector.load %arg9[%c0_54, %c0_55, %c0_56] : memref<2x64x32xf32, #tpu.memory_space<vmem>>, vector<1x64x32xf32>
    %132 = vector.shape_cast %131 : vector<1x64x32xf32> to vector<64x32xf32>
    %c0_57 = arith.constant 0 : index
    %c0_58 = arith.constant 0 : index
    %c0_59 = arith.constant 0 : index
    %133 = vector.load %arg10[%c0_57, %c0_58, %c0_59] : memref<2x1x32xf32, #tpu.memory_space<vmem>>, vector<1x1x32xf32>
    %134 = vector.shape_cast %133 : vector<1x1x32xf32> to vector<1x32xf32>
    %cst_60 = arith.constant dense<0.000000e+00> : vector<16x64xf32>
    %135 = tpu.matmul %126, %128, %cst_60 {dimension_numbers = #tpu.dot_dimension_numbers<[1], [0], [0], [1], [0, 0, 1, 1], [], []>} : vector<16x32xf32>, vector<32x64xf32>, vector<16x64xf32> -> vector<16x64xf32>
    %136 = vector.broadcast %130 : vector<1x64xf32> to vector<16x64xf32>
    %137 = arith.addf %135, %136 : vector<16x64xf32>
    %cst_61 = arith.constant 0.000000e+00 : f32
    %138 = vector.broadcast %cst_61 : f32 to vector<16x64xf32>
    %139 = arith.maximumf %137, %138 : vector<16x64xf32>
    %cst_62 = arith.constant dense<0.000000e+00> : vector<16x32xf32>
    %140 = tpu.matmul %139, %132, %cst_62 {dimension_numbers = #tpu.dot_dimension_numbers<[1], [0], [0], [1], [0, 0, 1, 1], [], []>} : vector<16x64xf32>, vector<64x32xf32>, vector<16x32xf32> -> vector<16x32xf32>
    %141 = vector.broadcast %134 : vector<1x32xf32> to vector<16x32xf32>
    %142 = arith.addf %140, %141 : vector<16x32xf32>
    %143 = arith.addf %126, %142 : vector<16x32xf32>
    %c0_63 = arith.constant 0 : index
    %c0_64 = arith.constant 0 : index
    %c0_65 = arith.constant 0 : index
    %144 = vector.load %arg11[%c0_63, %c0_64, %c0_65] : memref<2x1x32xf32, #tpu.memory_space<vmem>>, vector<1x1x32xf32>
    %145 = vector.shape_cast %144 : vector<1x1x32xf32> to vector<1x32xf32>
    %c0_66 = arith.constant 0 : index
    %c0_67 = arith.constant 0 : index
    %c0_68 = arith.constant 0 : index
    %146 = vector.load %arg12[%c0_66, %c0_67, %c0_68] : memref<2x1x32xf32, #tpu.memory_space<vmem>>, vector<1x1x32xf32>
    %147 = vector.shape_cast %146 : vector<1x1x32xf32> to vector<1x32xf32>
    %cst_69 = arith.constant dense<0.000000e+00> : vector<16xf32>
    %148 = vector.multi_reduction <add>, %143, %cst_69 [1] : vector<16x32xf32> to vector<16xf32>
    %149 = vector.shape_cast %148 : vector<16xf32> to vector<16x1xf32>
    %cst_70 = arith.constant 3.200000e+01 : f32
    %150 = vector.broadcast %cst_70 : f32 to vector<16x1xf32>
    %151 = arith.divf %149, %150 : vector<16x1xf32>
    %152 = vector.broadcast %151 : vector<16x1xf32> to vector<16x32xf32>
    %153 = arith.subf %143, %152 : vector<16x32xf32>
    %154 = arith.mulf %153, %153 : vector<16x32xf32>
    %cst_71 = arith.constant dense<0.000000e+00> : vector<16xf32>
    %155 = vector.multi_reduction <add>, %154, %cst_71 [1] : vector<16x32xf32> to vector<16xf32>
    %156 = vector.shape_cast %155 : vector<16xf32> to vector<16x1xf32>
    %cst_72 = arith.constant 3.200000e+01 : f32
    %157 = vector.broadcast %cst_72 : f32 to vector<16x1xf32>
    %158 = arith.divf %156, %157 : vector<16x1xf32>
    %159 = vector.broadcast %151 : vector<16x1xf32> to vector<16x32xf32>
    %160 = arith.subf %143, %159 : vector<16x32xf32>
    %cst_73 = arith.constant 9.99999974E-6 : f32
    %161 = vector.broadcast %cst_73 : f32 to vector<16x1xf32>
    %162 = arith.addf %158, %161 : vector<16x1xf32>
    %163 = math.rsqrt %162 : vector<16x1xf32>
    %164 = vector.broadcast %163 : vector<16x1xf32> to vector<16x32xf32>
    %165 = arith.mulf %160, %164 : vector<16x32xf32>
    %166 = vector.broadcast %145 : vector<1x32xf32> to vector<16x32xf32>
    %167 = arith.mulf %165, %166 : vector<16x32xf32>
    %168 = vector.broadcast %147 : vector<1x32xf32> to vector<16x32xf32>
    %169 = arith.addf %167, %168 : vector<16x32xf32>
    %c1 = arith.constant 1 : index
    %c0_74 = arith.constant 0 : index
    %c0_75 = arith.constant 0 : index
    %170 = vector.load %arg1[%c1, %c0_74, %c0_75] : memref<2x32x96xf32, #tpu.memory_space<vmem>>, vector<1x32x96xf32>
    %171 = vector.shape_cast %170 : vector<1x32x96xf32> to vector<32x96xf32>
    %cst_76 = arith.constant dense<0.000000e+00> : vector<16x96xf32>
    %172 = tpu.matmul %169, %171, %cst_76 {dimension_numbers = #tpu.dot_dimension_numbers<[1], [0], [0], [1], [0, 0, 1, 1], [], []>} : vector<16x32xf32>, vector<32x96xf32>, vector<16x96xf32> -> vector<16x96xf32>
    %c1_77 = arith.constant 1 : index
    %c0_78 = arith.constant 0 : index
    %c0_79 = arith.constant 0 : index
    %173 = vector.load %arg2[%c1_77, %c0_78, %c0_79] : memref<2x1x96xf32, #tpu.memory_space<vmem>>, vector<1x1x96xf32>
    %174 = vector.shape_cast %173 : vector<1x1x96xf32> to vector<1x96xf32>
    %175 = vector.broadcast %174 : vector<1x96xf32> to vector<16x96xf32>
    %176 = arith.addf %172, %175 : vector<16x96xf32>
    %177 = vector.extract_strided_slice %176 {offsets = [0, 0], sizes = [16, 32], strides = [1, 1]} : vector<16x96xf32> to vector<16x32xf32>
    %178 = vector.extract_strided_slice %176 {offsets = [0, 32], sizes = [16, 32], strides = [1, 1]} : vector<16x96xf32> to vector<16x32xf32>
    %179 = vector.extract_strided_slice %176 {offsets = [0, 64], sizes = [16, 32], strides = [1, 1]} : vector<16x96xf32> to vector<16x32xf32>
    %c1_80 = arith.constant 1 : index
    %c0_81 = arith.constant 0 : index
    %c0_82 = arith.constant 0 : index
    %180 = vector.load %arg3[%c1_80, %c0_81, %c0_82] : memref<2x32x32xf32, #tpu.memory_space<vmem>>, vector<1x32x32xf32>
    %181 = vector.shape_cast %180 : vector<1x32x32xf32> to vector<32x32xf32>
    %c1_83 = arith.constant 1 : index
    %c0_84 = arith.constant 0 : index
    %c0_85 = arith.constant 0 : index
    %182 = vector.load %arg4[%c1_83, %c0_84, %c0_85] : memref<2x1x32xf32, #tpu.memory_space<vmem>>, vector<1x1x32xf32>
    %183 = vector.shape_cast %182 : vector<1x1x32xf32> to vector<1x32xf32>
    %184 = vector.extract_strided_slice %177 {offsets = [0, 0], sizes = [8, 16], strides = [1, 1]} : vector<16x32xf32> to vector<8x16xf32>
    %185 = vector.extract_strided_slice %178 {offsets = [0, 0], sizes = [8, 16], strides = [1, 1]} : vector<16x32xf32> to vector<8x16xf32>
    %186 = vector.extract_strided_slice %179 {offsets = [0, 0], sizes = [8, 16], strides = [1, 1]} : vector<16x32xf32> to vector<8x16xf32>
    %187 = tpu.transpose %185, [1, 0] : vector<8x16xf32> -> vector<16x8xf32>
    %cst_86 = arith.constant dense<0.000000e+00> : vector<8x8xf32>
    %188 = tpu.matmul %184, %187, %cst_86 {dimension_numbers = #tpu.dot_dimension_numbers<[1], [0], [0], [1], [0, 0, 1, 1], [], []>} : vector<8x16xf32>, vector<16x8xf32>, vector<8x8xf32> -> vector<8x8xf32>
    %cst_87 = arith.constant 2.500000e-01 : f32
    %189 = vector.broadcast %cst_87 : f32 to vector<8x8xf32>
    %190 = arith.mulf %188, %189 : vector<8x8xf32>
    %cst_88 = arith.constant dense<0xFF800000> : vector<8xf32>
    %191 = vector.multi_reduction <maximumf>, %190, %cst_88 [1] : vector<8x8xf32> to vector<8xf32>
    %192 = vector.shape_cast %191 : vector<8xf32> to vector<8x1xf32>
    %193 = vector.broadcast %192 : vector<8x1xf32> to vector<8x8xf32>
    %194 = arith.subf %190, %193 : vector<8x8xf32>
    %195 = math.exp %194 : vector<8x8xf32>
    %cst_89 = arith.constant dense<0.000000e+00> : vector<8xf32>
    %196 = vector.multi_reduction <add>, %195, %cst_89 [1] : vector<8x8xf32> to vector<8xf32>
    %197 = vector.shape_cast %196 : vector<8xf32> to vector<8x1xf32>
    %198 = tpu.reciprocal %197 {approx = true} : vector<8x1xf32> -> vector<8x1xf32>
    %199 = vector.broadcast %198 : vector<8x1xf32> to vector<8x8xf32>
    %200 = arith.mulf %195, %199 : vector<8x8xf32>
    %cst_90 = arith.constant dense<0.000000e+00> : vector<8x16xf32>
    %201 = tpu.matmul %200, %186, %cst_90 {dimension_numbers = #tpu.dot_dimension_numbers<[1], [0], [0], [1], [0, 0, 1, 1], [], []>} : vector<8x8xf32>, vector<8x16xf32>, vector<8x16xf32> -> vector<8x16xf32>
    %202 = vector.extract_strided_slice %181 {offsets = [0, 0], sizes = [16, 32], strides = [1, 1]} : vector<32x32xf32> to vector<16x32xf32>
    %cst_91 = arith.constant dense<0.000000e+00> : vector<8x32xf32>
    %203 = tpu.matmul %201, %202, %cst_91 {dimension_numbers = #tpu.dot_dimension_numbers<[1], [0], [0], [1], [0, 0, 1, 1], [], []>} : vector<8x16xf32>, vector<16x32xf32>, vector<8x32xf32> -> vector<8x32xf32>
    %204 = vector.extract_strided_slice %177 {offsets = [0, 16], sizes = [8, 16], strides = [1, 1]} : vector<16x32xf32> to vector<8x16xf32>
    %205 = vector.extract_strided_slice %178 {offsets = [0, 16], sizes = [8, 16], strides = [1, 1]} : vector<16x32xf32> to vector<8x16xf32>
    %206 = vector.extract_strided_slice %179 {offsets = [0, 16], sizes = [8, 16], strides = [1, 1]} : vector<16x32xf32> to vector<8x16xf32>
    %207 = tpu.transpose %205, [1, 0] : vector<8x16xf32> -> vector<16x8xf32>
    %cst_92 = arith.constant dense<0.000000e+00> : vector<8x8xf32>
    %208 = tpu.matmul %204, %207, %cst_92 {dimension_numbers = #tpu.dot_dimension_numbers<[1], [0], [0], [1], [0, 0, 1, 1], [], []>} : vector<8x16xf32>, vector<16x8xf32>, vector<8x8xf32> -> vector<8x8xf32>
    %cst_93 = arith.constant 2.500000e-01 : f32
    %209 = vector.broadcast %cst_93 : f32 to vector<8x8xf32>
    %210 = arith.mulf %208, %209 : vector<8x8xf32>
    %cst_94 = arith.constant dense<0xFF800000> : vector<8xf32>
    %211 = vector.multi_reduction <maximumf>, %210, %cst_94 [1] : vector<8x8xf32> to vector<8xf32>
    %212 = vector.shape_cast %211 : vector<8xf32> to vector<8x1xf32>
    %213 = vector.broadcast %212 : vector<8x1xf32> to vector<8x8xf32>
    %214 = arith.subf %210, %213 : vector<8x8xf32>
    %215 = math.exp %214 : vector<8x8xf32>
    %cst_95 = arith.constant dense<0.000000e+00> : vector<8xf32>
    %216 = vector.multi_reduction <add>, %215, %cst_95 [1] : vector<8x8xf32> to vector<8xf32>
    %217 = vector.shape_cast %216 : vector<8xf32> to vector<8x1xf32>
    %218 = tpu.reciprocal %217 {approx = true} : vector<8x1xf32> -> vector<8x1xf32>
    %219 = vector.broadcast %218 : vector<8x1xf32> to vector<8x8xf32>
    %220 = arith.mulf %215, %219 : vector<8x8xf32>
    %cst_96 = arith.constant dense<0.000000e+00> : vector<8x16xf32>
    %221 = tpu.matmul %220, %206, %cst_96 {dimension_numbers = #tpu.dot_dimension_numbers<[1], [0], [0], [1], [0, 0, 1, 1], [], []>} : vector<8x8xf32>, vector<8x16xf32>, vector<8x16xf32> -> vector<8x16xf32>
    %222 = vector.extract_strided_slice %181 {offsets = [16, 0], sizes = [16, 32], strides = [1, 1]} : vector<32x32xf32> to vector<16x32xf32>
    %cst_97 = arith.constant dense<0.000000e+00> : vector<8x32xf32>
    %223 = tpu.matmul %221, %222, %cst_97 {dimension_numbers = #tpu.dot_dimension_numbers<[1], [0], [0], [1], [0, 0, 1, 1], [], []>} : vector<8x16xf32>, vector<16x32xf32>, vector<8x32xf32> -> vector<8x32xf32>
    %224 = arith.addf %203, %223 : vector<8x32xf32>
    %225 = vector.extract_strided_slice %177 {offsets = [8, 0], sizes = [8, 16], strides = [1, 1]} : vector<16x32xf32> to vector<8x16xf32>
    %226 = vector.extract_strided_slice %178 {offsets = [8, 0], sizes = [8, 16], strides = [1, 1]} : vector<16x32xf32> to vector<8x16xf32>
    %227 = vector.extract_strided_slice %179 {offsets = [8, 0], sizes = [8, 16], strides = [1, 1]} : vector<16x32xf32> to vector<8x16xf32>
    %228 = tpu.transpose %226, [1, 0] : vector<8x16xf32> -> vector<16x8xf32>
    %cst_98 = arith.constant dense<0.000000e+00> : vector<8x8xf32>
    %229 = tpu.matmul %225, %228, %cst_98 {dimension_numbers = #tpu.dot_dimension_numbers<[1], [0], [0], [1], [0, 0, 1, 1], [], []>} : vector<8x16xf32>, vector<16x8xf32>, vector<8x8xf32> -> vector<8x8xf32>
    %cst_99 = arith.constant 2.500000e-01 : f32
    %230 = vector.broadcast %cst_99 : f32 to vector<8x8xf32>
    %231 = arith.mulf %229, %230 : vector<8x8xf32>
    %cst_100 = arith.constant dense<0xFF800000> : vector<8xf32>
    %232 = vector.multi_reduction <maximumf>, %231, %cst_100 [1] : vector<8x8xf32> to vector<8xf32>
    %233 = vector.shape_cast %232 : vector<8xf32> to vector<8x1xf32>
    %234 = vector.broadcast %233 : vector<8x1xf32> to vector<8x8xf32>
    %235 = arith.subf %231, %234 : vector<8x8xf32>
    %236 = math.exp %235 : vector<8x8xf32>
    %cst_101 = arith.constant dense<0.000000e+00> : vector<8xf32>
    %237 = vector.multi_reduction <add>, %236, %cst_101 [1] : vector<8x8xf32> to vector<8xf32>
    %238 = vector.shape_cast %237 : vector<8xf32> to vector<8x1xf32>
    %239 = tpu.reciprocal %238 {approx = true} : vector<8x1xf32> -> vector<8x1xf32>
    %240 = vector.broadcast %239 : vector<8x1xf32> to vector<8x8xf32>
    %241 = arith.mulf %236, %240 : vector<8x8xf32>
    %cst_102 = arith.constant dense<0.000000e+00> : vector<8x16xf32>
    %242 = tpu.matmul %241, %227, %cst_102 {dimension_numbers = #tpu.dot_dimension_numbers<[1], [0], [0], [1], [0, 0, 1, 1], [], []>} : vector<8x8xf32>, vector<8x16xf32>, vector<8x16xf32> -> vector<8x16xf32>
    %243 = vector.extract_strided_slice %181 {offsets = [0, 0], sizes = [16, 32], strides = [1, 1]} : vector<32x32xf32> to vector<16x32xf32>
    %cst_103 = arith.constant dense<0.000000e+00> : vector<8x32xf32>
    %244 = tpu.matmul %242, %243, %cst_103 {dimension_numbers = #tpu.dot_dimension_numbers<[1], [0], [0], [1], [0, 0, 1, 1], [], []>} : vector<8x16xf32>, vector<16x32xf32>, vector<8x32xf32> -> vector<8x32xf32>
    %245 = vector.extract_strided_slice %177 {offsets = [8, 16], sizes = [8, 16], strides = [1, 1]} : vector<16x32xf32> to vector<8x16xf32>
    %246 = vector.extract_strided_slice %178 {offsets = [8, 16], sizes = [8, 16], strides = [1, 1]} : vector<16x32xf32> to vector<8x16xf32>
    %247 = vector.extract_strided_slice %179 {offsets = [8, 16], sizes = [8, 16], strides = [1, 1]} : vector<16x32xf32> to vector<8x16xf32>
    %248 = tpu.transpose %246, [1, 0] : vector<8x16xf32> -> vector<16x8xf32>
    %cst_104 = arith.constant dense<0.000000e+00> : vector<8x8xf32>
    %249 = tpu.matmul %245, %248, %cst_104 {dimension_numbers = #tpu.dot_dimension_numbers<[1], [0], [0], [1], [0, 0, 1, 1], [], []>} : vector<8x16xf32>, vector<16x8xf32>, vector<8x8xf32> -> vector<8x8xf32>
    %cst_105 = arith.constant 2.500000e-01 : f32
    %250 = vector.broadcast %cst_105 : f32 to vector<8x8xf32>
    %251 = arith.mulf %249, %250 : vector<8x8xf32>
    %cst_106 = arith.constant dense<0xFF800000> : vector<8xf32>
    %252 = vector.multi_reduction <maximumf>, %251, %cst_106 [1] : vector<8x8xf32> to vector<8xf32>
    %253 = vector.shape_cast %252 : vector<8xf32> to vector<8x1xf32>
    %254 = vector.broadcast %253 : vector<8x1xf32> to vector<8x8xf32>
    %255 = arith.subf %251, %254 : vector<8x8xf32>
    %256 = math.exp %255 : vector<8x8xf32>
    %cst_107 = arith.constant dense<0.000000e+00> : vector<8xf32>
    %257 = vector.multi_reduction <add>, %256, %cst_107 [1] : vector<8x8xf32> to vector<8xf32>
    %258 = vector.shape_cast %257 : vector<8xf32> to vector<8x1xf32>
    %259 = tpu.reciprocal %258 {approx = true} : vector<8x1xf32> -> vector<8x1xf32>
    %260 = vector.broadcast %259 : vector<8x1xf32> to vector<8x8xf32>
    %261 = arith.mulf %256, %260 : vector<8x8xf32>
    %cst_108 = arith.constant dense<0.000000e+00> : vector<8x16xf32>
    %262 = tpu.matmul %261, %247, %cst_108 {dimension_numbers = #tpu.dot_dimension_numbers<[1], [0], [0], [1], [0, 0, 1, 1], [], []>} : vector<8x8xf32>, vector<8x16xf32>, vector<8x16xf32> -> vector<8x16xf32>
    %263 = vector.extract_strided_slice %181 {offsets = [16, 0], sizes = [16, 32], strides = [1, 1]} : vector<32x32xf32> to vector<16x32xf32>
    %cst_109 = arith.constant dense<0.000000e+00> : vector<8x32xf32>
    %264 = tpu.matmul %262, %263, %cst_109 {dimension_numbers = #tpu.dot_dimension_numbers<[1], [0], [0], [1], [0, 0, 1, 1], [], []>} : vector<8x16xf32>, vector<16x32xf32>, vector<8x32xf32> -> vector<8x32xf32>
    %265 = arith.addf %244, %264 : vector<8x32xf32>
    %266 = tpu.concatenate %224, %265 in 0 : vector<8x32xf32>, vector<8x32xf32> -> vector<16x32xf32>
    %267 = vector.broadcast %183 : vector<1x32xf32> to vector<16x32xf32>
    %268 = arith.addf %266, %267 : vector<16x32xf32>
    %269 = arith.addf %169, %268 : vector<16x32xf32>
    %c1_110 = arith.constant 1 : index
    %c0_111 = arith.constant 0 : index
    %c0_112 = arith.constant 0 : index
    %270 = vector.load %arg5[%c1_110, %c0_111, %c0_112] : memref<2x1x32xf32, #tpu.memory_space<vmem>>, vector<1x1x32xf32>
    %271 = vector.shape_cast %270 : vector<1x1x32xf32> to vector<1x32xf32>
    %c1_113 = arith.constant 1 : index
    %c0_114 = arith.constant 0 : index
    %c0_115 = arith.constant 0 : index
    %272 = vector.load %arg6[%c1_113, %c0_114, %c0_115] : memref<2x1x32xf32, #tpu.memory_space<vmem>>, vector<1x1x32xf32>
    %273 = vector.shape_cast %272 : vector<1x1x32xf32> to vector<1x32xf32>
    %cst_116 = arith.constant dense<0.000000e+00> : vector<16xf32>
    %274 = vector.multi_reduction <add>, %269, %cst_116 [1] : vector<16x32xf32> to vector<16xf32>
    %275 = vector.shape_cast %274 : vector<16xf32> to vector<16x1xf32>
    %cst_117 = arith.constant 3.200000e+01 : f32
    %276 = vector.broadcast %cst_117 : f32 to vector<16x1xf32>
    %277 = arith.divf %275, %276 : vector<16x1xf32>
    %278 = vector.broadcast %277 : vector<16x1xf32> to vector<16x32xf32>
    %279 = arith.subf %269, %278 : vector<16x32xf32>
    %280 = arith.mulf %279, %279 : vector<16x32xf32>
    %cst_118 = arith.constant dense<0.000000e+00> : vector<16xf32>
    %281 = vector.multi_reduction <add>, %280, %cst_118 [1] : vector<16x32xf32> to vector<16xf32>
    %282 = vector.shape_cast %281 : vector<16xf32> to vector<16x1xf32>
    %cst_119 = arith.constant 3.200000e+01 : f32
    %283 = vector.broadcast %cst_119 : f32 to vector<16x1xf32>
    %284 = arith.divf %282, %283 : vector<16x1xf32>
    %285 = vector.broadcast %277 : vector<16x1xf32> to vector<16x32xf32>
    %286 = arith.subf %269, %285 : vector<16x32xf32>
    %cst_120 = arith.constant 9.99999974E-6 : f32
    %287 = vector.broadcast %cst_120 : f32 to vector<16x1xf32>
    %288 = arith.addf %284, %287 : vector<16x1xf32>
    %289 = math.rsqrt %288 : vector<16x1xf32>
    %290 = vector.broadcast %289 : vector<16x1xf32> to vector<16x32xf32>
    %291 = arith.mulf %286, %290 : vector<16x32xf32>
    %292 = vector.broadcast %271 : vector<1x32xf32> to vector<16x32xf32>
    %293 = arith.mulf %291, %292 : vector<16x32xf32>
    %294 = vector.broadcast %273 : vector<1x32xf32> to vector<16x32xf32>
    %295 = arith.addf %293, %294 : vector<16x32xf32>
    %c1_121 = arith.constant 1 : index
    %c0_122 = arith.constant 0 : index
    %c0_123 = arith.constant 0 : index
    %296 = vector.load %arg7[%c1_121, %c0_122, %c0_123] : memref<2x32x64xf32, #tpu.memory_space<vmem>>, vector<1x32x64xf32>
    %297 = vector.shape_cast %296 : vector<1x32x64xf32> to vector<32x64xf32>
    %c1_124 = arith.constant 1 : index
    %c0_125 = arith.constant 0 : index
    %c0_126 = arith.constant 0 : index
    %298 = vector.load %arg8[%c1_124, %c0_125, %c0_126] : memref<2x1x64xf32, #tpu.memory_space<vmem>>, vector<1x1x64xf32>
    %299 = vector.shape_cast %298 : vector<1x1x64xf32> to vector<1x64xf32>
    %c1_127 = arith.constant 1 : index
    %c0_128 = arith.constant 0 : index
    %c0_129 = arith.constant 0 : index
    %300 = vector.load %arg9[%c1_127, %c0_128, %c0_129] : memref<2x64x32xf32, #tpu.memory_space<vmem>>, vector<1x64x32xf32>
    %301 = vector.shape_cast %300 : vector<1x64x32xf32> to vector<64x32xf32>
    %c1_130 = arith.constant 1 : index
    %c0_131 = arith.constant 0 : index
    %c0_132 = arith.constant 0 : index
    %302 = vector.load %arg10[%c1_130, %c0_131, %c0_132] : memref<2x1x32xf32, #tpu.memory_space<vmem>>, vector<1x1x32xf32>
    %303 = vector.shape_cast %302 : vector<1x1x32xf32> to vector<1x32xf32>
    %cst_133 = arith.constant dense<0.000000e+00> : vector<16x64xf32>
    %304 = tpu.matmul %295, %297, %cst_133 {dimension_numbers = #tpu.dot_dimension_numbers<[1], [0], [0], [1], [0, 0, 1, 1], [], []>} : vector<16x32xf32>, vector<32x64xf32>, vector<16x64xf32> -> vector<16x64xf32>
    %305 = vector.broadcast %299 : vector<1x64xf32> to vector<16x64xf32>
    %306 = arith.addf %304, %305 : vector<16x64xf32>
    %cst_134 = arith.constant 0.000000e+00 : f32
    %307 = vector.broadcast %cst_134 : f32 to vector<16x64xf32>
    %308 = arith.maximumf %306, %307 : vector<16x64xf32>
    %cst_135 = arith.constant dense<0.000000e+00> : vector<16x32xf32>
    %309 = tpu.matmul %308, %301, %cst_135 {dimension_numbers = #tpu.dot_dimension_numbers<[1], [0], [0], [1], [0, 0, 1, 1], [], []>} : vector<16x64xf32>, vector<64x32xf32>, vector<16x32xf32> -> vector<16x32xf32>
    %310 = vector.broadcast %303 : vector<1x32xf32> to vector<16x32xf32>
    %311 = arith.addf %309, %310 : vector<16x32xf32>
    %312 = arith.addf %295, %311 : vector<16x32xf32>
    %c1_136 = arith.constant 1 : index
    %c0_137 = arith.constant 0 : index
    %c0_138 = arith.constant 0 : index
    %313 = vector.load %arg11[%c1_136, %c0_137, %c0_138] : memref<2x1x32xf32, #tpu.memory_space<vmem>>, vector<1x1x32xf32>
    %314 = vector.shape_cast %313 : vector<1x1x32xf32> to vector<1x32xf32>
    %c1_139 = arith.constant 1 : index
    %c0_140 = arith.constant 0 : index
    %c0_141 = arith.constant 0 : index
    %315 = vector.load %arg12[%c1_139, %c0_140, %c0_141] : memref<2x1x32xf32, #tpu.memory_space<vmem>>, vector<1x1x32xf32>
    %316 = vector.shape_cast %315 : vector<1x1x32xf32> to vector<1x32xf32>
    %cst_142 = arith.constant dense<0.000000e+00> : vector<16xf32>
    %317 = vector.multi_reduction <add>, %312, %cst_142 [1] : vector<16x32xf32> to vector<16xf32>
    %318 = vector.shape_cast %317 : vector<16xf32> to vector<16x1xf32>
    %cst_143 = arith.constant 3.200000e+01 : f32
    %319 = vector.broadcast %cst_143 : f32 to vector<16x1xf32>
    %320 = arith.divf %318, %319 : vector<16x1xf32>
    %321 = vector.broadcast %320 : vector<16x1xf32> to vector<16x32xf32>
    %322 = arith.subf %312, %321 : vector<16x32xf32>
    %323 = arith.mulf %322, %322 : vector<16x32xf32>
    %cst_144 = arith.constant dense<0.000000e+00> : vector<16xf32>
    %324 = vector.multi_reduction <add>, %323, %cst_144 [1] : vector<16x32xf32> to vector<16xf32>
    %325 = vector.shape_cast %324 : vector<16xf32> to vector<16x1xf32>
    %cst_145 = arith.constant 3.200000e+01 : f32
    %326 = vector.broadcast %cst_145 : f32 to vector<16x1xf32>
    %327 = arith.divf %325, %326 : vector<16x1xf32>
    %328 = vector.broadcast %320 : vector<16x1xf32> to vector<16x32xf32>
    %329 = arith.subf %312, %328 : vector<16x32xf32>
    %cst_146 = arith.constant 9.99999974E-6 : f32
    %330 = vector.broadcast %cst_146 : f32 to vector<16x1xf32>
    %331 = arith.addf %327, %330 : vector<16x1xf32>
    %332 = math.rsqrt %331 : vector<16x1xf32>
    %333 = vector.broadcast %332 : vector<16x1xf32> to vector<16x32xf32>
    %334 = arith.mulf %329, %333 : vector<16x32xf32>
    %335 = vector.broadcast %314 : vector<1x32xf32> to vector<16x32xf32>
    %336 = arith.mulf %334, %335 : vector<16x32xf32>
    %337 = vector.broadcast %316 : vector<1x32xf32> to vector<16x32xf32>
    %338 = arith.addf %336, %337 : vector<16x32xf32>
    %c1_147 = arith.constant 1 : index
    %c0_148 = arith.constant 0 : index
    %c0_149 = arith.constant 0 : index
    %339 = vector.load %arg13[%c1_147, %c0_148, %c0_149] : memref<2x32x96xf32, #tpu.memory_space<vmem>>, vector<1x32x96xf32>
    %340 = vector.shape_cast %339 : vector<1x32x96xf32> to vector<32x96xf32>
    %cst_150 = arith.constant dense<0.000000e+00> : vector<16x96xf32>
    %341 = tpu.matmul %338, %340, %cst_150 {dimension_numbers = #tpu.dot_dimension_numbers<[1], [0], [0], [1], [0, 0, 1, 1], [], []>} : vector<16x32xf32>, vector<32x96xf32>, vector<16x96xf32> -> vector<16x96xf32>
    %c1_151 = arith.constant 1 : index
    %c0_152 = arith.constant 0 : index
    %c0_153 = arith.constant 0 : index
    %342 = vector.load %arg14[%c1_151, %c0_152, %c0_153] : memref<2x1x96xf32, #tpu.memory_space<vmem>>, vector<1x1x96xf32>
    %343 = vector.shape_cast %342 : vector<1x1x96xf32> to vector<1x96xf32>
    %344 = vector.broadcast %343 : vector<1x96xf32> to vector<16x96xf32>
    %345 = arith.addf %341, %344 : vector<16x96xf32>
    %346 = vector.extract_strided_slice %345 {offsets = [0, 0], sizes = [16, 32], strides = [1, 1]} : vector<16x96xf32> to vector<16x32xf32>
    %347 = vector.extract_strided_slice %345 {offsets = [0, 32], sizes = [16, 32], strides = [1, 1]} : vector<16x96xf32> to vector<16x32xf32>
    %348 = vector.extract_strided_slice %345 {offsets = [0, 64], sizes = [16, 32], strides = [1, 1]} : vector<16x96xf32> to vector<16x32xf32>
    %c1_154 = arith.constant 1 : index
    %c0_155 = arith.constant 0 : index
    %c0_156 = arith.constant 0 : index
    %349 = vector.load %arg15[%c1_154, %c0_155, %c0_156] : memref<2x32x32xf32, #tpu.memory_space<vmem>>, vector<1x32x32xf32>
    %350 = vector.shape_cast %349 : vector<1x32x32xf32> to vector<32x32xf32>
    %c1_157 = arith.constant 1 : index
    %c0_158 = arith.constant 0 : index
    %c0_159 = arith.constant 0 : index
    %351 = vector.load %arg16[%c1_157, %c0_158, %c0_159] : memref<2x1x32xf32, #tpu.memory_space<vmem>>, vector<1x1x32xf32>
    %352 = vector.shape_cast %351 : vector<1x1x32xf32> to vector<1x32xf32>
    %353 = vector.extract_strided_slice %346 {offsets = [0, 0], sizes = [8, 16], strides = [1, 1]} : vector<16x32xf32> to vector<8x16xf32>
    %354 = vector.extract_strided_slice %347 {offsets = [0, 0], sizes = [8, 16], strides = [1, 1]} : vector<16x32xf32> to vector<8x16xf32>
    %355 = vector.extract_strided_slice %348 {offsets = [0, 0], sizes = [8, 16], strides = [1, 1]} : vector<16x32xf32> to vector<8x16xf32>
    %356 = tpu.transpose %354, [1, 0] : vector<8x16xf32> -> vector<16x8xf32>
    %cst_160 = arith.constant dense<0.000000e+00> : vector<8x8xf32>
    %357 = tpu.matmul %353, %356, %cst_160 {dimension_numbers = #tpu.dot_dimension_numbers<[1], [0], [0], [1], [0, 0, 1, 1], [], []>} : vector<8x16xf32>, vector<16x8xf32>, vector<8x8xf32> -> vector<8x8xf32>
    %cst_161 = arith.constant 2.500000e-01 : f32
    %358 = vector.broadcast %cst_161 : f32 to vector<8x8xf32>
    %359 = arith.mulf %357, %358 : vector<8x8xf32>
    %cst_162 = arith.constant dense<0xFF800000> : vector<8xf32>
    %360 = vector.multi_reduction <maximumf>, %359, %cst_162 [1] : vector<8x8xf32> to vector<8xf32>
    %361 = vector.shape_cast %360 : vector<8xf32> to vector<8x1xf32>
    %362 = vector.broadcast %361 : vector<8x1xf32> to vector<8x8xf32>
    %363 = arith.subf %359, %362 : vector<8x8xf32>
    %364 = math.exp %363 : vector<8x8xf32>
    %cst_163 = arith.constant dense<0.000000e+00> : vector<8xf32>
    %365 = vector.multi_reduction <add>, %364, %cst_163 [1] : vector<8x8xf32> to vector<8xf32>
    %366 = vector.shape_cast %365 : vector<8xf32> to vector<8x1xf32>
    %367 = tpu.reciprocal %366 {approx = true} : vector<8x1xf32> -> vector<8x1xf32>
    %368 = vector.broadcast %367 : vector<8x1xf32> to vector<8x8xf32>
    %369 = arith.mulf %364, %368 : vector<8x8xf32>
    %cst_164 = arith.constant dense<0.000000e+00> : vector<8x16xf32>
    %370 = tpu.matmul %369, %355, %cst_164 {dimension_numbers = #tpu.dot_dimension_numbers<[1], [0], [0], [1], [0, 0, 1, 1], [], []>} : vector<8x8xf32>, vector<8x16xf32>, vector<8x16xf32> -> vector<8x16xf32>
    %371 = vector.extract_strided_slice %350 {offsets = [0, 0], sizes = [16, 32], strides = [1, 1]} : vector<32x32xf32> to vector<16x32xf32>
    %cst_165 = arith.constant dense<0.000000e+00> : vector<8x32xf32>
    %372 = tpu.matmul %370, %371, %cst_165 {dimension_numbers = #tpu.dot_dimension_numbers<[1], [0], [0], [1], [0, 0, 1, 1], [], []>} : vector<8x16xf32>, vector<16x32xf32>, vector<8x32xf32> -> vector<8x32xf32>
    %373 = vector.extract_strided_slice %346 {offsets = [0, 16], sizes = [8, 16], strides = [1, 1]} : vector<16x32xf32> to vector<8x16xf32>
    %374 = vector.extract_strided_slice %347 {offsets = [0, 16], sizes = [8, 16], strides = [1, 1]} : vector<16x32xf32> to vector<8x16xf32>
    %375 = vector.extract_strided_slice %348 {offsets = [0, 16], sizes = [8, 16], strides = [1, 1]} : vector<16x32xf32> to vector<8x16xf32>
    %376 = tpu.transpose %374, [1, 0] : vector<8x16xf32> -> vector<16x8xf32>
    %cst_166 = arith.constant dense<0.000000e+00> : vector<8x8xf32>
    %377 = tpu.matmul %373, %376, %cst_166 {dimension_numbers = #tpu.dot_dimension_numbers<[1], [0], [0], [1], [0, 0, 1, 1], [], []>} : vector<8x16xf32>, vector<16x8xf32>, vector<8x8xf32> -> vector<8x8xf32>
    %cst_167 = arith.constant 2.500000e-01 : f32
    %378 = vector.broadcast %cst_167 : f32 to vector<8x8xf32>
    %379 = arith.mulf %377, %378 : vector<8x8xf32>
    %cst_168 = arith.constant dense<0xFF800000> : vector<8xf32>
    %380 = vector.multi_reduction <maximumf>, %379, %cst_168 [1] : vector<8x8xf32> to vector<8xf32>
    %381 = vector.shape_cast %380 : vector<8xf32> to vector<8x1xf32>
    %382 = vector.broadcast %381 : vector<8x1xf32> to vector<8x8xf32>
    %383 = arith.subf %379, %382 : vector<8x8xf32>
    %384 = math.exp %383 : vector<8x8xf32>
    %cst_169 = arith.constant dense<0.000000e+00> : vector<8xf32>
    %385 = vector.multi_reduction <add>, %384, %cst_169 [1] : vector<8x8xf32> to vector<8xf32>
    %386 = vector.shape_cast %385 : vector<8xf32> to vector<8x1xf32>
    %387 = tpu.reciprocal %386 {approx = true} : vector<8x1xf32> -> vector<8x1xf32>
    %388 = vector.broadcast %387 : vector<8x1xf32> to vector<8x8xf32>
    %389 = arith.mulf %384, %388 : vector<8x8xf32>
    %cst_170 = arith.constant dense<0.000000e+00> : vector<8x16xf32>
    %390 = tpu.matmul %389, %375, %cst_170 {dimension_numbers = #tpu.dot_dimension_numbers<[1], [0], [0], [1], [0, 0, 1, 1], [], []>} : vector<8x8xf32>, vector<8x16xf32>, vector<8x16xf32> -> vector<8x16xf32>
    %391 = vector.extract_strided_slice %350 {offsets = [16, 0], sizes = [16, 32], strides = [1, 1]} : vector<32x32xf32> to vector<16x32xf32>
    %cst_171 = arith.constant dense<0.000000e+00> : vector<8x32xf32>
    %392 = tpu.matmul %390, %391, %cst_171 {dimension_numbers = #tpu.dot_dimension_numbers<[1], [0], [0], [1], [0, 0, 1, 1], [], []>} : vector<8x16xf32>, vector<16x32xf32>, vector<8x32xf32> -> vector<8x32xf32>
    %393 = arith.addf %372, %392 : vector<8x32xf32>
    %394 = vector.extract_strided_slice %346 {offsets = [8, 0], sizes = [8, 16], strides = [1, 1]} : vector<16x32xf32> to vector<8x16xf32>
    %395 = vector.extract_strided_slice %347 {offsets = [8, 0], sizes = [8, 16], strides = [1, 1]} : vector<16x32xf32> to vector<8x16xf32>
    %396 = vector.extract_strided_slice %348 {offsets = [8, 0], sizes = [8, 16], strides = [1, 1]} : vector<16x32xf32> to vector<8x16xf32>
    %397 = tpu.transpose %395, [1, 0] : vector<8x16xf32> -> vector<16x8xf32>
    %cst_172 = arith.constant dense<0.000000e+00> : vector<8x8xf32>
    %398 = tpu.matmul %394, %397, %cst_172 {dimension_numbers = #tpu.dot_dimension_numbers<[1], [0], [0], [1], [0, 0, 1, 1], [], []>} : vector<8x16xf32>, vector<16x8xf32>, vector<8x8xf32> -> vector<8x8xf32>
    %cst_173 = arith.constant 2.500000e-01 : f32
    %399 = vector.broadcast %cst_173 : f32 to vector<8x8xf32>
    %400 = arith.mulf %398, %399 : vector<8x8xf32>
    %cst_174 = arith.constant dense<0xFF800000> : vector<8xf32>
    %401 = vector.multi_reduction <maximumf>, %400, %cst_174 [1] : vector<8x8xf32> to vector<8xf32>
    %402 = vector.shape_cast %401 : vector<8xf32> to vector<8x1xf32>
    %403 = vector.broadcast %402 : vector<8x1xf32> to vector<8x8xf32>
    %404 = arith.subf %400, %403 : vector<8x8xf32>
    %405 = math.exp %404 : vector<8x8xf32>
    %cst_175 = arith.constant dense<0.000000e+00> : vector<8xf32>
    %406 = vector.multi_reduction <add>, %405, %cst_175 [1] : vector<8x8xf32> to vector<8xf32>
    %407 = vector.shape_cast %406 : vector<8xf32> to vector<8x1xf32>
    %408 = tpu.reciprocal %407 {approx = true} : vector<8x1xf32> -> vector<8x1xf32>
    %409 = vector.broadcast %408 : vector<8x1xf32> to vector<8x8xf32>
    %410 = arith.mulf %405, %409 : vector<8x8xf32>
    %cst_176 = arith.constant dense<0.000000e+00> : vector<8x16xf32>
    %411 = tpu.matmul %410, %396, %cst_176 {dimension_numbers = #tpu.dot_dimension_numbers<[1], [0], [0], [1], [0, 0, 1, 1], [], []>} : vector<8x8xf32>, vector<8x16xf32>, vector<8x16xf32> -> vector<8x16xf32>
    %412 = vector.extract_strided_slice %350 {offsets = [0, 0], sizes = [16, 32], strides = [1, 1]} : vector<32x32xf32> to vector<16x32xf32>
    %cst_177 = arith.constant dense<0.000000e+00> : vector<8x32xf32>
    %413 = tpu.matmul %411, %412, %cst_177 {dimension_numbers = #tpu.dot_dimension_numbers<[1], [0], [0], [1], [0, 0, 1, 1], [], []>} : vector<8x16xf32>, vector<16x32xf32>, vector<8x32xf32> -> vector<8x32xf32>
    %414 = vector.extract_strided_slice %346 {offsets = [8, 16], sizes = [8, 16], strides = [1, 1]} : vector<16x32xf32> to vector<8x16xf32>
    %415 = vector.extract_strided_slice %347 {offsets = [8, 16], sizes = [8, 16], strides = [1, 1]} : vector<16x32xf32> to vector<8x16xf32>
    %416 = vector.extract_strided_slice %348 {offsets = [8, 16], sizes = [8, 16], strides = [1, 1]} : vector<16x32xf32> to vector<8x16xf32>
    %417 = tpu.transpose %415, [1, 0] : vector<8x16xf32> -> vector<16x8xf32>
    %cst_178 = arith.constant dense<0.000000e+00> : vector<8x8xf32>
    %418 = tpu.matmul %414, %417, %cst_178 {dimension_numbers = #tpu.dot_dimension_numbers<[1], [0], [0], [1], [0, 0, 1, 1], [], []>} : vector<8x16xf32>, vector<16x8xf32>, vector<8x8xf32> -> vector<8x8xf32>
    %cst_179 = arith.constant 2.500000e-01 : f32
    %419 = vector.broadcast %cst_179 : f32 to vector<8x8xf32>
    %420 = arith.mulf %418, %419 : vector<8x8xf32>
    %cst_180 = arith.constant dense<0xFF800000> : vector<8xf32>
    %421 = vector.multi_reduction <maximumf>, %420, %cst_180 [1] : vector<8x8xf32> to vector<8xf32>
    %422 = vector.shape_cast %421 : vector<8xf32> to vector<8x1xf32>
    %423 = vector.broadcast %422 : vector<8x1xf32> to vector<8x8xf32>
    %424 = arith.subf %420, %423 : vector<8x8xf32>
    %425 = math.exp %424 : vector<8x8xf32>
    %cst_181 = arith.constant dense<0.000000e+00> : vector<8xf32>
    %426 = vector.multi_reduction <add>, %425, %cst_181 [1] : vector<8x8xf32> to vector<8xf32>
    %427 = vector.shape_cast %426 : vector<8xf32> to vector<8x1xf32>
    %428 = tpu.reciprocal %427 {approx = true} : vector<8x1xf32> -> vector<8x1xf32>
    %429 = vector.broadcast %428 : vector<8x1xf32> to vector<8x8xf32>
    %430 = arith.mulf %425, %429 : vector<8x8xf32>
    %cst_182 = arith.constant dense<0.000000e+00> : vector<8x16xf32>
    %431 = tpu.matmul %430, %416, %cst_182 {dimension_numbers = #tpu.dot_dimension_numbers<[1], [0], [0], [1], [0, 0, 1, 1], [], []>} : vector<8x8xf32>, vector<8x16xf32>, vector<8x16xf32> -> vector<8x16xf32>
    %432 = vector.extract_strided_slice %350 {offsets = [16, 0], sizes = [16, 32], strides = [1, 1]} : vector<32x32xf32> to vector<16x32xf32>
    %cst_183 = arith.constant dense<0.000000e+00> : vector<8x32xf32>
    %433 = tpu.matmul %431, %432, %cst_183 {dimension_numbers = #tpu.dot_dimension_numbers<[1], [0], [0], [1], [0, 0, 1, 1], [], []>} : vector<8x16xf32>, vector<16x32xf32>, vector<8x32xf32> -> vector<8x32xf32>
    %434 = arith.addf %413, %433 : vector<8x32xf32>
    %435 = tpu.concatenate %393, %434 in 0 : vector<8x32xf32>, vector<8x32xf32> -> vector<16x32xf32>
    %436 = vector.broadcast %352 : vector<1x32xf32> to vector<16x32xf32>
    %437 = arith.addf %435, %436 : vector<16x32xf32>
    %438 = arith.addf %338, %437 : vector<16x32xf32>
    %c1_184 = arith.constant 1 : index
    %c0_185 = arith.constant 0 : index
    %c0_186 = arith.constant 0 : index
    %439 = vector.load %arg23[%c1_184, %c0_185, %c0_186] : memref<2x1x32xf32, #tpu.memory_space<vmem>>, vector<1x1x32xf32>
    %440 = vector.shape_cast %439 : vector<1x1x32xf32> to vector<1x32xf32>
    %c1_187 = arith.constant 1 : index
    %c0_188 = arith.constant 0 : index
    %c0_189 = arith.constant 0 : index
    %441 = vector.load %arg24[%c1_187, %c0_188, %c0_189] : memref<2x1x32xf32, #tpu.memory_space<vmem>>, vector<1x1x32xf32>
    %442 = vector.shape_cast %441 : vector<1x1x32xf32> to vector<1x32xf32>
    %cst_190 = arith.constant dense<0.000000e+00> : vector<16xf32>
    %443 = vector.multi_reduction <add>, %438, %cst_190 [1] : vector<16x32xf32> to vector<16xf32>
    %444 = vector.shape_cast %443 : vector<16xf32> to vector<16x1xf32>
    %cst_191 = arith.constant 3.200000e+01 : f32
    %445 = vector.broadcast %cst_191 : f32 to vector<16x1xf32>
    %446 = arith.divf %444, %445 : vector<16x1xf32>
    %447 = vector.broadcast %446 : vector<16x1xf32> to vector<16x32xf32>
    %448 = arith.subf %438, %447 : vector<16x32xf32>
    %449 = arith.mulf %448, %448 : vector<16x32xf32>
    %cst_192 = arith.constant dense<0.000000e+00> : vector<16xf32>
    %450 = vector.multi_reduction <add>, %449, %cst_192 [1] : vector<16x32xf32> to vector<16xf32>
    %451 = vector.shape_cast %450 : vector<16xf32> to vector<16x1xf32>
    %cst_193 = arith.constant 3.200000e+01 : f32
    %452 = vector.broadcast %cst_193 : f32 to vector<16x1xf32>
    %453 = arith.divf %451, %452 : vector<16x1xf32>
    %454 = vector.broadcast %446 : vector<16x1xf32> to vector<16x32xf32>
    %455 = arith.subf %438, %454 : vector<16x32xf32>
    %cst_194 = arith.constant 9.99999974E-6 : f32
    %456 = vector.broadcast %cst_194 : f32 to vector<16x1xf32>
    %457 = arith.addf %453, %456 : vector<16x1xf32>
    %458 = math.rsqrt %457 : vector<16x1xf32>
    %459 = vector.broadcast %458 : vector<16x1xf32> to vector<16x32xf32>
    %460 = arith.mulf %455, %459 : vector<16x32xf32>
    %461 = vector.broadcast %440 : vector<1x32xf32> to vector<16x32xf32>
    %462 = arith.mulf %460, %461 : vector<16x32xf32>
    %463 = vector.broadcast %442 : vector<1x32xf32> to vector<16x32xf32>
    %464 = arith.addf %462, %463 : vector<16x32xf32>
    %c1_195 = arith.constant 1 : index
    %c0_196 = arith.constant 0 : index
    %c0_197 = arith.constant 0 : index
    %465 = vector.load %arg17[%c1_195, %c0_196, %c0_197] : memref<2x32x32xf32, #tpu.memory_space<vmem>>, vector<1x32x32xf32>
    %466 = vector.shape_cast %465 : vector<1x32x32xf32> to vector<32x32xf32>
    %cst_198 = arith.constant dense<0.000000e+00> : vector<16x32xf32>
    %467 = tpu.matmul %464, %466, %cst_198 {dimension_numbers = #tpu.dot_dimension_numbers<[1], [0], [0], [1], [0, 0, 1, 1], [], []>} : vector<16x32xf32>, vector<32x32xf32>, vector<16x32xf32> -> vector<16x32xf32>
    %c1_199 = arith.constant 1 : index
    %c0_200 = arith.constant 0 : index
    %c0_201 = arith.constant 0 : index
    %468 = vector.load %arg18[%c1_199, %c0_200, %c0_201] : memref<2x1x32xf32, #tpu.memory_space<vmem>>, vector<1x1x32xf32>
    %469 = vector.shape_cast %468 : vector<1x1x32xf32> to vector<1x32xf32>
    %470 = vector.broadcast %469 : vector<1x32xf32> to vector<16x32xf32>
    %471 = arith.addf %467, %470 : vector<16x32xf32>
    %c1_202 = arith.constant 1 : index
    %c0_203 = arith.constant 0 : index
    %c0_204 = arith.constant 0 : index
    %472 = vector.load %arg19[%c1_202, %c0_203, %c0_204] : memref<2x32x64xf32, #tpu.memory_space<vmem>>, vector<1x32x64xf32>
    %473 = vector.shape_cast %472 : vector<1x32x64xf32> to vector<32x64xf32>
    %cst_205 = arith.constant dense<0.000000e+00> : vector<16x64xf32>
    %474 = tpu.matmul %338, %473, %cst_205 {dimension_numbers = #tpu.dot_dimension_numbers<[1], [0], [0], [1], [0, 0, 1, 1], [], []>} : vector<16x32xf32>, vector<32x64xf32>, vector<16x64xf32> -> vector<16x64xf32>
    %c1_206 = arith.constant 1 : index
    %c0_207 = arith.constant 0 : index
    %c0_208 = arith.constant 0 : index
    %475 = vector.load %arg20[%c1_206, %c0_207, %c0_208] : memref<2x1x64xf32, #tpu.memory_space<vmem>>, vector<1x1x64xf32>
    %476 = vector.shape_cast %475 : vector<1x1x64xf32> to vector<1x64xf32>
    %477 = vector.broadcast %476 : vector<1x64xf32> to vector<16x64xf32>
    %478 = arith.addf %474, %477 : vector<16x64xf32>
    %479 = vector.extract_strided_slice %478 {offsets = [0, 0], sizes = [16, 32], strides = [1, 1]} : vector<16x64xf32> to vector<16x32xf32>
    %480 = vector.extract_strided_slice %478 {offsets = [0, 32], sizes = [16, 32], strides = [1, 1]} : vector<16x64xf32> to vector<16x32xf32>
    %c1_209 = arith.constant 1 : index
    %c0_210 = arith.constant 0 : index
    %c0_211 = arith.constant 0 : index
    %481 = vector.load %arg21[%c1_209, %c0_210, %c0_211] : memref<2x32x32xf32, #tpu.memory_space<vmem>>, vector<1x32x32xf32>
    %482 = vector.shape_cast %481 : vector<1x32x32xf32> to vector<32x32xf32>
    %c1_212 = arith.constant 1 : index
    %c0_213 = arith.constant 0 : index
    %c0_214 = arith.constant 0 : index
    %483 = vector.load %arg22[%c1_212, %c0_213, %c0_214] : memref<2x1x32xf32, #tpu.memory_space<vmem>>, vector<1x1x32xf32>
    %484 = vector.shape_cast %483 : vector<1x1x32xf32> to vector<1x32xf32>
    %485 = vector.extract_strided_slice %471 {offsets = [0, 0], sizes = [8, 16], strides = [1, 1]} : vector<16x32xf32> to vector<8x16xf32>
    %486 = vector.extract_strided_slice %479 {offsets = [0, 0], sizes = [8, 16], strides = [1, 1]} : vector<16x32xf32> to vector<8x16xf32>
    %487 = vector.extract_strided_slice %480 {offsets = [0, 0], sizes = [8, 16], strides = [1, 1]} : vector<16x32xf32> to vector<8x16xf32>
    %488 = tpu.transpose %486, [1, 0] : vector<8x16xf32> -> vector<16x8xf32>
    %cst_215 = arith.constant dense<0.000000e+00> : vector<8x8xf32>
    %489 = tpu.matmul %485, %488, %cst_215 {dimension_numbers = #tpu.dot_dimension_numbers<[1], [0], [0], [1], [0, 0, 1, 1], [], []>} : vector<8x16xf32>, vector<16x8xf32>, vector<8x8xf32> -> vector<8x8xf32>
    %cst_216 = arith.constant 2.500000e-01 : f32
    %490 = vector.broadcast %cst_216 : f32 to vector<8x8xf32>
    %491 = arith.mulf %489, %490 : vector<8x8xf32>
    %cst_217 = arith.constant dense<0xFF800000> : vector<8xf32>
    %492 = vector.multi_reduction <maximumf>, %491, %cst_217 [1] : vector<8x8xf32> to vector<8xf32>
    %493 = vector.shape_cast %492 : vector<8xf32> to vector<8x1xf32>
    %494 = vector.broadcast %493 : vector<8x1xf32> to vector<8x8xf32>
    %495 = arith.subf %491, %494 : vector<8x8xf32>
    %496 = math.exp %495 : vector<8x8xf32>
    %cst_218 = arith.constant dense<0.000000e+00> : vector<8xf32>
    %497 = vector.multi_reduction <add>, %496, %cst_218 [1] : vector<8x8xf32> to vector<8xf32>
    %498 = vector.shape_cast %497 : vector<8xf32> to vector<8x1xf32>
    %499 = tpu.reciprocal %498 {approx = true} : vector<8x1xf32> -> vector<8x1xf32>
    %500 = vector.broadcast %499 : vector<8x1xf32> to vector<8x8xf32>
    %501 = arith.mulf %496, %500 : vector<8x8xf32>
    %cst_219 = arith.constant dense<0.000000e+00> : vector<8x16xf32>
    %502 = tpu.matmul %501, %487, %cst_219 {dimension_numbers = #tpu.dot_dimension_numbers<[1], [0], [0], [1], [0, 0, 1, 1], [], []>} : vector<8x8xf32>, vector<8x16xf32>, vector<8x16xf32> -> vector<8x16xf32>
    %503 = vector.extract_strided_slice %482 {offsets = [0, 0], sizes = [16, 32], strides = [1, 1]} : vector<32x32xf32> to vector<16x32xf32>
    %cst_220 = arith.constant dense<0.000000e+00> : vector<8x32xf32>
    %504 = tpu.matmul %502, %503, %cst_220 {dimension_numbers = #tpu.dot_dimension_numbers<[1], [0], [0], [1], [0, 0, 1, 1], [], []>} : vector<8x16xf32>, vector<16x32xf32>, vector<8x32xf32> -> vector<8x32xf32>
    %505 = vector.extract_strided_slice %471 {offsets = [0, 16], sizes = [8, 16], strides = [1, 1]} : vector<16x32xf32> to vector<8x16xf32>
    %506 = vector.extract_strided_slice %479 {offsets = [0, 16], sizes = [8, 16], strides = [1, 1]} : vector<16x32xf32> to vector<8x16xf32>
    %507 = vector.extract_strided_slice %480 {offsets = [0, 16], sizes = [8, 16], strides = [1, 1]} : vector<16x32xf32> to vector<8x16xf32>
    %508 = tpu.transpose %506, [1, 0] : vector<8x16xf32> -> vector<16x8xf32>
    %cst_221 = arith.constant dense<0.000000e+00> : vector<8x8xf32>
    %509 = tpu.matmul %505, %508, %cst_221 {dimension_numbers = #tpu.dot_dimension_numbers<[1], [0], [0], [1], [0, 0, 1, 1], [], []>} : vector<8x16xf32>, vector<16x8xf32>, vector<8x8xf32> -> vector<8x8xf32>
    %cst_222 = arith.constant 2.500000e-01 : f32
    %510 = vector.broadcast %cst_222 : f32 to vector<8x8xf32>
    %511 = arith.mulf %509, %510 : vector<8x8xf32>
    %cst_223 = arith.constant dense<0xFF800000> : vector<8xf32>
    %512 = vector.multi_reduction <maximumf>, %511, %cst_223 [1] : vector<8x8xf32> to vector<8xf32>
    %513 = vector.shape_cast %512 : vector<8xf32> to vector<8x1xf32>
    %514 = vector.broadcast %513 : vector<8x1xf32> to vector<8x8xf32>
    %515 = arith.subf %511, %514 : vector<8x8xf32>
    %516 = math.exp %515 : vector<8x8xf32>
    %cst_224 = arith.constant dense<0.000000e+00> : vector<8xf32>
    %517 = vector.multi_reduction <add>, %516, %cst_224 [1] : vector<8x8xf32> to vector<8xf32>
    %518 = vector.shape_cast %517 : vector<8xf32> to vector<8x1xf32>
    %519 = tpu.reciprocal %518 {approx = true} : vector<8x1xf32> -> vector<8x1xf32>
    %520 = vector.broadcast %519 : vector<8x1xf32> to vector<8x8xf32>
    %521 = arith.mulf %516, %520 : vector<8x8xf32>
    %cst_225 = arith.constant dense<0.000000e+00> : vector<8x16xf32>
    %522 = tpu.matmul %521, %507, %cst_225 {dimension_numbers = #tpu.dot_dimension_numbers<[1], [0], [0], [1], [0, 0, 1, 1], [], []>} : vector<8x8xf32>, vector<8x16xf32>, vector<8x16xf32> -> vector<8x16xf32>
    %523 = vector.extract_strided_slice %482 {offsets = [16, 0], sizes = [16, 32], strides = [1, 1]} : vector<32x32xf32> to vector<16x32xf32>
    %cst_226 = arith.constant dense<0.000000e+00> : vector<8x32xf32>
    %524 = tpu.matmul %522, %523, %cst_226 {dimension_numbers = #tpu.dot_dimension_numbers<[1], [0], [0], [1], [0, 0, 1, 1], [], []>} : vector<8x16xf32>, vector<16x32xf32>, vector<8x32xf32> -> vector<8x32xf32>
    %525 = arith.addf %504, %524 : vector<8x32xf32>
    %526 = vector.extract_strided_slice %471 {offsets = [8, 0], sizes = [8, 16], strides = [1, 1]} : vector<16x32xf32> to vector<8x16xf32>
    %527 = vector.extract_strided_slice %479 {offsets = [8, 0], sizes = [8, 16], strides = [1, 1]} : vector<16x32xf32> to vector<8x16xf32>
    %528 = vector.extract_strided_slice %480 {offsets = [8, 0], sizes = [8, 16], strides = [1, 1]} : vector<16x32xf32> to vector<8x16xf32>
    %529 = tpu.transpose %527, [1, 0] : vector<8x16xf32> -> vector<16x8xf32>
    %cst_227 = arith.constant dense<0.000000e+00> : vector<8x8xf32>
    %530 = tpu.matmul %526, %529, %cst_227 {dimension_numbers = #tpu.dot_dimension_numbers<[1], [0], [0], [1], [0, 0, 1, 1], [], []>} : vector<8x16xf32>, vector<16x8xf32>, vector<8x8xf32> -> vector<8x8xf32>
    %cst_228 = arith.constant 2.500000e-01 : f32
    %531 = vector.broadcast %cst_228 : f32 to vector<8x8xf32>
    %532 = arith.mulf %530, %531 : vector<8x8xf32>
    %cst_229 = arith.constant dense<0xFF800000> : vector<8xf32>
    %533 = vector.multi_reduction <maximumf>, %532, %cst_229 [1] : vector<8x8xf32> to vector<8xf32>
    %534 = vector.shape_cast %533 : vector<8xf32> to vector<8x1xf32>
    %535 = vector.broadcast %534 : vector<8x1xf32> to vector<8x8xf32>
    %536 = arith.subf %532, %535 : vector<8x8xf32>
    %537 = math.exp %536 : vector<8x8xf32>
    %cst_230 = arith.constant dense<0.000000e+00> : vector<8xf32>
    %538 = vector.multi_reduction <add>, %537, %cst_230 [1] : vector<8x8xf32> to vector<8xf32>
    %539 = vector.shape_cast %538 : vector<8xf32> to vector<8x1xf32>
    %540 = tpu.reciprocal %539 {approx = true} : vector<8x1xf32> -> vector<8x1xf32>
    %541 = vector.broadcast %540 : vector<8x1xf32> to vector<8x8xf32>
    %542 = arith.mulf %537, %541 : vector<8x8xf32>
    %cst_231 = arith.constant dense<0.000000e+00> : vector<8x16xf32>
    %543 = tpu.matmul %542, %528, %cst_231 {dimension_numbers = #tpu.dot_dimension_numbers<[1], [0], [0], [1], [0, 0, 1, 1], [], []>} : vector<8x8xf32>, vector<8x16xf32>, vector<8x16xf32> -> vector<8x16xf32>
    %544 = vector.extract_strided_slice %482 {offsets = [0, 0], sizes = [16, 32], strides = [1, 1]} : vector<32x32xf32> to vector<16x32xf32>
    %cst_232 = arith.constant dense<0.000000e+00> : vector<8x32xf32>
    %545 = tpu.matmul %543, %544, %cst_232 {dimension_numbers = #tpu.dot_dimension_numbers<[1], [0], [0], [1], [0, 0, 1, 1], [], []>} : vector<8x16xf32>, vector<16x32xf32>, vector<8x32xf32> -> vector<8x32xf32>
    %546 = vector.extract_strided_slice %471 {offsets = [8, 16], sizes = [8, 16], strides = [1, 1]} : vector<16x32xf32> to vector<8x16xf32>
    %547 = vector.extract_strided_slice %479 {offsets = [8, 16], sizes = [8, 16], strides = [1, 1]} : vector<16x32xf32> to vector<8x16xf32>
    %548 = vector.extract_strided_slice %480 {offsets = [8, 16], sizes = [8, 16], strides = [1, 1]} : vector<16x32xf32> to vector<8x16xf32>
    %549 = tpu.transpose %547, [1, 0] : vector<8x16xf32> -> vector<16x8xf32>
    %cst_233 = arith.constant dense<0.000000e+00> : vector<8x8xf32>
    %550 = tpu.matmul %546, %549, %cst_233 {dimension_numbers = #tpu.dot_dimension_numbers<[1], [0], [0], [1], [0, 0, 1, 1], [], []>} : vector<8x16xf32>, vector<16x8xf32>, vector<8x8xf32> -> vector<8x8xf32>
    %cst_234 = arith.constant 2.500000e-01 : f32
    %551 = vector.broadcast %cst_234 : f32 to vector<8x8xf32>
    %552 = arith.mulf %550, %551 : vector<8x8xf32>
    %cst_235 = arith.constant dense<0xFF800000> : vector<8xf32>
    %553 = vector.multi_reduction <maximumf>, %552, %cst_235 [1] : vector<8x8xf32> to vector<8xf32>
    %554 = vector.shape_cast %553 : vector<8xf32> to vector<8x1xf32>
    %555 = vector.broadcast %554 : vector<8x1xf32> to vector<8x8xf32>
    %556 = arith.subf %552, %555 : vector<8x8xf32>
    %557 = math.exp %556 : vector<8x8xf32>
    %cst_236 = arith.constant dense<0.000000e+00> : vector<8xf32>
    %558 = vector.multi_reduction <add>, %557, %cst_236 [1] : vector<8x8xf32> to vector<8xf32>
    %559 = vector.shape_cast %558 : vector<8xf32> to vector<8x1xf32>
    %560 = tpu.reciprocal %559 {approx = true} : vector<8x1xf32> -> vector<8x1xf32>
    %561 = vector.broadcast %560 : vector<8x1xf32> to vector<8x8xf32>
    %562 = arith.mulf %557, %561 : vector<8x8xf32>
    %cst_237 = arith.constant dense<0.000000e+00> : vector<8x16xf32>
    %563 = tpu.matmul %562, %548, %cst_237 {dimension_numbers = #tpu.dot_dimension_numbers<[1], [0], [0], [1], [0, 0, 1, 1], [], []>} : vector<8x8xf32>, vector<8x16xf32>, vector<8x16xf32> -> vector<8x16xf32>
    %564 = vector.extract_strided_slice %482 {offsets = [16, 0], sizes = [16, 32], strides = [1, 1]} : vector<32x32xf32> to vector<16x32xf32>
    %cst_238 = arith.constant dense<0.000000e+00> : vector<8x32xf32>
    %565 = tpu.matmul %563, %564, %cst_238 {dimension_numbers = #tpu.dot_dimension_numbers<[1], [0], [0], [1], [0, 0, 1, 1], [], []>} : vector<8x16xf32>, vector<16x32xf32>, vector<8x32xf32> -> vector<8x32xf32>
    %566 = arith.addf %545, %565 : vector<8x32xf32>
    %567 = tpu.concatenate %525, %566 in 0 : vector<8x32xf32>, vector<8x32xf32> -> vector<16x32xf32>
    %568 = vector.broadcast %484 : vector<1x32xf32> to vector<16x32xf32>
    %569 = arith.addf %567, %568 : vector<16x32xf32>
    %570 = arith.addf %464, %569 : vector<16x32xf32>
    %c1_239 = arith.constant 1 : index
    %c0_240 = arith.constant 0 : index
    %c0_241 = arith.constant 0 : index
    %571 = vector.load %arg25[%c1_239, %c0_240, %c0_241] : memref<2x1x32xf32, #tpu.memory_space<vmem>>, vector<1x1x32xf32>
    %572 = vector.shape_cast %571 : vector<1x1x32xf32> to vector<1x32xf32>
    %c1_242 = arith.constant 1 : index
    %c0_243 = arith.constant 0 : index
    %c0_244 = arith.constant 0 : index
    %573 = vector.load %arg26[%c1_242, %c0_243, %c0_244] : memref<2x1x32xf32, #tpu.memory_space<vmem>>, vector<1x1x32xf32>
    %574 = vector.shape_cast %573 : vector<1x1x32xf32> to vector<1x32xf32>
    %cst_245 = arith.constant dense<0.000000e+00> : vector<16xf32>
    %575 = vector.multi_reduction <add>, %570, %cst_245 [1] : vector<16x32xf32> to vector<16xf32>
    %576 = vector.shape_cast %575 : vector<16xf32> to vector<16x1xf32>
    %cst_246 = arith.constant 3.200000e+01 : f32
    %577 = vector.broadcast %cst_246 : f32 to vector<16x1xf32>
    %578 = arith.divf %576, %577 : vector<16x1xf32>
    %579 = vector.broadcast %578 : vector<16x1xf32> to vector<16x32xf32>
    %580 = arith.subf %570, %579 : vector<16x32xf32>
    %581 = arith.mulf %580, %580 : vector<16x32xf32>
    %cst_247 = arith.constant dense<0.000000e+00> : vector<16xf32>
    %582 = vector.multi_reduction <add>, %581, %cst_247 [1] : vector<16x32xf32> to vector<16xf32>
    %583 = vector.shape_cast %582 : vector<16xf32> to vector<16x1xf32>
    %cst_248 = arith.constant 3.200000e+01 : f32
    %584 = vector.broadcast %cst_248 : f32 to vector<16x1xf32>
    %585 = arith.divf %583, %584 : vector<16x1xf32>
    %586 = vector.broadcast %578 : vector<16x1xf32> to vector<16x32xf32>
    %587 = arith.subf %570, %586 : vector<16x32xf32>
    %cst_249 = arith.constant 9.99999974E-6 : f32
    %588 = vector.broadcast %cst_249 : f32 to vector<16x1xf32>
    %589 = arith.addf %585, %588 : vector<16x1xf32>
    %590 = math.rsqrt %589 : vector<16x1xf32>
    %591 = vector.broadcast %590 : vector<16x1xf32> to vector<16x32xf32>
    %592 = arith.mulf %587, %591 : vector<16x32xf32>
    %593 = vector.broadcast %572 : vector<1x32xf32> to vector<16x32xf32>
    %594 = arith.mulf %592, %593 : vector<16x32xf32>
    %595 = vector.broadcast %574 : vector<1x32xf32> to vector<16x32xf32>
    %596 = arith.addf %594, %595 : vector<16x32xf32>
    %c1_250 = arith.constant 1 : index
    %c0_251 = arith.constant 0 : index
    %c0_252 = arith.constant 0 : index
    %597 = vector.load %arg29[%c1_250, %c0_251, %c0_252] : memref<2x32x64xf32, #tpu.memory_space<vmem>>, vector<1x32x64xf32>
    %598 = vector.shape_cast %597 : vector<1x32x64xf32> to vector<32x64xf32>
    %c1_253 = arith.constant 1 : index
    %c0_254 = arith.constant 0 : index
    %c0_255 = arith.constant 0 : index
    %599 = vector.load %arg30[%c1_253, %c0_254, %c0_255] : memref<2x1x64xf32, #tpu.memory_space<vmem>>, vector<1x1x64xf32>
    %600 = vector.shape_cast %599 : vector<1x1x64xf32> to vector<1x64xf32>
    %c1_256 = arith.constant 1 : index
    %c0_257 = arith.constant 0 : index
    %c0_258 = arith.constant 0 : index
    %601 = vector.load %arg31[%c1_256, %c0_257, %c0_258] : memref<2x64x32xf32, #tpu.memory_space<vmem>>, vector<1x64x32xf32>
    %602 = vector.shape_cast %601 : vector<1x64x32xf32> to vector<64x32xf32>
    %c1_259 = arith.constant 1 : index
    %c0_260 = arith.constant 0 : index
    %c0_261 = arith.constant 0 : index
    %603 = vector.load %arg32[%c1_259, %c0_260, %c0_261] : memref<2x1x32xf32, #tpu.memory_space<vmem>>, vector<1x1x32xf32>
    %604 = vector.shape_cast %603 : vector<1x1x32xf32> to vector<1x32xf32>
    %cst_262 = arith.constant dense<0.000000e+00> : vector<16x64xf32>
    %605 = tpu.matmul %596, %598, %cst_262 {dimension_numbers = #tpu.dot_dimension_numbers<[1], [0], [0], [1], [0, 0, 1, 1], [], []>} : vector<16x32xf32>, vector<32x64xf32>, vector<16x64xf32> -> vector<16x64xf32>
    %606 = vector.broadcast %600 : vector<1x64xf32> to vector<16x64xf32>
    %607 = arith.addf %605, %606 : vector<16x64xf32>
    %cst_263 = arith.constant 0.000000e+00 : f32
    %608 = vector.broadcast %cst_263 : f32 to vector<16x64xf32>
    %609 = arith.maximumf %607, %608 : vector<16x64xf32>
    %cst_264 = arith.constant dense<0.000000e+00> : vector<16x32xf32>
    %610 = tpu.matmul %609, %602, %cst_264 {dimension_numbers = #tpu.dot_dimension_numbers<[1], [0], [0], [1], [0, 0, 1, 1], [], []>} : vector<16x64xf32>, vector<64x32xf32>, vector<16x32xf32> -> vector<16x32xf32>
    %611 = vector.broadcast %604 : vector<1x32xf32> to vector<16x32xf32>
    %612 = arith.addf %610, %611 : vector<16x32xf32>
    %613 = arith.addf %596, %612 : vector<16x32xf32>
    %c1_265 = arith.constant 1 : index
    %c0_266 = arith.constant 0 : index
    %c0_267 = arith.constant 0 : index
    %614 = vector.load %arg27[%c1_265, %c0_266, %c0_267] : memref<2x1x32xf32, #tpu.memory_space<vmem>>, vector<1x1x32xf32>
    %615 = vector.shape_cast %614 : vector<1x1x32xf32> to vector<1x32xf32>
    %c1_268 = arith.constant 1 : index
    %c0_269 = arith.constant 0 : index
    %c0_270 = arith.constant 0 : index
    %616 = vector.load %arg28[%c1_268, %c0_269, %c0_270] : memref<2x1x32xf32, #tpu.memory_space<vmem>>, vector<1x1x32xf32>
    %617 = vector.shape_cast %616 : vector<1x1x32xf32> to vector<1x32xf32>
    %cst_271 = arith.constant dense<0.000000e+00> : vector<16xf32>
    %618 = vector.multi_reduction <add>, %613, %cst_271 [1] : vector<16x32xf32> to vector<16xf32>
    %619 = vector.shape_cast %618 : vector<16xf32> to vector<16x1xf32>
    %cst_272 = arith.constant 3.200000e+01 : f32
    %620 = vector.broadcast %cst_272 : f32 to vector<16x1xf32>
    %621 = arith.divf %619, %620 : vector<16x1xf32>
    %622 = vector.broadcast %621 : vector<16x1xf32> to vector<16x32xf32>
    %623 = arith.subf %613, %622 : vector<16x32xf32>
    %624 = arith.mulf %623, %623 : vector<16x32xf32>
    %cst_273 = arith.constant dense<0.000000e+00> : vector<16xf32>
    %625 = vector.multi_reduction <add>, %624, %cst_273 [1] : vector<16x32xf32> to vector<16xf32>
    %626 = vector.shape_cast %625 : vector<16xf32> to vector<16x1xf32>
    %cst_274 = arith.constant 3.200000e+01 : f32
    %627 = vector.broadcast %cst_274 : f32 to vector<16x1xf32>
    %628 = arith.divf %626, %627 : vector<16x1xf32>
    %629 = vector.broadcast %621 : vector<16x1xf32> to vector<16x32xf32>
    %630 = arith.subf %613, %629 : vector<16x32xf32>
    %cst_275 = arith.constant 9.99999974E-6 : f32
    %631 = vector.broadcast %cst_275 : f32 to vector<16x1xf32>
    %632 = arith.addf %628, %631 : vector<16x1xf32>
    %633 = math.rsqrt %632 : vector<16x1xf32>
    %634 = vector.broadcast %633 : vector<16x1xf32> to vector<16x32xf32>
    %635 = arith.mulf %630, %634 : vector<16x32xf32>
    %636 = vector.broadcast %615 : vector<1x32xf32> to vector<16x32xf32>
    %637 = arith.mulf %635, %636 : vector<16x32xf32>
    %638 = vector.broadcast %617 : vector<1x32xf32> to vector<16x32xf32>
    %639 = arith.addf %637, %638 : vector<16x32xf32>
    %c0_276 = arith.constant 0 : index
    %c0_277 = arith.constant 0 : index
    %640 = vector.load %arg33[%c0_276, %c0_277] : memref<32x15xf32, #tpu.memory_space<vmem>>, vector<32x15xf32>
    %cst_278 = arith.constant dense<0.000000e+00> : vector<16x15xf32>
    %641 = tpu.matmul %639, %640, %cst_278 {dimension_numbers = #tpu.dot_dimension_numbers<[1], [0], [0], [1], [0, 0, 1, 1], [], []>} : vector<16x32xf32>, vector<32x15xf32>, vector<16x15xf32> -> vector<16x15xf32>
    %c0_279 = arith.constant 0 : index
    %c0_280 = arith.constant 0 : index
    %642 = vector.load %arg34[%c0_279, %c0_280] : memref<1x15xf32, #tpu.memory_space<vmem>>, vector<1x15xf32>
    %643 = vector.broadcast %642 : vector<1x15xf32> to vector<16x15xf32>
    %644 = arith.addf %641, %643 : vector<16x15xf32>
    %c0_281 = arith.constant 0 : index
    %c0_282 = arith.constant 0 : index
    %645 = vector.load %arg35[%c0_281, %c0_282] : memref<16x15xf32, #tpu.memory_space<vmem>>, vector<16x15xf32>
    tpu.vector_store %arg35[%c0_281, %c0_282], %644 {strides = array<i32>} : memref<16x15xf32, #tpu.memory_space<vmem>>, vector<16x15xf32>,
    return
  }
}

</mosaic_0001>

<bundles_post_ra>
// kernel: tpu_custom_call.1
= control target key start
LH: loop header
LB: loop body
LE: loop exit
PB: predicated region body
PF: predicated region fallthrough
CT: control target
= control target key end

     0   :  { %s7462_s6 = smov 1   ;;  %s7463_s10 = smov 2   ;;  %s8388_s0 = inlined_call_operand.smem [shape: u32[36], index: -1, kind: input, shape index: {}] }
   0x1   :  { %s7539_s5 = sld [smem:[%s8388_s0]]   ;;  %s7464_s14 = smov 3  }
   0x2   :  { %s7544_s9 = sld [smem:[%s8388_s0 + %s7462_s6]]   ;;  %s7465_s18 = smov 4  }
   0x3   :  { %s7549_s13 = sld [smem:[%s8388_s0 + %s7463_s10]]   ;;  %s7466_s22 = smov 5  }
   0x4   :  { %s7554_s17 = sld [smem:[%s8388_s0 + %s7464_s14]]   ;;  %s7467_s26 = smov 6  }
   0x5   :  { %s7559_s21 = sld [smem:[%s8388_s0 + %s7465_s18]]   ;;  %s7468_s30 = smov 7  }
   0x6   :  { %s7564_s25 = sld [smem:[%s8388_s0 + %s7466_s22]]   ;;  %s7469_s4 = smov 8  }
   0x7   :  { %s7569_s29 = sld [smem:[%s8388_s0 + %s7467_s26]]   ;;  %s7470_s10 = smov 9  }
   0x8   :  { %8405 = sst [smem:[#allocation48_spill]] %s7544_s9  ;;  %s7471_s15 = smov 10  }
   0x9   :  { %8406 = sst [smem:[#allocation49_spill]] %s7549_s13  ;;  %s7472_s20 = smov 11  }
   0xa   :  { %8407 = sst [smem:[#allocation50_spill]] %s7554_s17  ;;  %s7473_s26 = smov 12  }
   0xb   :  { %s7574_s3 = sld [smem:[%s8388_s0 + %s7468_s30]]   ;;  %s7474_s1 = smov 13  }
   0xc   :  { %s7579_s8 = sld [smem:[%s8388_s0 + %s7469_s4]]   ;;  %s7475_s7 = smov 14  }
   0xd   :  { %s7584_s14 = sld [smem:[%s8388_s0 + %s7470_s10]]   ;;  %s7477_s22 = smov 16  }
   0xe   :  { %s7589_s19 = sld [smem:[%s8388_s0 + %s7471_s15]]   ;;  %s7476_s15 = smov 15  }
   0xf   :  { %s7594_s24 = sld [smem:[%s8388_s0 + %s7472_s20]]   ;;  %s7478_s28 = smov 17  }
  0x10   :  { %s7599_s30 = sld [smem:[%s8388_s0 + %s7473_s26]]  }
  0x11   :  { %8408 = sst [smem:[#allocation51_spill]] %s7574_s3 }
  0x12   :  { %s7604_s6 = sld [smem:[%s8388_s0 + %s7474_s1]]  }
  0x13   :  { %8409 = sst [smem:[#allocation52_spill]] %s7584_s14 }
  0x14   :  { %s7609_s12 = sld [smem:[%s8388_s0 + %s7475_s7]]   ;;  %s7479_s7 = smov 18  }
  0x15   :  { %s7614_s20 = sld [smem:[%s8388_s0 + %s7476_s15]]   ;;  %s7480_s15 = smov 19  }
  0x16   :  { %s7619_s27 = sld [smem:[%s8388_s0 + %s7477_s22]]   ;;  %s7481_s22 = smov 20  }
  0x17   :  { %s7624_s4 = sld [smem:[%s8388_s0 + %s7478_s28]]   ;;  %s7482_s28 = smov 21  }
  0x18   :  { %8410 = sst [smem:[#allocation53_spill]] %s7604_s6 }
  0x19   :  { %s7629_s6 = sld [smem:[%s8388_s0 + %s7479_s7]]   ;;  %s7483_s7 = smov 22  }
  0x1a   :  { %8411 = sst [smem:[#allocation54_spill]] %s7609_s12 }
  0x1b   :  { %8412 = sst [smem:[#allocation55_spill]] %s7614_s20 }
  0x1c   :  { %s7634_s20 = sld [smem:[%s8388_s0 + %s7480_s15]]   ;;  %s7484_s15 = smov 23  }
  0x1d   :  { %8413 = sst [smem:[#allocation56_spill]] %s7624_s4 }
  0x1e   :  { %s7639_s14 = sld [smem:[%s8388_s0 + %s7481_s22]]   ;;  %s7485_s22 = smov 24  }
  0x1f   :  { %s7644_s3 = sld [smem:[%s8388_s0 + %s7482_s28]]   ;;  %s7486_s28 = smov 25  }
  0x20   :  { %s7649_s17 = sld [smem:[%s8388_s0 + %s7483_s7]]   ;;  %s7487_s7 = smov 26  }
  0x21   :  { %s7654_s13 = sld [smem:[%s8388_s0 + %s7484_s15]]   ;;  %s7488_s15 = smov 27  }
  0x22   :  { %8414 = sst [smem:[#allocation57_spill]] %s7634_s20 }
  0x23   :  { %s7659_s9 = sld [smem:[%s8388_s0 + %s7485_s22]]   ;;  %s7489_s22 = smov 28  }
  0x24   :  { %s7669_s20 = sld [smem:[%s8388_s0 + %s7487_s7]]   ;;  %s7491_s7 = smov 30  }
  0x25   :  { %8415 = sst [smem:[#allocation58_spill]] %s7644_s3 }
  0x26   :  { %s7664_s3 = sld [smem:[%s8388_s0 + %s7486_s28]]   ;;  %s7490_s28 = smov 29  }
  0x27   :  { %8416 = sst [smem:[#allocation59_spill]] %s7654_s13 }
  0x28   :  { %s7674_s13 = sld [smem:[%s8388_s0 + %s7488_s15]]   ;;  %s7492_s15 = smov 31  }
  0x29   :  { %s7679_s4 = sld [smem:[%s8388_s0 + %s7489_s22]]   ;;  %s7493_s22 = smov 32  }
  0x2a   :  { %s7689_s12 = sld [smem:[%s8388_s0 + %s7491_s7]]   ;;  %s7495_s7 = smov 34  }
  0x2c   :  { %8417 = sst [smem:[#allocation60_spill]] %s7664_s3 }
  0x2d   :  { %s7684_s3 = sld [smem:[%s8388_s0 + %s7490_s28]]   ;;  %s7494_s28 = smov 33  }
  0x2e   :  { %8418 = sst [smem:[#allocation61_spill]] %s7674_s13 }
  0x2f   :  { %8419 = sst [smem:[#allocation62_spill]] %s7679_s4 }
  0x30   :  { %8421 = sst [smem:[#allocation64_spill]] %s7689_s12 }
  0x31   :  { %s7694_s13 = sld [smem:[%s8388_s0 + %s7492_s15]]   ;;  %s7496_s15 = smov 35  }
  0x32   :  { %s7699_s4 = sld [smem:[%s8388_s0 + %s7493_s22]]  }
  0x33   :  { %8420 = sst [smem:[#allocation63_spill]] %s7684_s3 }
  0x34   :  { %s7704_s3 = sld [smem:[%s8388_s0 + %s7494_s28]]  }
  0x35   :  { %s7709_s12 = sld [smem:[%s8388_s0 + %s7495_s7]]  }
  0x37   :  { %8422 = sst [smem:[#allocation65_spill]] %s7694_s13 }
  0x38   :  { %s7714_s13 = sld [smem:[%s8388_s0 + %s7496_s15]]  }
  0x39   :  { %76 = vsyncpa [#allocation3], 0 }
  0x3a   :  { %77 = vsyncpa [#allocation6], 0 }
  0x3b   :  { %78 = vsyncpa [#allocation9], 0 }
  0x3c   :  { %79 = vsyncpa [#allocation12], 0 }
  0x3d   :  { %80 = vsyncpa [#allocation15], 0 }
  0x3e   :  { %81 = vsyncpa [#allocation18], 0 }
  0x3f   :  { %82 = vsyncpa [#allocation21], 0 }
  0x40   :  { %83 = vsyncpa [#allocation24], 0 }
  0x41   :  { %84 = vsyncpa [#allocation27], 0 }
  0x42   :  { %85 = vsyncpa [#allocation30], 0 }
  0x43   :  { %86 = vsyncpa [#allocation33], 0 }
  0x44   :  { %87 = vsyncpa [#allocation4], 0  ;;  %s7497_s22 = smov [#allocation5]   ;;  %s6954_s0 = scalar_lea.hbm %s7559_s21, 32 }
  0x45   :  { %s111_s23 = sshll.u32 %s7497_s22, 4  ;;  %p6955_p0 = scmp.ne.s32.totalorder %s7559_s21, %s6954_s0  ;;  %s112_s23 = int_to_ptr.vmem [resolvable:$true] %s111_s23 }
  0x46   :  { %p6958_p1 = scmp.lt.u32.totalorder %s6954_s0, %s7559_s21 }
  0x48   :  { %p6960_p2 = pnand %p6958_p1, %p6955_p0 }
  0x4a   :  { %6963 = shalt.err (!%p6960_p2)
}
  0x4b   :  { %s6964_s26 = scalar_lea.vmem %s112_s23, 32  ;;  %p6969_p4 = scmp.lt.s32.totalorder %s112_s23, %s112_s23 }
  0x4c   :  { %p6965_p3 = scmp.ne.s32.totalorder %s112_s23, %s6964_s26  ;;  %p6970_p5 = scmp.lt.s32.totalorder %s6964_s26, %s6964_s26 }
  0x4e   :  { %p6971_p6 = por %p6970_p5, %p6969_p4 }
  0x50   :  { %p6972_p7 = pnand %p6971_p6, %p6965_p3 }
  0x52   :  { %6975 = shalt.err (!%p6972_p7)
}
  0x53   :  { %s7498_s28 = smov 16   ;;  %s7499_s1 = smov 1  }
  0x54   :  { %117 = dma.hbm_to_vmem [thread:$0]  %s7559_s21, 32, %s112_s23, [#allocation6], %s7498_s28, %s7498_s28, %s7499_s1  }
  0x55   :  { %s7500_s2 = smov [#allocation8]   ;;  %s7501_s10 = smov [#allocation11]  }
  0x56   :  { %s135_s7 = sshll.u32 %s7500_s2, 4  ;;  %s163_s11 = sshll.u32 %s7501_s10, 4  ;;  %s136_s7 = int_to_ptr.vmem [resolvable:$true] %s135_s7  ;;  %s164_s11 = int_to_ptr.vmem [resolvable:$true] %s163_s11 }
  0x57   :  { %s6976_s15 = scalar_lea.hbm %s7569_s29, 32 }
  0x58   :  { %p6977_p8 = scmp.ne.s32.totalorder %s7569_s29, %s6976_s15  ;;  %p6980_p9 = scmp.lt.u32.totalorder %s6976_s15, %s7569_s29 }
  0x5a   :  { %p6982_p10 = pnand %p6980_p9, %p6977_p8 }
  0x5c   :  { %6985 = shalt.err (!%p6982_p10)
}
  0x5d   :  { %s6986_s16 = scalar_lea.vmem %s136_s7, 32  ;;  %p6991_p12 = scmp.lt.s32.totalorder %s136_s7, %s136_s7 }
  0x5e   :  { %p6987_p11 = scmp.ne.s32.totalorder %s136_s7, %s6986_s16  ;;  %p6992_p13 = scmp.lt.s32.totalorder %s6986_s16, %s6986_s16 }
  0x60   :  { %p6993_p0 = por %p6992_p13, %p6991_p12 }
  0x62   :  { %p6994_p1 = pnand %p6993_p0, %p6987_p11 }
  0x64   :  { %6997 = shalt.err (!%p6994_p1)
}
  0x65   :  { %141 = dma.hbm_to_vmem [thread:$0]  %s7569_s29, 32, %s136_s7, [#allocation9], %s7498_s28, %s7498_s28, %s7499_s1  }
  0x66   :  { %s6998_s21 = scalar_lea.hbm %s7589_s19, 32 }
  0x67   :  { %p6999_p2 = scmp.ne.s32.totalorder %s7589_s19, %s6998_s21  ;;  %p7002_p3 = scmp.lt.u32.totalorder %s6998_s21, %s7589_s19 }
  0x69   :  { %p7004_p4 = pnand %p7002_p3, %p6999_p2 }
  0x6b   :  { %7007 = shalt.err (!%p7004_p4)
}
  0x6c   :  { %s7008_s18 = scalar_lea.vmem %s164_s11, 32  ;;  %p7013_p6 = scmp.lt.s32.totalorder %s164_s11, %s164_s11 }
  0x6d   :  { %p7009_p5 = scmp.ne.s32.totalorder %s164_s11, %s7008_s18  ;;  %p7014_p7 = scmp.lt.s32.totalorder %s7008_s18, %s7008_s18 }
  0x6f   :  { %p7015_p8 = por %p7014_p7, %p7013_p6 }
  0x71   :  { %p7016_p9 = pnand %p7015_p8, %p7009_p5 }
  0x73   :  { %7019 = shalt.err (!%p7016_p9)
}
  0x74   :  { %169 = dma.hbm_to_vmem [thread:$0]  %s7589_s19, 32, %s164_s11, [#allocation12], %s7498_s28, %s7498_s28, %s7499_s1  }
  0x75   :  { %s7502_s29 = smov [#allocation14]   ;;  %s7503_s23 = smov [#allocation17]  }
  0x76   :  { %s187_s22 = sshll.u32 %s7502_s29, 4  ;;  %s215_s0 = sshll.u32 %s7503_s23, 4  ;;  %s188_s22 = int_to_ptr.vmem [resolvable:$true] %s187_s22  ;;  %s216_s0 = int_to_ptr.vmem [resolvable:$true] %s215_s0 }
  0x77   :  { %s7020_s26 = scalar_lea.hbm %s7599_s30, 32 }
  0x78   :  { %p7021_p10 = scmp.ne.s32.totalorder %s7599_s30, %s7020_s26  ;;  %p7024_p11 = scmp.lt.u32.totalorder %s7020_s26, %s7599_s30 }
  0x7a   :  { %p7026_p12 = pnand %p7024_p11, %p7021_p10 }
  0x7c   :  { %7029 = shalt.err (!%p7026_p12)
}
  0x7d   :  { %s7030_s2 = scalar_lea.vmem %s188_s22, 32  ;;  %p7035_p0 = scmp.lt.s32.totalorder %s188_s22, %s188_s22 }
  0x7e   :  { %p7031_p13 = scmp.ne.s32.totalorder %s188_s22, %s7030_s2  ;;  %p7036_p1 = scmp.lt.s32.totalorder %s7030_s2, %s7030_s2 }
  0x80   :  { %p7037_p2 = por %p7036_p1, %p7035_p0 }
  0x82   :  { %p7038_p3 = pnand %p7037_p2, %p7031_p13 }
  0x84   :  { %7041 = shalt.err (!%p7038_p3)
}
  0x85   :  { %193 = dma.hbm_to_vmem [thread:$0]  %s7599_s30, 32, %s188_s22, [#allocation15], %s7498_s28, %s7498_s28, %s7499_s1  }
  0x86   :  { %s7042_s19 = scalar_lea.hbm %s7619_s27, 32 }
  0x87   :  { %p7043_p4 = scmp.ne.s32.totalorder %s7619_s27, %s7042_s19  ;;  %p7046_p5 = scmp.lt.u32.totalorder %s7042_s19, %s7619_s27 }
  0x89   :  { %p7048_p6 = pnand %p7046_p5, %p7043_p4 }
  0x8b   :  { %7051 = shalt.err (!%p7048_p6)
}
  0x8c   :  { %s7052_s7 = scalar_lea.vmem %s216_s0, 32  ;;  %p7057_p8 = scmp.lt.s32.totalorder %s216_s0, %s216_s0 }
  0x8d   :  { %p7053_p7 = scmp.ne.s32.totalorder %s216_s0, %s7052_s7  ;;  %p7058_p9 = scmp.lt.s32.totalorder %s7052_s7, %s7052_s7 }
  0x8f   :  { %p7059_p10 = por %p7058_p9, %p7057_p8 }
  0x91   :  { %p7060_p11 = pnand %p7059_p10, %p7053_p7 }
  0x93   :  { %7063 = shalt.err (!%p7060_p11)
}
  0x94   :  { %221 = dma.hbm_to_vmem [thread:$0]  %s7619_s27, 32, %s216_s0, [#allocation18], %s7498_s28, %s7498_s28, %s7499_s1  }
  0x95   :  { %s7504_s30 = smov [#allocation20]   ;;  %s7505_s11 = smov [#allocation23]  }
  0x96   :  { %s239_s10 = sshll.u32 %s7504_s30, 4  ;;  %s263_s15 = sshll.u32 %s7505_s11, 4  ;;  %s240_s10 = int_to_ptr.vmem [resolvable:$true] %s239_s10  ;;  %s264_s15 = int_to_ptr.vmem [resolvable:$true] %s263_s15 }
  0x97   :  { %s7064_s16 = scalar_lea.hbm %s7629_s6, 32 }
  0x98   :  { %p7065_p12 = scmp.ne.s32.totalorder %s7629_s6, %s7064_s16  ;;  %p7068_p13 = scmp.lt.u32.totalorder %s7064_s16, %s7629_s6 }
  0x9a   :  { %p7070_p0 = pnand %p7068_p13, %p7065_p12 }
  0x9c   :  { %7073 = shalt.err (!%p7070_p0)
}
  0x9d   :  { %s7074_s21 = scalar_lea.vmem %s240_s10, 32  ;;  %p7079_p2 = scmp.lt.s32.totalorder %s240_s10, %s240_s10 }
  0x9e   :  { %p7075_p1 = scmp.ne.s32.totalorder %s240_s10, %s7074_s21  ;;  %p7080_p3 = scmp.lt.s32.totalorder %s7074_s21, %s7074_s21 }
  0xa0   :  { %p7081_p4 = por %p7080_p3, %p7079_p2 }
  0xa2   :  { %p7082_p5 = pnand %p7081_p4, %p7075_p1 }
  0xa4   :  { %7085 = shalt.err (!%p7082_p5)
}
  0xa5   :  { %245 = dma.hbm_to_vmem [thread:$0]  %s7629_s6, 32, %s240_s10, [#allocation21], %s7498_s28, %s7498_s28, %s7499_s1  }
  0xa6   :  { %s7086_s27 = scalar_lea.hbm %s7639_s14, 32 }
  0xa7   :  { %p7087_p6 = scmp.ne.s32.totalorder %s7639_s14, %s7086_s27  ;;  %p7090_p7 = scmp.lt.u32.totalorder %s7086_s27, %s7639_s14 }
  0xa9   :  { %p7092_p8 = pnand %p7090_p7, %p7087_p6 }
  0xab   :  { %7095 = shalt.err (!%p7092_p8)
}
  0xac   :  { %s7096_s18 = scalar_lea.vmem %s264_s15, 32  ;;  %p7101_p10 = scmp.lt.s32.totalorder %s264_s15, %s264_s15 }
  0xad   :  { %p7097_p9 = scmp.ne.s32.totalorder %s264_s15, %s7096_s18  ;;  %p7102_p11 = scmp.lt.s32.totalorder %s7096_s18, %s7096_s18 }
  0xaf   :  { %p7103_p12 = por %p7102_p11, %p7101_p10 }
  0xb1   :  { %p7104_p13 = pnand %p7103_p12, %p7097_p9 }
  0xb3   :  { %7107 = shalt.err (!%p7104_p13)
}
  0xb4   :  { %269 = dma.hbm_to_vmem [thread:$0]  %s7639_s14, 32, %s264_s15, [#allocation24], %s7498_s28, %s7498_s28, %s7499_s1  }
  0xb5   :  { %s7506_s6 = smov [#allocation26]   ;;  %s7507_s22 = smov [#allocation29]  }
  0xb6   :  { %s287_s29 = sshll.u32 %s7506_s6, 4  ;;  %s311_s23 = sshll.u32 %s7507_s22, 4  ;;  %s288_s29 = int_to_ptr.vmem [resolvable:$true] %s287_s29  ;;  %s312_s23 = int_to_ptr.vmem [resolvable:$true] %s311_s23 }
  0xb7   :  { %s7108_s0 = scalar_lea.hbm %s7649_s17, 32 }
  0xb8   :  { %p7109_p0 = scmp.ne.s32.totalorder %s7649_s17, %s7108_s0  ;;  %p7112_p1 = scmp.lt.u32.totalorder %s7108_s0, %s7649_s17 }
  0xba   :  { %p7114_p2 = pnand %p7112_p1, %p7109_p0 }
  0xbc   :  { %7117 = shalt.err (!%p7114_p2)
}
  0xbd   :  { %s7118_s26 = scalar_lea.vmem %s288_s29, 32  ;;  %p7123_p4 = scmp.lt.s32.totalorder %s288_s29, %s288_s29 }
  0xbe   :  { %p7119_p3 = scmp.ne.s32.totalorder %s288_s29, %s7118_s26  ;;  %p7124_p5 = scmp.lt.s32.totalorder %s7118_s26, %s7118_s26 }
  0xc0   :  { %p7125_p6 = por %p7124_p5, %p7123_p4 }
  0xc2   :  { %p7126_p7 = pnand %p7125_p6, %p7119_p3 }
  0xc4   :  { %7129 = shalt.err (!%p7126_p7)
}
  0xc5   :  { %293 = dma.hbm_to_vmem [thread:$0]  %s7649_s17, 32, %s288_s29, [#allocation27], %s7498_s28, %s7498_s28, %s7499_s1  }
  0xc6   :  { %s7130_s14 = scalar_lea.hbm %s7659_s9, 32 }
  0xc7   :  { %p7131_p8 = scmp.ne.s32.totalorder %s7659_s9, %s7130_s14  ;;  %p7134_p9 = scmp.lt.u32.totalorder %s7130_s14, %s7659_s9 }
  0xc9   :  { %p7136_p10 = pnand %p7134_p9, %p7131_p8 }
  0xcb   :  { %7139 = shalt.err (!%p7136_p10)
}
  0xcc   :  { %s7140_s2 = scalar_lea.vmem %s312_s23, 32  ;;  %p7145_p12 = scmp.lt.s32.totalorder %s312_s23, %s312_s23 }
  0xcd   :  { %p7141_p11 = scmp.ne.s32.totalorder %s312_s23, %s7140_s2  ;;  %p7146_p13 = scmp.lt.s32.totalorder %s7140_s2, %s7140_s2 }
  0xcf   :  { %p7147_p0 = por %p7146_p13, %p7145_p12 }
  0xd1   :  { %p7148_p1 = pnand %p7147_p0, %p7141_p11 }
  0xd3   :  { %7151 = shalt.err (!%p7148_p1)
}
  0xd4   :  { %317 = dma.hbm_to_vmem [thread:$0]  %s7659_s9, 32, %s312_s23, [#allocation30], %s7498_s28, %s7498_s28, %s7499_s1  }
  0xd5   :  { %s7508_s17 = smov [#allocation32]   ;;  %s7509_s7 = smov [#allocation2]  }
  0xd6   :  { %s335_s19 = sshll.u32 %s7508_s17, 4  ;;  %s93_s30 = sshll.u32 %s7509_s7, 4  ;;  %s336_s19 = int_to_ptr.vmem [resolvable:$true] %s335_s19  ;;  %s94_s30 = int_to_ptr.vmem [resolvable:$true] %s93_s30 }
  0xd7   :  { %s7152_s10 = scalar_lea.hbm %s7669_s20, 32 }
  0xd8   :  { %p7153_p2 = scmp.ne.s32.totalorder %s7669_s20, %s7152_s10  ;;  %p7156_p3 = scmp.lt.u32.totalorder %s7152_s10, %s7669_s20 }
  0xda   :  { %p7158_p4 = pnand %p7156_p3, %p7153_p2 }
  0xdc   :  { %7161 = shalt.err (!%p7158_p4)
}
  0xdd   :  { %s7162_s11 = scalar_lea.vmem %s336_s19, 32  ;;  %p7167_p6 = scmp.lt.s32.totalorder %s336_s19, %s336_s19 }
  0xde   :  { %p7163_p5 = scmp.ne.s32.totalorder %s336_s19, %s7162_s11  ;;  %p7168_p7 = scmp.lt.s32.totalorder %s7162_s11, %s7162_s11 }
  0xe0   :  { %p7169_p8 = por %p7168_p7, %p7167_p6 }
  0xe2   :  { %p7170_p9 = pnand %p7169_p8, %p7163_p5 }
  0xe4   :  { %7173 = shalt.err (!%p7170_p9)
}
  0xe5   :  { %341 = dma.hbm_to_vmem [thread:$0]  %s7669_s20, 32, %s336_s19, [#allocation33], %s7498_s28, %s7498_s28, %s7499_s1  }
  0xe6   :  { %s7174_s9 = scalar_lea.hbm %s7539_s5, 256 }
  0xe7   :  { %p7175_p10 = scmp.ne.s32.totalorder %s7539_s5, %s7174_s9  ;;  %p7178_p11 = scmp.lt.u32.totalorder %s7174_s9, %s7539_s5 }
  0xe9   :  { %p7180_p12 = pnand %p7178_p11, %p7175_p10 }
  0xeb   :  { %7183 = shalt.err (!%p7180_p12)
}
  0xec   :  { %s7184_s15 = scalar_lea.vmem %s94_s30, 256  ;;  %p7189_p0 = scmp.lt.s32.totalorder %s94_s30, %s94_s30 }
  0xed   :  { %p7185_p13 = scmp.ne.s32.totalorder %s94_s30, %s7184_s15  ;;  %p7190_p1 = scmp.lt.s32.totalorder %s7184_s15, %s7184_s15 }
  0xef   :  { %p7191_p2 = por %p7190_p1, %p7189_p0 }
  0xf1   :  { %p7192_p3 = pnand %p7191_p2, %p7185_p13 }
  0xf3   :  { %7195 = shalt.err (!%p7192_p3)
}
  0xf4   :  { %s7510_s16 = smov 128   ;;  %s7511_s21 = smov 8  }
  0xf5   :  { %99 = dma.hbm_to_vmem [thread:$0]  %s7539_s5, 256, %s94_s30, [#allocation3], %s7510_s16, %s7510_s16, %s7511_s21  }
  0xf6   :  { %s7512_s20 = smov [#allocation7]   ;;  %s7513_s18 = smov [#allocation10]  }
  0xf7   :  { %s123_s27 = sshll.u32 %s7512_s20, 4  ;;  %s149_s6 = sshll.u32 %s7513_s18, 4  ;;  %s124_s27 = int_to_ptr.vmem [resolvable:$true] %s123_s27  ;;  %s150_s6 = int_to_ptr.vmem [resolvable:$true] %s149_s6 }
  0xf8   :  { %s7196_s29 = scalar_lea.hbm %s7564_s25, 32 }
  0xf9   :  { %p7197_p4 = scmp.ne.s32.totalorder %s7564_s25, %s7196_s29  ;;  %p7200_p5 = scmp.lt.u32.totalorder %s7196_s29, %s7564_s25 }
  0xfb   :  { %p7202_p6 = pnand %p7200_p5, %p7197_p4 }
  0xfd   :  { %7205 = shalt.err (!%p7202_p6)
}
  0xfe   :  { %s7206_s22 = scalar_lea.vmem %s124_s27, 32  ;;  %p7211_p8 = scmp.lt.s32.totalorder %s124_s27, %s124_s27 }
  0xff   :  { %p7207_p7 = scmp.ne.s32.totalorder %s124_s27, %s7206_s22  ;;  %p7212_p9 = scmp.lt.s32.totalorder %s7206_s22, %s7206_s22 }
 0x101   :  { %p7213_p10 = por %p7212_p9, %p7211_p8 }
 0x103   :  { %p7214_p11 = pnand %p7213_p10, %p7207_p7 }
 0x105   :  { %7217 = shalt.err (!%p7214_p11)
}
 0x106   :  { %129 = dma.hbm_to_vmem [thread:$0]  %s7564_s25, 32, %s124_s27, [#allocation6], %s7498_s28, %s7498_s28, %s7499_s1  }
 0x107   :  { %s7218_s5 = scalar_lea.hbm %s7579_s8, 32 }
 0x108   :  { %p7219_p12 = scmp.ne.s32.totalorder %s7579_s8, %s7218_s5  ;;  %p7222_p13 = scmp.lt.u32.totalorder %s7218_s5, %s7579_s8 }
 0x10a   :  { %p7224_p0 = pnand %p7222_p13, %p7219_p12 }
 0x10c   :  { %7227 = shalt.err (!%p7224_p0)
}
 0x10d   :  { %s7228_s23 = scalar_lea.vmem %s150_s6, 32  ;;  %p7233_p2 = scmp.lt.s32.totalorder %s150_s6, %s150_s6 }
 0x10e   :  { %p7229_p1 = scmp.ne.s32.totalorder %s150_s6, %s7228_s23  ;;  %p7234_p3 = scmp.lt.s32.totalorder %s7228_s23, %s7228_s23 }
 0x110   :  { %p7235_p4 = por %p7234_p3, %p7233_p2 }
 0x112   :  { %p7236_p5 = pnand %p7235_p4, %p7229_p1 }
 0x114   :  { %7239 = shalt.err (!%p7236_p5)
}
 0x115   :  { %155 = dma.hbm_to_vmem [thread:$0]  %s7579_s8, 32, %s150_s6, [#allocation9], %s7498_s28, %s7498_s28, %s7499_s1  }
 0x116   :  { %s7514_s25 = smov [#allocation13]   ;;  %s7515_s26 = smov [#allocation16]  }
 0x117   :  { %s175_s0 = sshll.u32 %s7514_s25, 4  ;;  %s201_s14 = sshll.u32 %s7515_s26, 4  ;;  %s176_s0 = int_to_ptr.vmem [resolvable:$true] %s175_s0  ;;  %s202_s14 = int_to_ptr.vmem [resolvable:$true] %s201_s14 }
 0x118   :  { %s7240_s2 = scalar_lea.hbm %s7594_s24, 32 }
 0x119   :  { %p7241_p6 = scmp.ne.s32.totalorder %s7594_s24, %s7240_s2  ;;  %p7244_p7 = scmp.lt.u32.totalorder %s7240_s2, %s7594_s24 }
 0x11b   :  { %p7246_p8 = pnand %p7244_p7, %p7241_p6 }
 0x11d   :  { %7249 = shalt.err (!%p7246_p8)
}
 0x11e   :  { %s7250_s17 = scalar_lea.vmem %s176_s0, 32  ;;  %p7255_p10 = scmp.lt.s32.totalorder %s176_s0, %s176_s0 }
 0x11f   :  { %p7251_p9 = scmp.ne.s32.totalorder %s176_s0, %s7250_s17  ;;  %p7256_p11 = scmp.lt.s32.totalorder %s7250_s17, %s7250_s17 }
 0x121   :  { %p7257_p12 = por %p7256_p11, %p7255_p10 }
 0x123   :  { %p7258_p13 = pnand %p7257_p12, %p7251_p9 }
 0x125   :  { %7261 = shalt.err (!%p7258_p13)
}
 0x126   :  { %s8423_s8 = sld [smem:[#allocation54_spill]] }
 0x127   :  { %181 = dma.hbm_to_vmem [thread:$0]  %s7594_s24, 32, %s176_s0, [#allocation12], %s7498_s28, %s7498_s28, %s7499_s1  }
 0x12c   :  { %s7262_s19 = scalar_lea.hbm %s8423_s8, 32 }
 0x12d   :  { %p7263_p0 = scmp.ne.s32.totalorder %s8423_s8, %s7262_s19  ;;  %p7266_p1 = scmp.lt.u32.totalorder %s7262_s19, %s8423_s8 }
 0x12f   :  { %p7268_p2 = pnand %p7266_p1, %p7263_p0 }
 0x131   :  { %7271 = shalt.err (!%p7268_p2)
}
 0x132   :  { %s7272_s7 = scalar_lea.vmem %s202_s14, 32  ;;  %p7277_p4 = scmp.lt.s32.totalorder %s202_s14, %s202_s14 }
 0x133   :  { %p7273_p3 = scmp.ne.s32.totalorder %s202_s14, %s7272_s7  ;;  %p7278_p5 = scmp.lt.s32.totalorder %s7272_s7, %s7272_s7 }
 0x135   :  { %p7279_p6 = por %p7278_p5, %p7277_p4 }
 0x137   :  { %p7280_p7 = pnand %p7279_p6, %p7273_p3 }
 0x139   :  { %7283 = shalt.err (!%p7280_p7)
}
 0x13a   :  { %s8424_s30 = sld [smem:[#allocation56_spill]]  ;;  %s7516_s24 = smov [#allocation19]  }
 0x13b   :  { %207 = dma.hbm_to_vmem [thread:$0]  %s8423_s8, 32, %s202_s14, [#allocation15], %s7498_s28, %s7498_s28, %s7499_s1  }
 0x13c   :  { %s227_s10 = sshll.u32 %s7516_s24, 4  ;;  %s7517_s11 = smov [#allocation22]   ;;  %s228_s10 = int_to_ptr.vmem [resolvable:$true] %s227_s10 }
 0x13d   :  { %s251_s9 = sshll.u32 %s7517_s11, 4  ;;  %s252_s9 = int_to_ptr.vmem [resolvable:$true] %s251_s9 }
 0x140   :  { %s7284_s15 = scalar_lea.hbm %s8424_s30, 1024 }
 0x141   :  { %p7285_p8 = scmp.ne.s32.totalorder %s8424_s30, %s7284_s15  ;;  %p7288_p9 = scmp.lt.u32.totalorder %s7284_s15, %s8424_s30 }
 0x143   :  { %p7290_p10 = pnand %p7288_p9, %p7285_p8 }
 0x145   :  { %7293 = shalt.err (!%p7290_p10)
}
 0x146   :  { %s7294_s20 = scalar_lea.vmem %s228_s10, 1024  ;;  %p7299_p12 = scmp.lt.s32.totalorder %s228_s10, %s228_s10 }
 0x147   :  { %p7295_p11 = scmp.ne.s32.totalorder %s228_s10, %s7294_s20  ;;  %p7300_p13 = scmp.lt.s32.totalorder %s7294_s20, %s7294_s20 }
 0x149   :  { %p7301_p0 = por %p7300_p13, %p7299_p12 }
 0x14b   :  { %p7302_p1 = pnand %p7301_p0, %p7295_p11 }
 0x14d   :  { %7305 = shalt.err (!%p7302_p1)
}
 0x14e   :  { %s8425_s27 = sld [smem:[#allocation57_spill]] }
 0x14f   :  { %233 = dma.hbm_to_vmem [thread:$0]  %s8424_s30, 1024, %s228_s10, [#allocation18], %s7510_s16, %s7510_s16, %s7511_s21  }
 0x154   :  { %s7306_s18 = scalar_lea.hbm %s8425_s27, 1024 }
 0x155   :  { %p7307_p2 = scmp.ne.s32.totalorder %s8425_s27, %s7306_s18  ;;  %p7310_p3 = scmp.lt.u32.totalorder %s7306_s18, %s8425_s27 }
 0x157   :  { %p7312_p4 = pnand %p7310_p3, %p7307_p2 }
 0x159   :  { %7315 = shalt.err (!%p7312_p4)
}
 0x15a   :  { %s7316_s6 = scalar_lea.vmem %s252_s9, 1024  ;;  %p7321_p6 = scmp.lt.s32.totalorder %s252_s9, %s252_s9 }
 0x15b   :  { %p7317_p5 = scmp.ne.s32.totalorder %s252_s9, %s7316_s6  ;;  %p7322_p7 = scmp.lt.s32.totalorder %s7316_s6, %s7316_s6 }
 0x15d   :  { %p7323_p8 = por %p7322_p7, %p7321_p6 }
 0x15f   :  { %p7324_p9 = pnand %p7323_p8, %p7317_p5 }
 0x161   :  { %7327 = shalt.err (!%p7324_p9)
}
 0x162   :  { %s8426_s29 = sld [smem:[#allocation58_spill]]  ;;  %s7518_s22 = smov [#allocation25]  }
 0x163   :  { %257 = dma.hbm_to_vmem [thread:$0]  %s8425_s27, 1024, %s252_s9, [#allocation21], %s7510_s16, %s7510_s16, %s7511_s21  }
 0x164   :  { %s275_s5 = sshll.u32 %s7518_s22, 4  ;;  %s7519_s23 = smov [#allocation28]   ;;  %s276_s5 = int_to_ptr.vmem [resolvable:$true] %s275_s5 }
 0x165   :  { %s299_s25 = sshll.u32 %s7519_s23, 4  ;;  %s300_s25 = int_to_ptr.vmem [resolvable:$true] %s299_s25 }
 0x168   :  { %s7328_s0 = scalar_lea.hbm %s8426_s29, 1024 }
 0x169   :  { %p7329_p10 = scmp.ne.s32.totalorder %s8426_s29, %s7328_s0  ;;  %p7332_p11 = scmp.lt.u32.totalorder %s7328_s0, %s8426_s29 }
 0x16b   :  { %p7334_p12 = pnand %p7332_p11, %p7329_p10 }
 0x16d   :  { %7337 = shalt.err (!%p7334_p12)
}
 0x16e   :  { %s7338_s26 = scalar_lea.vmem %s276_s5, 1024  ;;  %p7343_p0 = scmp.lt.s32.totalorder %s276_s5, %s276_s5 }
 0x16f   :  { %p7339_p13 = scmp.ne.s32.totalorder %s276_s5, %s7338_s26  ;;  %p7344_p1 = scmp.lt.s32.totalorder %s7338_s26, %s7338_s26 }
 0x171   :  { %p7345_p2 = por %p7344_p1, %p7343_p0 }
 0x173   :  { %p7346_p3 = pnand %p7345_p2, %p7339_p13 }
 0x175   :  { %7349 = shalt.err (!%p7346_p3)
}
 0x176   :  { %s8427_s14 = sld [smem:[#allocation59_spill]] }
 0x177   :  { %281 = dma.hbm_to_vmem [thread:$0]  %s8426_s29, 1024, %s276_s5, [#allocation24], %s7510_s16, %s7510_s16, %s7511_s21  }
 0x17c   :  { %s7350_s2 = scalar_lea.hbm %s8427_s14, 32 }
 0x17d   :  { %p7351_p4 = scmp.ne.s32.totalorder %s8427_s14, %s7350_s2  ;;  %p7354_p5 = scmp.lt.u32.totalorder %s7350_s2, %s8427_s14 }
 0x17f   :  { %p7356_p6 = pnand %p7354_p5, %p7351_p4 }
 0x181   :  { %7359 = shalt.err (!%p7356_p6)
}
 0x182   :  { %s7360_s17 = scalar_lea.vmem %s300_s25, 32  ;;  %p7365_p8 = scmp.lt.s32.totalorder %s300_s25, %s300_s25 }
 0x183   :  { %p7361_p7 = scmp.ne.s32.totalorder %s300_s25, %s7360_s17  ;;  %p7366_p9 = scmp.lt.s32.totalorder %s7360_s17, %s7360_s17 }
 0x185   :  { %p7367_p10 = por %p7366_p9, %p7365_p8 }
 0x187   :  { %p7368_p11 = pnand %p7367_p10, %p7361_p7 }
 0x189   :  { %7371 = shalt.err (!%p7368_p11)
}
 0x18a   :  { %s8428_s8 = sld [smem:[#allocation60_spill]]  ;;  %s7520_s19 = smov [#allocation31]  }
 0x18b   :  { %305 = dma.hbm_to_vmem [thread:$0]  %s8427_s14, 32, %s300_s25, [#allocation27], %s7498_s28, %s7498_s28, %s7499_s1  }
 0x18c   :  { %s323_s7 = sshll.u32 %s7520_s19, 4  ;;  %s7521_s30 = smov [#allocation34]   ;;  %s324_s7 = int_to_ptr.vmem [resolvable:$true] %s323_s7 }
 0x18d   :  { %s347_s24 = sshll.u32 %s7521_s30, 4  ;;  %s348_s24 = int_to_ptr.vmem [resolvable:$true] %s347_s24 }
 0x190   :  { %s7372_s10 = scalar_lea.hbm %s8428_s8, 32 }
 0x191   :  { %p7373_p12 = scmp.ne.s32.totalorder %s8428_s8, %s7372_s10  ;;  %p7376_p13 = scmp.lt.u32.totalorder %s7372_s10, %s8428_s8 }
 0x193   :  { %p7378_p0 = pnand %p7376_p13, %p7373_p12 }
 0x195   :  { %7381 = shalt.err (!%p7378_p0)
}
 0x196   :  { %s7382_s11 = scalar_lea.vmem %s324_s7, 32  ;;  %p7387_p2 = scmp.lt.s32.totalorder %s324_s7, %s324_s7 }
 0x197   :  { %p7383_p1 = scmp.ne.s32.totalorder %s324_s7, %s7382_s11  ;;  %p7388_p3 = scmp.lt.s32.totalorder %s7382_s11, %s7382_s11 }
 0x199   :  { %p7389_p4 = por %p7388_p3, %p7387_p2 }
 0x19b   :  { %p7390_p5 = pnand %p7389_p4, %p7383_p1 }
 0x19d   :  { %7393 = shalt.err (!%p7390_p5)
}
 0x19e   :  { %s8429_s9 = sld [smem:[#allocation61_spill]] }
 0x19f   :  { %329 = dma.hbm_to_vmem [thread:$0]  %s8428_s8, 32, %s324_s7, [#allocation30], %s7498_s28, %s7498_s28, %s7499_s1  }
 0x1a4   :  { %s7394_s15 = scalar_lea.hbm %s8429_s9, 32 }
 0x1a5   :  { %p7395_p6 = scmp.ne.s32.totalorder %s8429_s9, %s7394_s15  ;;  %p7398_p7 = scmp.lt.u32.totalorder %s7394_s15, %s8429_s9 }
 0x1a7   :  { %p7400_p8 = pnand %p7398_p7, %p7395_p6 }
 0x1a9   :  { %7403 = shalt.err (!%p7400_p8)
}
 0x1aa   :  { %s7404_s20 = scalar_lea.vmem %s348_s24, 32  ;;  %p7409_p10 = scmp.lt.s32.totalorder %s348_s24, %s348_s24 }
 0x1ab   :  { %p7405_p9 = scmp.ne.s32.totalorder %s348_s24, %s7404_s20  ;;  %p7410_p11 = scmp.lt.s32.totalorder %s7404_s20, %s7404_s20 }
 0x1ad   :  { %p7411_p12 = por %p7410_p11, %p7409_p10 }
 0x1af   :  { %p7412_p13 = pnand %p7411_p12, %p7405_p9 }
 0x1b1   :  { %7415 = shalt.err (!%p7412_p13)
}
 0x1b2   :  { %353 = dma.hbm_to_vmem [thread:$0]  %s8429_s9, 32, %s348_s24, [#allocation33], %s7498_s28, %s7498_s28, %s7499_s1  }
 0x1b3   :  { %7438 = dma.done.wait [#allocation3], 256  }
 0x1b4   :  { %7439 = vsyncadd [#allocation3], 4294967040 }
 0x1b5   :  { %7440 = dma.done.wait [#allocation6], 64  }
 0x1b6   :  { %7441 = vsyncadd [#allocation6], 4294967232 }
 0x1b7   :  { %7442 = dma.done.wait [#allocation9], 64  }
 0x1b8   :  { %7443 = vsyncadd [#allocation9], 4294967232 }
 0x1b9   :  { %7444 = dma.done.wait [#allocation12], 64  }
 0x1ba   :  { %7445 = vsyncadd [#allocation12], 4294967232 }
 0x1bb   :  { %7446 = dma.done.wait [#allocation15], 64  }
 0x1bc   :  { %7447 = vsyncadd [#allocation15], 4294967232 }
 0x1bd   :  { %7448 = dma.done.wait [#allocation18], 1056  }
 0x1be   :  { %7449 = vsyncadd [#allocation18], 4294966240 }
 0x1bf   :  { %7450 = dma.done.wait [#allocation21], 1056  }
 0x1c0   :  { %7451 = vsyncadd [#allocation21], 4294966240 }
 0x1c1   :  { %7452 = dma.done.wait [#allocation24], 1056  }
 0x1c2   :  { %7453 = vsyncadd [#allocation24], 4294966240 }
 0x1c3   :  { %7454 = dma.done.wait [#allocation27], 64  }
 0x1c4   :  { %7455 = vsyncadd [#allocation27], 4294967232 }
 0x1c5   :  { %7456 = dma.done.wait [#allocation30], 64  }
 0x1c6   :  { %7457 = vsyncadd [#allocation30], 4294967232 }
 0x1c7   :  { %7458 = dma.done.wait [#allocation33], 64  }
 0x1c8   :  { %7459 = vsyncadd [#allocation33], 4294967232  ;;  %s8430_s28 = sld [smem:[#allocation48_spill]]  ;;  %vm444_vm0 = vcmask 261120   ;;  %s8431_s1 = sld [smem:[#allocation49_spill]]  ;;  %v7867_v5 = vld [vmem:[#allocation2] sm:$0xff] }
 0x1c9   :  { %6205 = vmatprep.mubr.msk.f32.mxu0 %vm444_vm0, %v7867_v5  ;;  %v7871_v7 = vld [vmem:[#allocation2 + $0x8] sm:$0xff]  ;;  %v7522_v8 = vmov 0.0   ;;  %vm7523_vm1 = vmmov 0   ;;  %s7524_s27 = smov 112   ;;  %s7525_s18 = smov 96   ;;  %vm534_vm2 = vcmask 130048  }
 0x1ca   :  { %6208 = vmatprep.subr.mxu1 %v7522_v8  ;;  %6210 = vmatprep.mubr.msk.f32.mxu1 %vm7523_vm1, %v7522_v8  ;;  %s7526_s6 = smov 80   ;;  %vm610_vm3 = vcmask 64512   ;;  %s8432_s29 = sld [smem:[#allocation50_spill]]  ;;  %v7529_v37 = vmov 0.0|0.0   ;;  %vm1651_vm4 = vcmask 523264   ;;  %vm5774_vm5 = vcmask 121856  }
 0x1cb   :  { %s7527_s22 = smov 48   ;;  %s7528_s5 = smov 64  }
 0x1cc   :  { %s8433_s23 = sld [smem:[#allocation51_spill]]  ;;  %s8434_s25 = sld [smem:[#allocation52_spill]] }
 0x1cd   :  { %s8435_s0 = sld [smem:[#allocation53_spill]]  ;;  %s8436_s26 = sld [smem:[#allocation55_spill]] }
 0x1ce   :  { %v433_v0 = vld [vmem:[%s8430_s28] sm:$0xff]  ;;  %v434_v1 = vld [vmem:[%s8430_s28 + $0x8] sm:$0xff]  ;;  %v435_v2 = vld [vmem:[%s8430_s28 + $0x10] sm:$0xff]  ;;  %s8437_s14 = sld [smem:[#allocation63_spill]]  ;;  %s8438_s2 = sld [smem:[#allocation65_spill]] }
 0x1cf   :  { %v6625_v3 = vpack.c.bf16 %v434_v1, %v433_v0  ;;  %v436_v4 = vld [vmem:[%s8430_s28 + $0x18] sm:$0xff]  ;;  %v5839_v9 = vld [vmem:[%s8431_s1] ss:$0 sm:$0xff]  ;;  %s8439_s17 = sld [smem:[#allocation64_spill]] }
 0x1d0   :  { %v6629_v6 = vpack.c.bf16 %v436_v4, %v435_v2  ;;  %v528_v35 = vld [vmem:[%s8432_s29 + $0x10] sm:$0xff]  ;;  %v529_v36 = vld [vmem:[%s8432_s29 + $0x18] sm:$0xff]  ;;  %v526_v44 = vld [vmem:[%s8432_s29] sm:$0xff] }
 0x1d1   :  { %6626 = vmatprep.subr.bf16.mxu0 %v6625_v3  ;;  %v6634_v38 = vpack.c.bf16 %v529_v36, %v528_v35  ;;  %v527_v45 = vld [vmem:[%s8432_s29 + $0x8] sm:$0xff] }
 0x1d2   :  { %6628 = vmatpush3.bf16.msra.mxu0 %v6625_v3  ;;  %v7918_v48 = vpack.c.bf16 %v527_v45, %v526_v44  ;;  %v5860_v45 = vld [vmem:[#allocation8] ss:$0 sm:$0xff] }
 0x1d3   :  { %6630 = vmatprep.subr.bf16.mxu0 %v6629_v6 }
 0x1d6   :  { %6632 = vmatpush3.bf16.msra.mxu0 %v6629_v6 }
 0x1d7   :  { %6218 = vmatprep.subr.mxu0 %v7522_v8 }
 0x1d9   :  { %6206 = vmatmul.mubr.msk.f32.vlgmr.msra.gmra.mrb[0].mxu0 %vm444_vm0, %v7871_v7 }
 0x1da   :  { %6220 = vmatprep.mubr.msk.f32.mxu0 %vm7523_vm1, %v7522_v8 }
 0x2ac   :  { %v6207_v10 = vpop.f32.mrb[0].mxu0 }
 0x2ad   :  { %v7882_v11 = vadd.f32 %v6207_v10, %v5839_v9  ;;  %v517_v12 = vpop.f32.mrb[1].mxu0 }
 0x2ae   :  { %v518_v13 = vadd.f32 %v5839_v9, %v517_v12  ;;  %v7947_v9 = vld [vmem:[#allocation5] ss:$0 sm:$0xff] }
 0x2b0   :  { %698 = vrot.lane.b32.xlu1 %v518_v13, %s7524_s27  ;;  %532 = vrot.lane.b32.xlu0 %v518_v13, %s7525_s18 }
 0x2b4   :  { %700 = vrot.lane.b32.xlu0 %v518_v13, %s7526_s6 }
 0x322   :  { %v533_v14 = vpop.permute.xlu0 %532  ;;  %v699_v16 = vpop.permute.xlu1 %698 }
 0x323   :  { %6209 = vmatpush3.xpose.msk.msra.mxu1 %vm534_vm2, %v533_v14 }
 0x324   :  { %6213 = vmatprep.subr.mxu1 %v7522_v8 }
 0x326   :  { %6211 = vmatmul.mubr.msk.f32.vlgmr.msra.gmra.mrb[0].mxu1 %vm534_vm2, %v518_v13  ;;  %v701_v15 = vpop.permute.xlu0 %700 }
 0x327   :  { %6219 = vmatpush3.xpose.msk.msra.mxu0 %vm534_vm2, %v701_v15  ;;  %6215 = vmatprep.mubr.msk.f32.mxu1 %vm7523_vm1, %v7522_v8 }
 0x328   :  { %6633 = vmatprep.subr.bf16.mxu0 %v7529_v37 }
 0x32a   :  { %6221 = vmatmul.mubr.msk.f32.vlgmr.msra.gmra.mrb[2].mxu0 %vm534_vm2, %v699_v16 }
 0x32b   :  { %6232 = vmatprep.mubr.msk.f32.mxu0 %vm7523_vm1, %v7522_v8  ;;  %6635 = vmatpush3.bf16.msra.mxu0 %v6634_v38 }
 0x32c   :  { %6242 = vmatprep.subr.mxu0 %v7522_v8 }
 0x3f9   :  { %v605_v17 = vpop.f32.mrb[0].mxu1 }
 0x3fa   :  { %v609_v18 = vmul.f32 0.25, %v605_v17  ;;  %v6212_v19 = vpop.f32.mrb[1].mxu1 }
 0x3fc   :  { %v611_v20 = vsel %vm610_vm3, %v609_v18, -inf }
 0x3fd   :  { %612 = vmax.xlane.f32.xlu1 %v611_v20  ;;  %v772_v21 = vpop.f32.mrb[2].mxu0 }
 0x3fe   :  { %v776_v22 = vmul.f32 0.25, %v772_v21  ;;  %v6222_v23 = vpop.f32.mrb[3].mxu0 }
 0x400   :  { %v777_v24 = vsel %vm610_vm3, %v776_v22, -inf }
 0x401   :  { %778 = vmax.xlane.f32.xlu0 %v777_v24 }
 0x48a   :  { %v613_v25 = vpop.xlane.xlu1 %612 }
 0x48b   :  { %v614_v26 = vsub.f32 %v609_v18, %v613_v25 }
 0x48d   :  { %v615_v27 = vmul.f32 1.442695, %v614_v26 }
 0x48e   :  { %v779_v28 = vpop.xlane.xlu0 %778 }
 0x48f   :  { %6862 = vpow2.f32 %v615_v27  ;;  %v780_v29 = vsub.f32 %v776_v22, %v779_v28 }
 0x491   :  { %v781_v30 = vmul.f32 1.442695, %v780_v29 }
 0x493   :  { %6864 = vpow2.f32 %v781_v30 }
 0x499   :  { %v6863_v31 = vpop.eup %6862 }
 0x49a   :  { %v617_v32 = vsel %vm610_vm3, %v6863_v31, 0.0 }
 0x49b   :  { %618 = vadd.xlane.f32.xlu0 %v617_v32 }
 0x49d   :  { %v6865_v33 = vpop.eup %6864 }
 0x49e   :  { %v783_v34 = vsel %vm610_vm3, %v6865_v33, 0.0 }
 0x49f   :  { %784 = vadd.xlane.f32.xlu1 %v783_v34 }
 0x4b0   :  { %788 = vrot.lane.b32.xlu1 %v518_v13, %s7527_s22 }
 0x4b1   :  { %622 = vrot.lane.b32.xlu0 %v518_v13, %s7528_s5 }
 0x4b4   :  { %1011 = vrot.lane.b32.xlu1 %v7882_v11, %s7525_s18 }
 0x4b5   :  { %1177 = vrot.lane.b32.xlu0 %v7882_v11, %s7526_s6 }
 0x4b8   :  { %1175 = vrot.lane.b32.xlu1 %v7882_v11, %s7524_s27 }
 0x528   :  { %v619_v39 = vpop.xlane.xlu0 %618 }
 0x529   :  { %6866 = vrcp.f32 %v619_v39 }
 0x52c   :  { %v785_v40 = vpop.xlane.xlu1 %784  ;;  %v623_v41 = vpop.permute.xlu0 %622 }
 0x52d   :  { %6868 = vrcp.f32 %v785_v40  ;;  %6214 = vmatpush3.msra.mxu1 %v623_v41  ;;  %v5859_v41 = vld [vmem:[#allocation7] ss:$0 sm:$0xff] }
 0x52e   :  { %6223 = vmatprep.subr.mxu1 %v7522_v8 }
 0x530   :  { %v789_v46 = vpop.permute.xlu1 %788  ;;  %v1178_v55 = vpop.permute.xlu0 %1177 }
 0x533   :  { %v6867_v42 = vpop.eup %6866 }
 0x534   :  { %v621_v43 = vmul.f32 %v6867_v42, %v6863_v31  ;;  %v1012_v53 = vpop.permute.xlu1 %1011 }
 0x536   :  { %6216 = vmatmul.mubr.msk.f32.vlgmr.msra.gmra.mrb[2].mxu1 %vm610_vm3, %v621_v43 }
 0x537   :  { %v6869_v47 = vpop.eup %6868  ;;  %6224 = vmatpush3.msra.mxu1 %v789_v46  ;;  %6225 = vmatprep.mubr.msk.f32.mxu1 %vm7523_vm1, %v7522_v8 }
 0x538   :  { %v787_v49 = vmul.f32 %v6869_v47, %v6865_v33  ;;  %6636 = vmatprep.subr.bf16.mxu1 %v7529_v37  ;;  %v1176_v56 = vpop.permute.xlu1 %1175 }
 0x53a   :  { %6226 = vmatmul.mubr.msk.f32.vlgmr.msra.gmra.mrb[4].mxu1 %vm610_vm3, %v787_v49 }
 0x53b   :  { %6638 = vmatpush3.bf16.msra.mxu1 %v7918_v48  ;;  %6239 = vmatprep.mubr.msk.f32.mxu1 %vm7523_vm1, %v7522_v8 }
 0x53c   :  { %6247 = vmatprep.subr.mxu1 %v7522_v8 }
 0x609   :  { %v694_v50 = vpop.f32.mrb[2].mxu1 }
 0x60a   :  { %v6217_v51 = vpop.f32.mrb[3].mxu1  ;;  %6240 = vmatmul.mubr.msk.f32.vlgmr.msra.gmra.mrb[6].mxu1 %vm534_vm2, %v694_v50 }
 0x60b   :  { %6249 = vmatprep.mubr.msk.f32.mxu1 %vm7523_vm1, %v7522_v8 }
 0x60d   :  { %v860_v52 = vpop.f32.mrb[4].mxu1 }
 0x60e   :  { %v6227_v54 = vpop.f32.mrb[5].mxu1  ;;  %6233 = vmatmul.mubr.msk.f32.vlgmr.msra.gmra.mrb[4].mxu0 %vm534_vm2, %v860_v52 }
 0x60f   :  { %6243 = vmatpush3.xpose.msk.msra.mxu0 %vm534_vm2, %v1012_v53  ;;  %6244 = vmatprep.mubr.msk.f32.mxu0 %vm7523_vm1, %v7522_v8 }
 0x610   :  { %6252 = vmatprep.subr.mxu0 %v7522_v8 }
 0x612   :  { %6245 = vmatmul.mubr.msk.f32.vlgmr.msra.gmra.mrb[6].mxu0 %vm534_vm2, %v7882_v11 }
 0x613   :  { %6253 = vmatpush3.xpose.msk.msra.mxu0 %vm534_vm2, %v1178_v55  ;;  %6254 = vmatprep.mubr.msk.f32.mxu0 %vm7523_vm1, %v7522_v8 }
 0x614   :  { %6639 = vmatprep.subr.bf16.mxu0 %v7529_v37 }
 0x616   :  { %6255 = vmatmul.mubr.msk.f32.vlgmr.msra.gmra.mrb[8].mxu0 %vm534_vm2, %v1176_v56 }
 0x617   :  { %6641 = vmatpush3.bf16.msra.mxu0 %v6634_v38  ;;  %6266 = vmatprep.mubr.msk.f32.mxu0 %vm7523_vm1, %v7522_v8 }
 0x6dd   :  { %v1006_v57 = vpop.f32.mrb[6].mxu1 }
 0x6de   :  { %v6241_v58 = vpop.f32.mrb[7].mxu1 }
 0x6e1   :  { %v933_v59 = vpop.f32.mrb[4].mxu0 }
 0x6e2   :  { %v1007_v60 = vadd.f32 %v1006_v57, %v933_v59  ;;  %v6234_v61 = vpop.f32.mrb[5].mxu0 }
 0x6e4   :  { %v1493_v10 = vadd.f32 %v7947_v9, %v1007_v60 }
 0x6e5   :  { %v1083_v62 = vpop.f32.mrb[6].mxu0 }
 0x6e6   :  { %v1087_v63 = vmul.f32 0.25, %v1083_v62  ;;  %v6246_v0 = vpop.f32.mrb[7].mxu0  ;;  %v1495_v12 = vadd.f32 %v1493_v10, %v7867_v5  ;;  %v1542_v62 = vld [vmem:[%s8433_s23] sm:$0xff]  ;;  %v1550_v10 = vld [vmem:[%s8434_s25 + $0x18] sm:$0xff] }
 0x6e8   :  { %v1088_v1 = vsel %vm610_vm3, %v1087_v63, -inf  ;;  %v1499_v13 = vsel %vm444_vm0, %v1495_v12, 0.0 }
 0x6e9   :  { %1089 = vmax.xlane.f32.xlu0 %v1088_v1  ;;  %v1249_v2 = vpop.f32.mrb[8].mxu0  ;;  %v1545_v1 = vld [vmem:[%s8433_s23 + $0x18] sm:$0xff] }
 0x6ea   :  { %v1253_v3 = vmul.f32 0.25, %v1249_v2  ;;  %v6256_v4 = vpop.f32.mrb[9].mxu0 }
 0x6eb   :  { %v1548_v4 = vld [vmem:[%s8434_s25 + $0x8] sm:$0xff] }
 0x6ec   :  { %v1254_v6 = vsel %vm610_vm3, %v1253_v3, -inf }
 0x6ed   :  { %1255 = vmax.xlane.f32.xlu1 %v1254_v6  ;;  %v1549_v6 = vld [vmem:[%s8434_s25 + $0x10] sm:$0xff] }
 0x6fe   :  { %1099 = vrot.lane.b32.xlu1 %v7882_v11, %s7528_s5 }
 0x722   :  { %1500 = vadd.xlane.f32.xlu1 %v1499_v13  ;;  %v1551_v13 = vld [vmem:[%s8434_s25 + $0x20] sm:$0xff] }
 0x776   :  { %v1090_v14 = vpop.xlane.xlu0 %1089 }
 0x777   :  { %v1091_v15 = vsub.f32 %v1087_v63, %v1090_v14  ;;  %v1543_v63 = vld [vmem:[%s8433_s23 + $0x8] sm:$0xff] }
 0x778   :  { %v6645_v0 = vpack.c.bf16 %v1543_v63, %v1542_v62  ;;  %v1552_v14 = vld [vmem:[%s8434_s25 + $0x28] sm:$0xff] }
 0x779   :  { %v1092_v16 = vmul.f32 1.442695, %v1091_v15  ;;  %v6661_v15 = vpack.c.bf16 %v1552_v14, %v1551_v13 }
 0x77a   :  { %v1256_v17 = vpop.xlane.xlu1 %1255  ;;  %6646 = vmatprep.subr.bf16.mxu0 %v6645_v0 }
 0x77b   :  { %6870 = vpow2.f32 %v1092_v16  ;;  %v1257_v18 = vsub.f32 %v1253_v3, %v1256_v17  ;;  %v1547_v3 = vld [vmem:[%s8434_s25] sm:$0xff] }
 0x77d   :  { %v1258_v19 = vmul.f32 1.442695, %v1257_v18 }
 0x77e   :  { %v1100_v20 = vpop.permute.xlu1 %1099 }
 0x77f   :  { %6872 = vpow2.f32 %v1258_v19  ;;  %6248 = vmatpush3.msra.mxu1 %v1100_v20 }
 0x780   :  { %6257 = vmatprep.subr.mxu1 %v7522_v8 }
 0x785   :  { %v6871_v21 = vpop.eup %6870 }
 0x786   :  { %v1094_v22 = vsel %vm610_vm3, %v6871_v21, 0.0 }
 0x787   :  { %1095 = vadd.xlane.f32.xlu0 %v1094_v22 }
 0x789   :  { %v6873_v5 = vpop.eup %6872 }
 0x78a   :  { %v1260_v23 = vsel %vm610_vm3, %v6873_v5, 0.0 }
 0x78b   :  { %1261 = vadd.xlane.f32.xlu0 %v1260_v23  ;;  %v1554_v23 = vld [vmem:[%s8434_s25 + $0x38] sm:$0xff] }
 0x7a1   :  { %1265 = vrot.lane.b32.xlu0 %v7882_v11, %s7527_s22 }
 0x7af   :  { %v1501_v24 = vpop.xlane.xlu1 %1500 }
 0x7b0   :  { %v1506_v25 = vmul.f32 0.03125, %v1501_v24 }
 0x7b2   :  { %v1508_v26 = vsub.f32 %v1495_v12, %v1506_v25  ;;  %v6657_v12 = vpack.c.bf16 %v1550_v10, %v1549_v6  ;;  %v5861_v25 = vld [vmem:[#allocation10] ss:$0 sm:$0xff] }
 0x7b4   :  { %v1510_v27 = vmul.f32 %v1508_v26, %v1508_v26 }
 0x7b6   :  { %v1512_v28 = vsel %vm444_vm0, %v1510_v27, 0.0 }
 0x7b7   :  { %1513 = vadd.xlane.f32.xlu1 %v1512_v28 }
 0x814   :  { %v1096_v29 = vpop.xlane.xlu0 %1095 }
 0x815   :  { %6874 = vrcp.f32 %v1096_v29 }
 0x818   :  { %v1262_v30 = vpop.xlane.xlu0 %1261 }
 0x819   :  { %6876 = vrcp.f32 %v1262_v30 }
 0x81c   :  { %v1266_v33 = vpop.permute.xlu0 %1265 }
 0x81f   :  { %v6875_v31 = vpop.eup %6874 }
 0x820   :  { %v1098_v32 = vmul.f32 %v6875_v31, %v6871_v21 }
 0x822   :  { %6250 = vmatmul.mubr.msk.f32.vlgmr.msra.gmra.mrb[8].mxu1 %vm610_vm3, %v1098_v32  ;;  %v5864_v32 = vld [vmem:[#allocation11] ss:$0 sm:$0xff] }
 0x823   :  { %v6877_v34 = vpop.eup %6876  ;;  %6258 = vmatpush3.msra.mxu1 %v1266_v33  ;;  %6259 = vmatprep.mubr.msk.f32.mxu1 %vm7523_vm1, %v7522_v8 }
 0x824   :  { %v1264_v11 = vmul.f32 %v6877_v34, %v6873_v5  ;;  %6642 = vmatprep.subr.bf16.mxu1 %v7529_v37  ;;  %v1553_v5 = vld [vmem:[%s8434_s25 + $0x30] sm:$0xff] }
 0x825   :  { %v6665_v24 = vpack.c.bf16 %v1554_v23, %v1553_v5 }
 0x826   :  { %6260 = vmatmul.mubr.msk.f32.vlgmr.msra.gmra.mrb[10].mxu1 %vm610_vm3, %v1264_v11 }
 0x827   :  { %6644 = vmatpush3.bf16.msra.mxu1 %v7918_v48  ;;  %6273 = vmatprep.mubr.msk.f32.mxu1 %vm7523_vm1, %v7522_v8 }
 0x844   :  { %v1514_v35 = vpop.xlane.xlu1 %1513 }
 0x845   :  { %v1518_v36 = vmul.f32 0.03125, %v1514_v35 }
 0x847   :  { %v1520_v38 = vadd.f32 1e-05, %v1518_v36 }
 0x849   :  { %6878 = vrsqrt.f32 %v1520_v38 }
 0x853   :  { %v6879_v39 = vpop.eup %6878 }
 0x854   :  { %v1524_v40 = vmul.f32 %v6879_v39, %v1508_v26 }
 0x856   :  { %v1532_v43 = vmul.f32 %v5859_v41, %v1524_v40 }
 0x858   :  { %v7967_v47 = vadd.f32 %v5860_v45, %v1532_v43 }
 0x8f5   :  { %v1171_v42 = vpop.f32.mrb[8].mxu1 }
 0x8f6   :  { %v6251_v44 = vpop.f32.mrb[9].mxu1  ;;  %6274 = vmatmul.mubr.msk.f32.vlgmr.msra.gmra.mrb[12].mxu1 %vm534_vm2, %v1171_v42 }
 0x8f9   :  { %v1337_v46 = vpop.f32.mrb[10].mxu1 }
 0x8fa   :  { %v6261_v48 = vpop.f32.mrb[11].mxu1  ;;  %6267 = vmatmul.mubr.msk.f32.vlgmr.msra.gmra.mrb[10].mxu0 %vm534_vm2, %v1337_v46 }
 0x8fb   :  { %6284 = vmatprep.mubr.msk.f32.mxu0 %vm444_vm0, %v7967_v47  ;;  %6648 = vmatpush3.bf16.msra.mxu0 %v6645_v0  ;;  %v5867_v0 = vld [vmem:[#allocation13] ss:$0 sm:$0xff] }
 0x9c9   :  { %v1483_v49 = vpop.f32.mrb[12].mxu1 }
 0x9ca   :  { %v6275_v50 = vpop.f32.mrb[13].mxu1 }
 0x9cd   :  { %v1410_v51 = vpop.f32.mrb[10].mxu0 }
 0x9ce   :  { %v1484_v52 = vadd.f32 %v1483_v49, %v1410_v51  ;;  %v6268_v53 = vpop.f32.mrb[11].mxu0  ;;  %v5869_v51 = vld [vmem:[%s8430_s28 + $0x20] sm:$0xff] }
 0x9d0   :  { %v1494_v54 = vadd.f32 %v7947_v9, %v1484_v52  ;;  %v6653_v9 = vpack.c.bf16 %v1548_v4, %v1547_v3  ;;  %v5870_v52 = vld [vmem:[%s8430_s28 + $0x28] sm:$0xff]  ;;  %v5868_v3 = vld [vmem:[#allocation14] ss:$0 sm:$0xff] }
 0x9d1   :  { %v6669_v53 = vpack.c.bf16 %v5870_v52, %v5869_v51 }
 0x9d2   :  { %v1496_v55 = vadd.f32 %v1494_v54, %v7871_v7  ;;  %v1544_v7 = vld [vmem:[%s8433_s23 + $0x10] sm:$0xff]  ;;  %6654 = vmatprep.subr.bf16.mxu1 %v6653_v9 }
 0x9d3   :  { %v6649_v2 = vpack.c.bf16 %v1545_v1, %v1544_v7  ;;  %6656 = vmatpush3.bf16.msra.mxu1 %v6653_v9  ;;  %v5871_v54 = vld [vmem:[%s8430_s28 + $0x30] sm:$0xff] }
 0x9d4   :  { %v1502_v56 = vsel %vm444_vm0, %v1496_v55, 0.0  ;;  %6658 = vmatprep.subr.bf16.mxu1 %v6657_v12 }
 0x9d5   :  { %1503 = vadd.xlane.f32.xlu0 %v1502_v56  ;;  %6650 = vmatprep.subr.bf16.mxu0 %v6649_v2 }
 0x9d6   :  { %6652 = vmatpush3.bf16.msra.mxu0 %v6649_v2 }
 0x9d7   :  { %6660 = vmatpush3.bf16.msra.mxu1 %v6657_v12  ;;  %6670 = vmatprep.subr.bf16.mxu0 %v6669_v53  ;;  %v5874_v12 = vld [vmem:[%s8431_s1 + $0x1] ss:$0 sm:$0xff] }
 0x9d8   :  { %6662 = vmatprep.subr.bf16.mxu1 %v6661_v15 }
 0x9db   :  { %6664 = vmatpush3.bf16.msra.mxu1 %v6661_v15 }
 0x9dc   :  { %6666 = vmatprep.subr.bf16.mxu1 %v6665_v24 }
 0x9df   :  { %6668 = vmatpush3.bf16.msra.mxu1 %v6665_v24 }
 0x9e0   :  { %6322 = vmatprep.subr.mxu1 %v7522_v8 }
 0xa62   :  { %v1504_v57 = vpop.xlane.xlu0 %1503 }
 0xa63   :  { %v1507_v58 = vmul.f32 0.03125, %v1504_v57 }
 0xa65   :  { %v1509_v59 = vsub.f32 %v1496_v55, %v1507_v58  ;;  %v5872_v55 = vld [vmem:[%s8430_s28 + $0x38] sm:$0xff] }
 0xa66   :  { %v6673_v56 = vpack.c.bf16 %v5872_v55, %v5871_v54 }
 0xa67   :  { %v1511_v60 = vmul.f32 %v1509_v59, %v1509_v59 }
 0xa69   :  { %v1515_v61 = vsel %vm444_vm0, %v1511_v60, 0.0 }
 0xa6a   :  { %1516 = vadd.xlane.f32.xlu0 %v1515_v61 }
 0xaf7   :  { %v1517_v16 = vpop.xlane.xlu0 %1516 }
 0xaf8   :  { %v1519_v17 = vmul.f32 0.03125, %v1517_v16 }
 0xafa   :  { %v1521_v18 = vadd.f32 1e-05, %v1519_v17 }
 0xafc   :  { %6880 = vrsqrt.f32 %v1521_v18 }
 0xb06   :  { %v6881_v19 = vpop.eup %6880 }
 0xb07   :  { %v1525_v20 = vmul.f32 %v6881_v19, %v1509_v59 }
 0xb09   :  { %v1533_v21 = vmul.f32 %v5859_v41, %v1525_v20 }
 0xb0b   :  { %v1541_v22 = vadd.f32 %v5860_v45, %v1533_v21 }
 0xb0d   :  { %6285 = vmatmul.mubr.msk.f32.vlgmr.msra.gmra.mrb[12].mxu0 %vm444_vm0, %v1541_v22 }
 0xb0e   :  { %6672 = vmatpush3.bf16.msra.mxu0 %v6669_v53 }
 0xb0f   :  { %6674 = vmatprep.subr.bf16.mxu0 %v6673_v56 }
 0xb12   :  { %6676 = vmatpush3.bf16.msra.mxu0 %v6673_v56 }
 0xb13   :  { %6317 = vmatprep.subr.mxu0 %v7522_v8 }
 0xbe0   :  { %v6286_v26 = vpop.f32.mrb[12].mxu0 }
 0xbe1   :  { %v1640_v27 = vadd.f32 %v6286_v26, %v5861_v25  ;;  %v1634_v28 = vpop.f32.mrb[13].mxu0 }
 0xbe2   :  { %v1635_v29 = vadd.f32 %v5861_v25, %v1634_v28 }
 0xbe3   :  { %v1644_v31 = vmax.f32 %v1640_v27, 0.0 }
 0xbe4   :  { %v1643_v30 = vmax.f32 %v1635_v29, 0.0 }
 0xbe6   :  { %6303 = vmatprep.mubr.msk.f32.mxu1 %vm1651_vm4, %v1643_v30 }
 0xbe7   :  { %6304 = vmatmul.mubr.msk.f32.vlgmr.msra.gmra.mrb[14].mxu1 %vm1651_vm4, %v1644_v31 }
 0xbe8   :  { %6324 = vmatprep.mubr.msk.f32.mxu1 %vm7523_vm1, %v7522_v8 }
 0xcba   :  { %v6305_v33 = vpop.f32.mrb[14].mxu1 }
 0xcbb   :  { %v1730_v34 = vadd.f32 %v6305_v33, %v5864_v32  ;;  %v1724_v11 = vpop.f32.mrb[15].mxu1 }
 0xcbc   :  { %v1725_v35 = vadd.f32 %v5864_v32, %v1724_v11 }
 0xcbd   :  { %v1734_v36 = vadd.f32 %v1730_v34, %v1541_v22 }
 0xcbe   :  { %v1733_v38 = vadd.f32 %v1725_v35, %v7967_v47 }
 0xcbf   :  { %v1740_v39 = vsel %vm444_vm0, %v1734_v36, 0.0 }
 0xcc0   :  { %1741 = vadd.xlane.f32.xlu0 %v1740_v39  ;;  %v1737_v40 = vsel %vm444_vm0, %v1733_v38, 0.0 }
 0xcc1   :  { %1738 = vadd.xlane.f32.xlu1 %v1737_v40 }
 0xd4d   :  { %v1742_v41 = vpop.xlane.xlu0 %1741 }
 0xd4e   :  { %v1744_v42 = vmul.f32 0.03125, %v1742_v41  ;;  %v1739_v43 = vpop.xlane.xlu1 %1738 }
 0xd4f   :  { %v1743_v44 = vmul.f32 0.03125, %v1739_v43 }
 0xd50   :  { %v1746_v45 = vsub.f32 %v1734_v36, %v1744_v42  ;;  %v5879_v36 = vld [vmem:[%s8432_s29 + $0x30] sm:$0xff] }
 0xd51   :  { %v1745_v46 = vsub.f32 %v1733_v38, %v1743_v44  ;;  %v5880_v38 = vld [vmem:[%s8432_s29 + $0x38] sm:$0xff] }
 0xd52   :  { %v1748_v48 = vmul.f32 %v1746_v45, %v1746_v45  ;;  %v6678_v39 = vpack.c.bf16 %v5880_v38, %v5879_v36 }
 0xd53   :  { %v1747_v49 = vmul.f32 %v1745_v46, %v1745_v46 }
 0xd54   :  { %v1752_v47 = vsel %vm444_vm0, %v1748_v48, 0.0 }
 0xd55   :  { %1753 = vadd.xlane.f32.xlu0 %v1752_v47  ;;  %v1749_v50 = vsel %vm444_vm0, %v1747_v49, 0.0 }
 0xd56   :  { %1750 = vadd.xlane.f32.xlu1 %v1749_v50 }
 0xde2   :  { %v1754_v57 = vpop.xlane.xlu0 %1753 }
 0xde3   :  { %v1756_v58 = vmul.f32 0.03125, %v1754_v57  ;;  %v1751_v59 = vpop.xlane.xlu1 %1750 }
 0xde4   :  { %v1755_v60 = vmul.f32 0.03125, %v1751_v59 }
 0xde5   :  { %v1758_v61 = vadd.f32 1e-05, %v1756_v58 }
 0xde6   :  { %v1757_v62 = vadd.f32 1e-05, %v1755_v60 }
 0xde7   :  { %6882 = vrsqrt.f32 %v1758_v61 }
 0xde8   :  { %6884 = vrsqrt.f32 %v1757_v62 }
 0xdf1   :  { %v6883_v63 = vpop.eup %6882 }
 0xdf2   :  { %v6885_v7 = vpop.eup %6884  ;;  %v1762_v1 = vmul.f32 %v6883_v63, %v1746_v45  ;;  %v5877_v45 = vld [vmem:[%s8432_s29 + $0x20] sm:$0xff] }
 0xdf3   :  { %v1761_v2 = vmul.f32 %v6885_v7, %v1745_v46  ;;  %v5878_v46 = vld [vmem:[%s8432_s29 + $0x28] sm:$0xff] }
 0xdf4   :  { %v1770_v4 = vmul.f32 %v5867_v0, %v1762_v1  ;;  %v8051_v47 = vpack.c.bf16 %v5878_v46, %v5877_v45  ;;  %v5899_v46 = vld [vmem:[#allocation8 + $0x1] ss:$0 sm:$0xff] }
 0xdf5   :  { %v1769_v6 = vmul.f32 %v5867_v0, %v1761_v2 }
 0xdf6   :  { %v8006_v10 = vadd.f32 %v5868_v3, %v1770_v4 }
 0xdf7   :  { %v8004_v9 = vadd.f32 %v5868_v3, %v1769_v6 }
 0xdf9   :  { %6314 = vmatprep.mubr.msk.f32.mxu0 %vm444_vm0, %v8004_v9 }
 0xdfa   :  { %6315 = vmatmul.mubr.msk.f32.vlgmr.msra.gmra.mrb[14].mxu0 %vm444_vm0, %v8006_v10 }
 0xdfb   :  { %6319 = vmatprep.mubr.msk.f32.mxu0 %vm7523_vm1, %v7522_v8 }
 0xecd   :  { %v6316_v13 = vpop.f32.mrb[14].mxu0 }
 0xece   :  { %v8015_v14 = vadd.f32 %v6316_v13, %v5874_v12  ;;  %v1864_v15 = vpop.f32.mrb[15].mxu0 }
 0xecf   :  { %v1865_v16 = vadd.f32 %v5874_v12, %v1864_v15  ;;  %v8080_v12 = vld [vmem:[#allocation5 + $0x1] ss:$0 sm:$0xff] }
 0xed1   :  { %2047 = vrot.lane.b32.xlu0 %v1865_v16, %s7526_s6  ;;  %1881 = vrot.lane.b32.xlu1 %v1865_v16, %s7525_s18 }
 0xed5   :  { %2045 = vrot.lane.b32.xlu1 %v1865_v16, %s7524_s27 }
 0xf43   :  { %v1882_v17 = vpop.permute.xlu1 %1881  ;;  %v2048_v18 = vpop.permute.xlu0 %2047 }
 0xf44   :  { %6318 = vmatpush3.xpose.msk.msra.mxu0 %vm534_vm2, %v1882_v17 }
 0xf45   :  { %6327 = vmatprep.subr.mxu0 %v7522_v8 }
 0xf47   :  { %6320 = vmatmul.mubr.msk.f32.vlgmr.msra.gmra.mrb[16].mxu0 %vm534_vm2, %v1865_v16  ;;  %v2046_v19 = vpop.permute.xlu1 %2045 }
 0xf48   :  { %6328 = vmatpush3.xpose.msk.msra.mxu0 %vm534_vm2, %v2048_v18  ;;  %6329 = vmatprep.mubr.msk.f32.mxu0 %vm7523_vm1, %v7522_v8 }
 0xf49   :  { %6677 = vmatprep.subr.bf16.mxu0 %v7529_v37 }
 0xf4b   :  { %6330 = vmatmul.mubr.msk.f32.vlgmr.msra.gmra.mrb[18].mxu0 %vm534_vm2, %v2046_v19 }
 0xf4c   :  { %6341 = vmatprep.mubr.msk.f32.mxu0 %vm7523_vm1, %v7522_v8  ;;  %6679 = vmatpush3.bf16.msra.mxu0 %v6678_v39 }
 0xf4d   :  { %6351 = vmatprep.subr.mxu0 %v7522_v8 }
0x101a   :  { %v1953_v20 = vpop.f32.mrb[16].mxu0 }
0x101b   :  { %v1957_v21 = vmul.f32 0.25, %v1953_v20  ;;  %v6321_v22 = vpop.f32.mrb[17].mxu0 }
0x101d   :  { %v1958_v5 = vsel %vm610_vm3, %v1957_v21, -inf }
0x101e   :  { %1959 = vmax.xlane.f32.xlu1 %v1958_v5  ;;  %v2119_v23 = vpop.f32.mrb[18].mxu0 }
0x101f   :  { %v2123_v24 = vmul.f32 0.25, %v2119_v23  ;;  %v6331_v25 = vpop.f32.mrb[19].mxu0 }
0x1021   :  { %v2124_v26 = vsel %vm610_vm3, %v2123_v24, -inf }
0x1022   :  { %2125 = vmax.xlane.f32.xlu0 %v2124_v26 }
0x10ab   :  { %v1960_v27 = vpop.xlane.xlu1 %1959 }
0x10ac   :  { %v1961_v28 = vsub.f32 %v1957_v21, %v1960_v27 }
0x10ae   :  { %v1962_v29 = vmul.f32 1.442695, %v1961_v28 }
0x10af   :  { %v2126_v30 = vpop.xlane.xlu0 %2125 }
0x10b0   :  { %6886 = vpow2.f32 %v1962_v29  ;;  %v2127_v31 = vsub.f32 %v2123_v24, %v2126_v30 }
0x10b2   :  { %v2128_v32 = vmul.f32 1.442695, %v2127_v31 }
0x10b4   :  { %6888 = vpow2.f32 %v2128_v32 }
0x10ba   :  { %v6887_v33 = vpop.eup %6886 }
0x10bb   :  { %v1964_v34 = vsel %vm610_vm3, %v6887_v33, 0.0 }
0x10bc   :  { %1965 = vadd.xlane.f32.xlu0 %v1964_v34 }
0x10be   :  { %v6889_v11 = vpop.eup %6888 }
0x10bf   :  { %v2130_v35 = vsel %vm610_vm3, %v6889_v11, 0.0 }
0x10c0   :  { %2131 = vadd.xlane.f32.xlu1 %v2130_v35 }
0x10d1   :  { %2135 = vrot.lane.b32.xlu1 %v1865_v16, %s7527_s22 }
0x10d2   :  { %1969 = vrot.lane.b32.xlu0 %v1865_v16, %s7528_s5 }
0x10d5   :  { %2358 = vrot.lane.b32.xlu1 %v8015_v14, %s7525_s18 }
0x10d6   :  { %2524 = vrot.lane.b32.xlu0 %v8015_v14, %s7526_s6 }
0x10d9   :  { %2522 = vrot.lane.b32.xlu1 %v8015_v14, %s7524_s27 }
0x1149   :  { %v1966_v40 = vpop.xlane.xlu0 %1965 }
0x114a   :  { %6890 = vrcp.f32 %v1966_v40 }
0x114d   :  { %v1970_v41 = vpop.permute.xlu0 %1969  ;;  %v2132_v42 = vpop.xlane.xlu1 %2131 }
0x114e   :  { %6892 = vrcp.f32 %v2132_v42  ;;  %6323 = vmatpush3.msra.mxu1 %v1970_v41  ;;  %v5898_v42 = vld [vmem:[#allocation7 + $0x1] ss:$0 sm:$0xff] }
0x114f   :  { %6332 = vmatprep.subr.mxu1 %v7522_v8 }
0x1151   :  { %v2136_v48 = vpop.permute.xlu1 %2135  ;;  %v2525_v56 = vpop.permute.xlu0 %2524 }
0x1154   :  { %v6891_v43 = vpop.eup %6890 }
0x1155   :  { %v1968_v44 = vmul.f32 %v6891_v43, %v6887_v33  ;;  %v2359_v54 = vpop.permute.xlu1 %2358 }
0x1157   :  { %6325 = vmatmul.mubr.msk.f32.vlgmr.msra.gmra.mrb[16].mxu1 %vm610_vm3, %v1968_v44 }
0x1158   :  { %v6893_v49 = vpop.eup %6892  ;;  %6333 = vmatpush3.msra.mxu1 %v2136_v48  ;;  %6334 = vmatprep.mubr.msk.f32.mxu1 %vm7523_vm1, %v7522_v8 }
0x1159   :  { %v2134_v50 = vmul.f32 %v6893_v49, %v6889_v11  ;;  %6680 = vmatprep.subr.bf16.mxu1 %v7529_v37  ;;  %v2523_v57 = vpop.permute.xlu1 %2522 }
0x115b   :  { %6335 = vmatmul.mubr.msk.f32.vlgmr.msra.gmra.mrb[18].mxu1 %vm610_vm3, %v2134_v50 }
0x115c   :  { %6682 = vmatpush3.bf16.msra.mxu1 %v8051_v47  ;;  %6348 = vmatprep.mubr.msk.f32.mxu1 %vm7523_vm1, %v7522_v8 }
0x115d   :  { %6356 = vmatprep.subr.mxu1 %v7522_v8 }
0x122a   :  { %v2041_v51 = vpop.f32.mrb[16].mxu1 }
0x122b   :  { %v6326_v52 = vpop.f32.mrb[17].mxu1  ;;  %6349 = vmatmul.mubr.msk.f32.vlgmr.msra.gmra.mrb[20].mxu1 %vm534_vm2, %v2041_v51 }
0x122c   :  { %6358 = vmatprep.mubr.msk.f32.mxu1 %vm7523_vm1, %v7522_v8 }
0x122e   :  { %v2207_v53 = vpop.f32.mrb[18].mxu1 }
0x122f   :  { %v6336_v55 = vpop.f32.mrb[19].mxu1  ;;  %6342 = vmatmul.mubr.msk.f32.vlgmr.msra.gmra.mrb[20].mxu0 %vm534_vm2, %v2207_v53 }
0x1230   :  { %6352 = vmatpush3.xpose.msk.msra.mxu0 %vm534_vm2, %v2359_v54  ;;  %6353 = vmatprep.mubr.msk.f32.mxu0 %vm7523_vm1, %v7522_v8 }
0x1231   :  { %6361 = vmatprep.subr.mxu0 %v7522_v8 }
0x1233   :  { %6354 = vmatmul.mubr.msk.f32.vlgmr.msra.gmra.mrb[22].mxu0 %vm534_vm2, %v8015_v14 }
0x1234   :  { %6362 = vmatpush3.xpose.msk.msra.mxu0 %vm534_vm2, %v2525_v56  ;;  %6363 = vmatprep.mubr.msk.f32.mxu0 %vm7523_vm1, %v7522_v8 }
0x1235   :  { %6683 = vmatprep.subr.bf16.mxu0 %v7529_v37 }
0x1237   :  { %6364 = vmatmul.mubr.msk.f32.vlgmr.msra.gmra.mrb[24].mxu0 %vm534_vm2, %v2523_v57 }
0x1238   :  { %6685 = vmatpush3.bf16.msra.mxu0 %v6678_v39  ;;  %6375 = vmatprep.mubr.msk.f32.mxu0 %vm7523_vm1, %v7522_v8 }
0x12fe   :  { %v2353_v58 = vpop.f32.mrb[20].mxu1 }
0x12ff   :  { %v6350_v59 = vpop.f32.mrb[21].mxu1 }
0x1302   :  { %v2280_v60 = vpop.f32.mrb[20].mxu0 }
0x1303   :  { %v2354_v61 = vadd.f32 %v2353_v58, %v2280_v60  ;;  %v6343_v62 = vpop.f32.mrb[21].mxu0 }
0x1305   :  { %v2840_v13 = vadd.f32 %v8080_v12, %v2354_v61 }
0x1306   :  { %v2430_v63 = vpop.f32.mrb[22].mxu0 }
0x1307   :  { %v2434_v0 = vmul.f32 0.25, %v2430_v63  ;;  %v6355_v7 = vpop.f32.mrb[23].mxu0  ;;  %v2842_v15 = vadd.f32 %v2840_v13, %v8004_v9  ;;  %v5900_v63 = vld [vmem:[%s8433_s23 + $0x20] sm:$0xff]  ;;  %v5907_v13 = vld [vmem:[%s8434_s25 + $0x58] sm:$0xff] }
0x1309   :  { %v2435_v1 = vsel %vm610_vm3, %v2434_v0, -inf  ;;  %v2848_v16 = vsel %vm444_vm0, %v2842_v15, 0.0 }
0x130a   :  { %2436 = vmax.xlane.f32.xlu0 %v2435_v1  ;;  %v2596_v2 = vpop.f32.mrb[24].mxu0  ;;  %v5903_v1 = vld [vmem:[%s8433_s23 + $0x38] sm:$0xff] }
0x130b   :  { %v2600_v3 = vmul.f32 0.25, %v2596_v2  ;;  %v6365_v4 = vpop.f32.mrb[25].mxu0 }
0x130c   :  { %v5905_v4 = vld [vmem:[%s8434_s25 + $0x48] sm:$0xff] }
0x130d   :  { %v2601_v6 = vsel %vm610_vm3, %v2600_v3, -inf }
0x130e   :  { %2602 = vmax.xlane.f32.xlu1 %v2601_v6  ;;  %v5906_v6 = vld [vmem:[%s8434_s25 + $0x50] sm:$0xff] }
0x131f   :  { %2446 = vrot.lane.b32.xlu1 %v8015_v14, %s7528_s5 }
0x1343   :  { %2849 = vadd.xlane.f32.xlu1 %v2848_v16  ;;  %v5908_v16 = vld [vmem:[%s8434_s25 + $0x60] sm:$0xff] }
0x1397   :  { %v2437_v17 = vpop.xlane.xlu0 %2436 }
0x1398   :  { %v2438_v18 = vsub.f32 %v2434_v0, %v2437_v17  ;;  %v5901_v0 = vld [vmem:[%s8433_s23 + $0x28] sm:$0xff] }
0x1399   :  { %v6689_v7 = vpack.c.bf16 %v5901_v0, %v5900_v63  ;;  %v5909_v17 = vld [vmem:[%s8434_s25 + $0x68] sm:$0xff] }
0x139a   :  { %v2439_v19 = vmul.f32 1.442695, %v2438_v18  ;;  %v6705_v18 = vpack.c.bf16 %v5909_v17, %v5908_v16 }
0x139b   :  { %v2603_v20 = vpop.xlane.xlu1 %2602  ;;  %6690 = vmatprep.subr.bf16.mxu0 %v6689_v7 }
0x139c   :  { %6894 = vpow2.f32 %v2439_v19  ;;  %v2604_v21 = vsub.f32 %v2600_v3, %v2603_v20  ;;  %v5904_v3 = vld [vmem:[%s8434_s25 + $0x40] sm:$0xff] }
0x139e   :  { %v2605_v22 = vmul.f32 1.442695, %v2604_v21 }
0x139f   :  { %v2447_v5 = vpop.permute.xlu1 %2446 }
0x13a0   :  { %6896 = vpow2.f32 %v2605_v22  ;;  %6357 = vmatpush3.msra.mxu1 %v2447_v5 }
0x13a1   :  { %6366 = vmatprep.subr.mxu1 %v7522_v8 }
0x13a6   :  { %v6895_v23 = vpop.eup %6894 }
0x13a7   :  { %v2441_v24 = vsel %vm610_vm3, %v6895_v23, 0.0 }
0x13a8   :  { %2442 = vadd.xlane.f32.xlu0 %v2441_v24 }
0x13aa   :  { %v6897_v9 = vpop.eup %6896 }
0x13ab   :  { %v2607_v25 = vsel %vm610_vm3, %v6897_v9, 0.0 }
0x13ac   :  { %2608 = vadd.xlane.f32.xlu0 %v2607_v25  ;;  %v5911_v25 = vld [vmem:[%s8434_s25 + $0x78] sm:$0xff] }
0x13c2   :  { %2612 = vrot.lane.b32.xlu0 %v8015_v14, %s7527_s22 }
0x13d0   :  { %v2850_v26 = vpop.xlane.xlu1 %2849 }
0x13d1   :  { %v2854_v27 = vmul.f32 0.03125, %v2850_v26 }
0x13d3   :  { %v2856_v28 = vsub.f32 %v2842_v15, %v2854_v27  ;;  %v6701_v15 = vpack.c.bf16 %v5907_v13, %v5906_v6  ;;  %v5912_v27 = vld [vmem:[#allocation10 + $0x1] ss:$0 sm:$0xff] }
0x13d5   :  { %v2858_v29 = vmul.f32 %v2856_v28, %v2856_v28 }
0x13d7   :  { %v2860_v30 = vsel %vm444_vm0, %v2858_v29, 0.0 }
0x13d8   :  { %2861 = vadd.xlane.f32.xlu1 %v2860_v30 }
0x1435   :  { %v2443_v31 = vpop.xlane.xlu0 %2442 }
0x1436   :  { %6898 = vrcp.f32 %v2443_v31 }
0x1439   :  { %v2609_v32 = vpop.xlane.xlu0 %2608 }
0x143a   :  { %6900 = vrcp.f32 %v2609_v32 }
0x143d   :  { %v2613_v11 = vpop.permute.xlu0 %2612 }
0x1440   :  { %v6899_v33 = vpop.eup %6898 }
0x1441   :  { %v2445_v34 = vmul.f32 %v6899_v33, %v6895_v23 }
0x1443   :  { %6359 = vmatmul.mubr.msk.f32.vlgmr.msra.gmra.mrb[22].mxu1 %vm610_vm3, %v2445_v34  ;;  %v5915_v34 = vld [vmem:[#allocation11 + $0x1] ss:$0 sm:$0xff] }
0x1444   :  { %v6901_v35 = vpop.eup %6900  ;;  %6367 = vmatpush3.msra.mxu1 %v2613_v11  ;;  %6368 = vmatprep.mubr.msk.f32.mxu1 %vm7523_vm1, %v7522_v8 }
0x1445   :  { %v2611_v14 = vmul.f32 %v6901_v35, %v6897_v9  ;;  %6686 = vmatprep.subr.bf16.mxu1 %v7529_v37  ;;  %v5910_v9 = vld [vmem:[%s8434_s25 + $0x70] sm:$0xff] }
0x1446   :  { %v6709_v26 = vpack.c.bf16 %v5911_v25, %v5910_v9 }
0x1447   :  { %6369 = vmatmul.mubr.msk.f32.vlgmr.msra.gmra.mrb[24].mxu1 %vm610_vm3, %v2611_v14 }
0x1448   :  { %6688 = vmatpush3.bf16.msra.mxu1 %v8051_v47  ;;  %6382 = vmatprep.mubr.msk.f32.mxu1 %vm7523_vm1, %v7522_v8 }
0x1465   :  { %v2862_v36 = vpop.xlane.xlu1 %2861 }
0x1466   :  { %v2866_v38 = vmul.f32 0.03125, %v2862_v36 }
0x1468   :  { %v2868_v39 = vadd.f32 1e-05, %v2866_v38 }
0x146a   :  { %6902 = vrsqrt.f32 %v2868_v39 }
0x1474   :  { %v6903_v40 = vpop.eup %6902 }
0x1475   :  { %v2872_v41 = vmul.f32 %v6903_v40, %v2856_v28 }
0x1477   :  { %v2880_v44 = vmul.f32 %v5898_v42, %v2872_v41 }
0x1479   :  { %v8100_v49 = vadd.f32 %v5899_v46, %v2880_v44 }
0x1516   :  { %v2518_v43 = vpop.f32.mrb[22].mxu1 }
0x1517   :  { %v6360_v45 = vpop.f32.mrb[23].mxu1  ;;  %6383 = vmatmul.mubr.msk.f32.vlgmr.msra.gmra.mrb[26].mxu1 %vm534_vm2, %v2518_v43 }
0x151a   :  { %v2684_v48 = vpop.f32.mrb[24].mxu1 }
0x151b   :  { %v6370_v47 = vpop.f32.mrb[25].mxu1  ;;  %6376 = vmatmul.mubr.msk.f32.vlgmr.msra.gmra.mrb[26].mxu0 %vm534_vm2, %v2684_v48 }
0x151c   :  { %6393 = vmatprep.mubr.msk.f32.mxu0 %vm444_vm0, %v8100_v49  ;;  %6692 = vmatpush3.bf16.msra.mxu0 %v6689_v7  ;;  %v5918_v7 = vld [vmem:[#allocation13 + $0x1] ss:$0 sm:$0xff] }
0x15ea   :  { %v2830_v50 = vpop.f32.mrb[26].mxu1 }
0x15eb   :  { %v6384_v51 = vpop.f32.mrb[27].mxu1 }
0x15ee   :  { %v2757_v52 = vpop.f32.mrb[26].mxu0 }
0x15ef   :  { %v2831_v53 = vadd.f32 %v2830_v50, %v2757_v52  ;;  %v6377_v54 = vpop.f32.mrb[27].mxu0  ;;  %v5920_v52 = vld [vmem:[%s8435_s0 + $0x20] sm:$0xff] }
0x15f1   :  { %v2841_v55 = vadd.f32 %v8080_v12, %v2831_v53  ;;  %v6697_v12 = vpack.c.bf16 %v5905_v4, %v5904_v3  ;;  %v5921_v53 = vld [vmem:[%s8435_s0 + $0x28] sm:$0xff]  ;;  %v5919_v3 = vld [vmem:[#allocation14 + $0x1] ss:$0 sm:$0xff] }
0x15f2   :  { %v6713_v54 = vpack.c.bf16 %v5921_v53, %v5920_v52 }
0x15f3   :  { %v2843_v56 = vadd.f32 %v2841_v55, %v8006_v10  ;;  %v5902_v10 = vld [vmem:[%s8433_s23 + $0x30] sm:$0xff]  ;;  %6698 = vmatprep.subr.bf16.mxu1 %v6697_v12 }
0x15f4   :  { %v6693_v2 = vpack.c.bf16 %v5903_v1, %v5902_v10  ;;  %6700 = vmatpush3.bf16.msra.mxu1 %v6697_v12  ;;  %v5922_v55 = vld [vmem:[%s8435_s0 + $0x30] sm:$0xff] }
0x15f5   :  { %v2851_v57 = vsel %vm444_vm0, %v2843_v56, 0.0  ;;  %6702 = vmatprep.subr.bf16.mxu1 %v6701_v15 }
0x15f6   :  { %2852 = vadd.xlane.f32.xlu0 %v2851_v57  ;;  %6694 = vmatprep.subr.bf16.mxu0 %v6693_v2 }
0x15f7   :  { %6696 = vmatpush3.bf16.msra.mxu0 %v6693_v2 }
0x15f8   :  { %6704 = vmatpush3.bf16.msra.mxu1 %v6701_v15  ;;  %6714 = vmatprep.subr.bf16.mxu0 %v6713_v54  ;;  %v5924_v15 = vld [vmem:[#allocation16 + $0x1] ss:$0 sm:$0xff] }
0x15f9   :  { %6706 = vmatprep.subr.bf16.mxu1 %v6705_v18 }
0x15fc   :  { %6708 = vmatpush3.bf16.msra.mxu1 %v6705_v18 }
0x15fd   :  { %6710 = vmatprep.subr.bf16.mxu1 %v6709_v26 }
0x1600   :  { %6712 = vmatpush3.bf16.msra.mxu1 %v6709_v26 }
0x1601   :  { %6431 = vmatprep.subr.mxu1 %v7522_v8 }
0x1683   :  { %v2853_v58 = vpop.xlane.xlu0 %2852 }
0x1684   :  { %v2855_v59 = vmul.f32 0.03125, %v2853_v58 }
0x1686   :  { %v2857_v60 = vsub.f32 %v2843_v56, %v2855_v59  ;;  %v5923_v56 = vld [vmem:[%s8435_s0 + $0x38] sm:$0xff] }
0x1687   :  { %v6717_v57 = vpack.c.bf16 %v5923_v56, %v5922_v55 }
0x1688   :  { %v2859_v61 = vmul.f32 %v2857_v60, %v2857_v60 }
0x168a   :  { %v2863_v62 = vsel %vm444_vm0, %v2859_v61, 0.0 }
0x168b   :  { %2864 = vadd.xlane.f32.xlu0 %v2863_v62 }
0x1718   :  { %v2865_v19 = vpop.xlane.xlu0 %2864 }
0x1719   :  { %v2867_v20 = vmul.f32 0.03125, %v2865_v19 }
0x171b   :  { %v2869_v21 = vadd.f32 1e-05, %v2867_v20 }
0x171d   :  { %6904 = vrsqrt.f32 %v2869_v21 }
0x1727   :  { %v6905_v22 = vpop.eup %6904 }
0x1728   :  { %v2873_v5 = vmul.f32 %v6905_v22, %v2857_v60 }
0x172a   :  { %v2881_v23 = vmul.f32 %v5898_v42, %v2873_v5 }
0x172c   :  { %v2889_v24 = vadd.f32 %v5899_v46, %v2881_v23 }
0x172e   :  { %6394 = vmatmul.mubr.msk.f32.vlgmr.msra.gmra.mrb[28].mxu0 %vm444_vm0, %v2889_v24 }
0x172f   :  { %6716 = vmatpush3.bf16.msra.mxu0 %v6713_v54 }
0x1730   :  { %6718 = vmatprep.subr.bf16.mxu0 %v6717_v57 }
0x1733   :  { %6720 = vmatpush3.bf16.msra.mxu0 %v6717_v57 }
0x1734   :  { %6426 = vmatprep.subr.mxu0 %v7522_v8 }
0x1801   :  { %v6395_v28 = vpop.f32.mrb[28].mxu0 }
0x1802   :  { %v2992_v29 = vadd.f32 %v6395_v28, %v5912_v27  ;;  %v2986_v30 = vpop.f32.mrb[29].mxu0 }
0x1803   :  { %v2987_v31 = vadd.f32 %v5912_v27, %v2986_v30 }
0x1804   :  { %v2996_v33 = vmax.f32 %v2992_v29, 0.0 }
0x1805   :  { %v2995_v32 = vmax.f32 %v2987_v31, 0.0 }
0x1807   :  { %6412 = vmatprep.mubr.msk.f32.mxu1 %vm1651_vm4, %v2995_v32 }
0x1808   :  { %6413 = vmatmul.mubr.msk.f32.vlgmr.msra.gmra.mrb[28].mxu1 %vm1651_vm4, %v2996_v33 }
0x1809   :  { %6433 = vmatprep.mubr.msk.f32.mxu1 %vm7523_vm1, %v7522_v8 }
0x18db   :  { %v6414_v11 = vpop.f32.mrb[28].mxu1 }
0x18dc   :  { %v3081_v35 = vadd.f32 %v6414_v11, %v5915_v34  ;;  %v3075_v14 = vpop.f32.mrb[29].mxu1 }
0x18dd   :  { %v3076_v36 = vadd.f32 %v5915_v34, %v3075_v14 }
0x18de   :  { %v3085_v38 = vadd.f32 %v3081_v35, %v2889_v24 }
0x18df   :  { %v3084_v39 = vadd.f32 %v3076_v36, %v8100_v49 }
0x18e0   :  { %v3093_v40 = vsel %vm444_vm0, %v3085_v38, 0.0 }
0x18e1   :  { %3094 = vadd.xlane.f32.xlu0 %v3093_v40  ;;  %v3090_v41 = vsel %vm444_vm0, %v3084_v39, 0.0 }
0x18e2   :  { %3091 = vadd.xlane.f32.xlu1 %v3090_v41 }
0x196e   :  { %v3095_v42 = vpop.xlane.xlu0 %3094 }
0x196f   :  { %v3097_v43 = vmul.f32 0.03125, %v3095_v42  ;;  %v3092_v44 = vpop.xlane.xlu1 %3091 }
0x1970   :  { %v3096_v45 = vmul.f32 0.03125, %v3092_v44 }
0x1971   :  { %v3099_v46 = vsub.f32 %v3085_v38, %v3097_v43  ;;  %v5929_v38 = vld [vmem:[%s8436_s26 + $0x30] sm:$0xff] }
0x1972   :  { %v3098_v48 = vsub.f32 %v3084_v39, %v3096_v45  ;;  %v5930_v39 = vld [vmem:[%s8436_s26 + $0x38] sm:$0xff] }
0x1973   :  { %v3101_v47 = vmul.f32 %v3099_v46, %v3099_v46  ;;  %v6722_v40 = vpack.c.bf16 %v5930_v39, %v5929_v38  ;;  %v4338_v39 = vld [vmem:[#allocation22 + $0x20] sm:$0xff] }
0x1974   :  { %v3100_v50 = vmul.f32 %v3098_v48, %v3098_v48 }
0x1975   :  { %v3105_v49 = vsel %vm444_vm0, %v3101_v47, 0.0 }
0x1976   :  { %3106 = vadd.xlane.f32.xlu0 %v3105_v49  ;;  %v3102_v51 = vsel %vm444_vm0, %v3100_v50, 0.0 }
0x1977   :  { %3103 = vadd.xlane.f32.xlu1 %v3102_v51 }
0x1a03   :  { %v3107_v58 = vpop.xlane.xlu0 %3106 }
0x1a04   :  { %v3109_v59 = vmul.f32 0.03125, %v3107_v58  ;;  %v3104_v60 = vpop.xlane.xlu1 %3103 }
0x1a05   :  { %v3108_v61 = vmul.f32 0.03125, %v3104_v60 }
0x1a06   :  { %v3111_v62 = vadd.f32 1e-05, %v3109_v59 }
0x1a07   :  { %v3110_v63 = vadd.f32 1e-05, %v3108_v61 }
0x1a08   :  { %6906 = vrsqrt.f32 %v3111_v62 }
0x1a09   :  { %6908 = vrsqrt.f32 %v3110_v63 }
0x1a12   :  { %v6907_v0 = vpop.eup %6906 }
0x1a13   :  { %v6909_v10 = vpop.eup %6908  ;;  %v3115_v1 = vmul.f32 %v6907_v0, %v3099_v46  ;;  %v5927_v46 = vld [vmem:[%s8436_s26 + $0x20] sm:$0xff] }
0x1a14   :  { %v3114_v2 = vmul.f32 %v6909_v10, %v3098_v48  ;;  %v5928_v48 = vld [vmem:[%s8436_s26 + $0x28] sm:$0xff] }
0x1a15   :  { %v3123_v4 = vmul.f32 %v5918_v7, %v3115_v1  ;;  %v8183_v49 = vpack.c.bf16 %v5928_v48, %v5927_v46  ;;  %v4340_v46 = vld [vmem:[#allocation22 + $0x30] sm:$0xff]  ;;  %v4341_v48 = vld [vmem:[#allocation22 + $0x38] sm:$0xff] }
0x1a16   :  { %v3122_v6 = vmul.f32 %v5918_v7, %v3114_v2 }
0x1a17   :  { %v8139_v13 = vadd.f32 %v5919_v3, %v3123_v4 }
0x1a18   :  { %v8137_v12 = vadd.f32 %v5919_v3, %v3122_v6 }
0x1a1a   :  { %6423 = vmatprep.mubr.msk.f32.mxu0 %vm444_vm0, %v8137_v12 }
0x1a1b   :  { %6424 = vmatmul.mubr.msk.f32.vlgmr.msra.gmra.mrb[30].mxu0 %vm444_vm0, %v8139_v13 }
0x1a1c   :  { %6428 = vmatprep.mubr.msk.f32.mxu0 %vm7523_vm1, %v7522_v8 }
0x1aee   :  { %v6425_v16 = vpop.f32.mrb[30].mxu0 }
0x1aef   :  { %v8147_v17 = vadd.f32 %v6425_v16, %v5924_v15  ;;  %v3217_v18 = vpop.f32.mrb[31].mxu0 }
0x1af0   :  { %v3218_v19 = vadd.f32 %v5924_v15, %v3217_v18  ;;  %v8212_v15 = vld [vmem:[#allocation17 + $0x1] ss:$0 sm:$0xff] }
0x1af2   :  { %3400 = vrot.lane.b32.xlu0 %v3218_v19, %s7526_s6  ;;  %3234 = vrot.lane.b32.xlu1 %v3218_v19, %s7525_s18 }
0x1af6   :  { %3398 = vrot.lane.b32.xlu1 %v3218_v19, %s7524_s27 }
0x1b64   :  { %v3235_v20 = vpop.permute.xlu1 %3234  ;;  %v3401_v21 = vpop.permute.xlu0 %3400 }
0x1b65   :  { %6427 = vmatpush3.xpose.msk.msra.mxu0 %vm534_vm2, %v3235_v20 }
0x1b66   :  { %6436 = vmatprep.subr.mxu0 %v7522_v8 }
0x1b68   :  { %6429 = vmatmul.mubr.msk.f32.vlgmr.msra.gmra.mrb[32].mxu0 %vm534_vm2, %v3218_v19  ;;  %v3399_v22 = vpop.permute.xlu1 %3398 }
0x1b69   :  { %6437 = vmatpush3.xpose.msk.msra.mxu0 %vm534_vm2, %v3401_v21  ;;  %6438 = vmatprep.mubr.msk.f32.mxu0 %vm7523_vm1, %v7522_v8 }
0x1b6a   :  { %6721 = vmatprep.subr.bf16.mxu0 %v7529_v37 }
0x1b6c   :  { %6439 = vmatmul.mubr.msk.f32.vlgmr.msra.gmra.mrb[34].mxu0 %vm534_vm2, %v3399_v22 }
0x1b6d   :  { %6450 = vmatprep.mubr.msk.f32.mxu0 %vm7523_vm1, %v7522_v8  ;;  %6723 = vmatpush3.bf16.msra.mxu0 %v6722_v40 }
0x1b6e   :  { %6460 = vmatprep.subr.mxu0 %v7522_v8 }
0x1c3b   :  { %v3306_v5 = vpop.f32.mrb[32].mxu0 }
0x1c3c   :  { %v3310_v23 = vmul.f32 0.25, %v3306_v5  ;;  %v6430_v24 = vpop.f32.mrb[33].mxu0 }
0x1c3e   :  { %v3311_v9 = vsel %vm610_vm3, %v3310_v23, -inf }
0x1c3f   :  { %3312 = vmax.xlane.f32.xlu1 %v3311_v9  ;;  %v3472_v25 = vpop.f32.mrb[34].mxu0 }
0x1c40   :  { %v3476_v26 = vmul.f32 0.25, %v3472_v25  ;;  %v6440_v27 = vpop.f32.mrb[35].mxu0 }
0x1c42   :  { %v3477_v28 = vsel %vm610_vm3, %v3476_v26, -inf }
0x1c43   :  { %3478 = vmax.xlane.f32.xlu0 %v3477_v28 }
0x1ccc   :  { %v3313_v29 = vpop.xlane.xlu1 %3312 }
0x1ccd   :  { %v3314_v30 = vsub.f32 %v3310_v23, %v3313_v29 }
0x1ccf   :  { %v3315_v31 = vmul.f32 1.442695, %v3314_v30 }
0x1cd0   :  { %v3479_v32 = vpop.xlane.xlu0 %3478 }
0x1cd1   :  { %6910 = vpow2.f32 %v3315_v31  ;;  %v3480_v33 = vsub.f32 %v3476_v26, %v3479_v32 }
0x1cd3   :  { %v3481_v34 = vmul.f32 1.442695, %v3480_v33 }
0x1cd5   :  { %6912 = vpow2.f32 %v3481_v34 }
0x1cdb   :  { %v6911_v11 = vpop.eup %6910 }
0x1cdc   :  { %v3317_v35 = vsel %vm610_vm3, %v6911_v11, 0.0 }
0x1cdd   :  { %3318 = vadd.xlane.f32.xlu0 %v3317_v35 }
0x1cdf   :  { %v6913_v14 = vpop.eup %6912 }
0x1ce0   :  { %v3483_v36 = vsel %vm610_vm3, %v6913_v14, 0.0 }
0x1ce1   :  { %3484 = vadd.xlane.f32.xlu1 %v3483_v36 }
0x1cf2   :  { %3488 = vrot.lane.b32.xlu1 %v3218_v19, %s7527_s22 }
0x1cf3   :  { %3322 = vrot.lane.b32.xlu0 %v3218_v19, %s7528_s5 }
0x1cf6   :  { %3711 = vrot.lane.b32.xlu1 %v8147_v17, %s7525_s18 }
0x1cf7   :  { %3877 = vrot.lane.b32.xlu0 %v8147_v17, %s7526_s6 }
0x1cfa   :  { %3875 = vrot.lane.b32.xlu1 %v8147_v17, %s7524_s27 }
0x1d6a   :  { %v3319_v41 = vpop.xlane.xlu0 %3318 }
0x1d6b   :  { %6914 = vrcp.f32 %v3319_v41 }
0x1d6e   :  { %v3323_v42 = vpop.permute.xlu0 %3322  ;;  %v3485_v43 = vpop.xlane.xlu1 %3484 }
0x1d6f   :  { %6916 = vrcp.f32 %v3485_v43  ;;  %6432 = vmatpush3.msra.mxu1 %v3323_v42 }
0x1d70   :  { %6441 = vmatprep.subr.mxu1 %v7522_v8 }
0x1d72   :  { %v3489_v47 = vpop.permute.xlu1 %3488  ;;  %v3878_v57 = vpop.permute.xlu0 %3877 }
0x1d75   :  { %v6915_v44 = vpop.eup %6914 }
0x1d76   :  { %v3321_v45 = vmul.f32 %v6915_v44, %v6911_v11  ;;  %v3712_v55 = vpop.permute.xlu1 %3711 }
0x1d78   :  { %6434 = vmatmul.mubr.msk.f32.vlgmr.msra.gmra.mrb[30].mxu1 %vm610_vm3, %v3321_v45 }
0x1d79   :  { %v6917_v50 = vpop.eup %6916  ;;  %6442 = vmatpush3.msra.mxu1 %v3489_v47  ;;  %6443 = vmatprep.mubr.msk.f32.mxu1 %vm7523_vm1, %v7522_v8 }
0x1d7a   :  { %v3487_v51 = vmul.f32 %v6917_v50, %v6913_v14  ;;  %6724 = vmatprep.subr.bf16.mxu1 %v7529_v37  ;;  %v3876_v58 = vpop.permute.xlu1 %3875  ;;  %v5948_v50 = vld [vmem:[#allocation28 + $0x1] ss:$0 sm:$0xff] }
0x1d7c   :  { %6444 = vmatmul.mubr.msk.f32.vlgmr.msra.gmra.mrb[32].mxu1 %vm610_vm3, %v3487_v51  ;;  %v6745_v51 = vpack.c.bf16 %v4341_v48, %v4340_v46 }
0x1d7d   :  { %6726 = vmatpush3.bf16.msra.mxu1 %v8183_v49  ;;  %6457 = vmatprep.mubr.msk.f32.mxu1 %vm7523_vm1, %v7522_v8 }
0x1d7e   :  { %6465 = vmatprep.subr.mxu1 %v7522_v8 }
0x1e4b   :  { %v3394_v52 = vpop.f32.mrb[30].mxu1 }
0x1e4c   :  { %v6435_v53 = vpop.f32.mrb[31].mxu1  ;;  %6458 = vmatmul.mubr.msk.f32.vlgmr.msra.gmra.mrb[34].mxu1 %vm534_vm2, %v3394_v52 }
0x1e4d   :  { %6467 = vmatprep.mubr.msk.f32.mxu1 %vm7523_vm1, %v7522_v8 }
0x1e4f   :  { %v3560_v54 = vpop.f32.mrb[32].mxu1 }
0x1e50   :  { %v6445_v56 = vpop.f32.mrb[33].mxu1  ;;  %6451 = vmatmul.mubr.msk.f32.vlgmr.msra.gmra.mrb[36].mxu0 %vm534_vm2, %v3560_v54  ;;  %v5949_v54 = vld [vmem:[#allocation29 + $0x1] ss:$0 sm:$0xff] }
0x1e51   :  { %6461 = vmatpush3.xpose.msk.msra.mxu0 %vm534_vm2, %v3712_v55  ;;  %6462 = vmatprep.mubr.msk.f32.mxu0 %vm7523_vm1, %v7522_v8 }
0x1e52   :  { %6470 = vmatprep.subr.mxu0 %v7522_v8 }
0x1e54   :  { %6463 = vmatmul.mubr.msk.f32.vlgmr.msra.gmra.mrb[38].mxu0 %vm534_vm2, %v8147_v17 }
0x1e55   :  { %6471 = vmatpush3.xpose.msk.msra.mxu0 %vm534_vm2, %v3878_v57  ;;  %6472 = vmatprep.mubr.msk.f32.mxu0 %vm7523_vm1, %v7522_v8 }
0x1e56   :  { %6727 = vmatprep.subr.bf16.mxu0 %v7529_v37 }
0x1e58   :  { %6473 = vmatmul.mubr.msk.f32.vlgmr.msra.gmra.mrb[40].mxu0 %vm534_vm2, %v3876_v58 }
0x1e59   :  { %6729 = vmatpush3.bf16.msra.mxu0 %v6722_v40  ;;  %6484 = vmatprep.mubr.msk.f32.mxu0 %vm7523_vm1, %v7522_v8  ;;  %v4339_v40 = vld [vmem:[#allocation22 + $0x28] sm:$0xff] }
0x1e5a   :  { %v6741_v41 = vpack.c.bf16 %v4339_v40, %v4338_v39 }
0x1f1f   :  { %v3706_v59 = vpop.f32.mrb[34].mxu1 }
0x1f20   :  { %v6459_v60 = vpop.f32.mrb[35].mxu1 }
0x1f23   :  { %v3633_v61 = vpop.f32.mrb[36].mxu0 }
0x1f24   :  { %v3707_v62 = vadd.f32 %v3706_v59, %v3633_v61  ;;  %v6452_v63 = vpop.f32.mrb[37].mxu0 }
0x1f26   :  { %v4193_v16 = vadd.f32 %v8212_v15, %v3707_v62  ;;  %v5953_v62 = vld [vmem:[#allocation23 + $0x1] ss:$0 sm:$0xff] }
0x1f27   :  { %v3783_v0 = vpop.f32.mrb[38].mxu0 }
0x1f28   :  { %v3787_v7 = vmul.f32 0.25, %v3783_v0  ;;  %v6464_v10 = vpop.f32.mrb[39].mxu0  ;;  %v4195_v18 = vadd.f32 %v4193_v16, %v8137_v12 }
0x1f2a   :  { %v3788_v1 = vsel %vm610_vm3, %v3787_v7, -inf  ;;  %v4201_v19 = vsel %vm444_vm0, %v4195_v18, 0.0 }
0x1f2b   :  { %3789 = vmax.xlane.f32.xlu0 %v3788_v1  ;;  %v3949_v2 = vpop.f32.mrb[40].mxu0 }
0x1f2c   :  { %v3953_v3 = vmul.f32 0.25, %v3949_v2  ;;  %v6474_v4 = vpop.f32.mrb[41].mxu0 }
0x1f2e   :  { %v3954_v6 = vsel %vm610_vm3, %v3953_v3, -inf }
0x1f2f   :  { %3955 = vmax.xlane.f32.xlu1 %v3954_v6 }
0x1f40   :  { %3799 = vrot.lane.b32.xlu1 %v8147_v17, %s7528_s5 }
0x1f64   :  { %4202 = vadd.xlane.f32.xlu1 %v4201_v19  ;;  %v4244_v19 = vld [vmem:[#allocation19 + $0x20] sm:$0xff] }
0x1fb8   :  { %v3790_v20 = vpop.xlane.xlu0 %3789 }
0x1fb9   :  { %v3791_v21 = vsub.f32 %v3787_v7, %v3790_v20  ;;  %v4245_v20 = vld [vmem:[#allocation19 + $0x28] sm:$0xff] }
0x1fbb   :  { %v3792_v22 = vmul.f32 1.442695, %v3791_v21  ;;  %v6733_v21 = vpack.c.bf16 %v4245_v20, %v4244_v19 }
0x1fbc   :  { %v3956_v5 = vpop.xlane.xlu1 %3955 }
0x1fbd   :  { %6918 = vpow2.f32 %v3792_v22  ;;  %v3957_v23 = vsub.f32 %v3953_v3, %v3956_v5  ;;  %6734 = vmatprep.subr.bf16.mxu0 %v6733_v21  ;;  %v4247_v22 = vld [vmem:[#allocation19 + $0x38] sm:$0xff] }
0x1fbf   :  { %v3958_v24 = vmul.f32 1.442695, %v3957_v23 }
0x1fc0   :  { %v3800_v9 = vpop.permute.xlu1 %3799 }
0x1fc1   :  { %6920 = vpow2.f32 %v3958_v24  ;;  %6466 = vmatpush3.msra.mxu1 %v3800_v9 }
0x1fc2   :  { %6475 = vmatprep.subr.mxu1 %v7522_v8 }
0x1fc7   :  { %v6919_v25 = vpop.eup %6918 }
0x1fc8   :  { %v3794_v26 = vsel %vm610_vm3, %v6919_v25, 0.0 }
0x1fc9   :  { %3795 = vadd.xlane.f32.xlu0 %v3794_v26 }
0x1fcb   :  { %v6921_v27 = vpop.eup %6920 }
0x1fcc   :  { %v3960_v28 = vsel %vm610_vm3, %v6921_v27, 0.0 }
0x1fcd   :  { %3961 = vadd.xlane.f32.xlu0 %v3960_v28 }
0x1fe3   :  { %3965 = vrot.lane.b32.xlu0 %v8147_v17, %s7527_s22 }
0x1ff1   :  { %v4203_v29 = vpop.xlane.xlu1 %4202 }
0x1ff2   :  { %v4207_v30 = vmul.f32 0.03125, %v4203_v29  ;;  %v5950_v29 = vld [vmem:[#allocation20 + $0x1] ss:$0 sm:$0xff] }
0x1ff4   :  { %v4209_v31 = vsub.f32 %v4195_v18, %v4207_v30 }
0x1ff6   :  { %v4211_v32 = vmul.f32 %v4209_v31, %v4209_v31 }
0x1ff8   :  { %v4213_v33 = vsel %vm444_vm0, %v4211_v32, 0.0 }
0x1ff9   :  { %4214 = vadd.xlane.f32.xlu1 %v4213_v33 }
0x2056   :  { %v3796_v34 = vpop.xlane.xlu0 %3795 }
0x2057   :  { %6922 = vrcp.f32 %v3796_v34 }
0x205a   :  { %v3962_v11 = vpop.xlane.xlu0 %3961 }
0x205b   :  { %6924 = vrcp.f32 %v3962_v11 }
0x205e   :  { %v3966_v36 = vpop.permute.xlu0 %3965 }
0x2061   :  { %v6923_v35 = vpop.eup %6922 }
0x2062   :  { %v3798_v14 = vmul.f32 %v6923_v35, %v6919_v25 }
0x2064   :  { %6468 = vmatmul.mubr.msk.f32.vlgmr.msra.gmra.mrb[36].mxu1 %vm610_vm3, %v3798_v14 }
0x2065   :  { %v6925_v38 = vpop.eup %6924  ;;  %6476 = vmatpush3.msra.mxu1 %v3966_v36  ;;  %6477 = vmatprep.mubr.msk.f32.mxu1 %vm7523_vm1, %v7522_v8 }
0x2066   :  { %v3964_v17 = vmul.f32 %v6925_v38, %v6921_v27  ;;  %6730 = vmatprep.subr.bf16.mxu1 %v7529_v37 }
0x2068   :  { %6478 = vmatmul.mubr.msk.f32.vlgmr.msra.gmra.mrb[38].mxu1 %vm610_vm3, %v3964_v17 }
0x2069   :  { %6732 = vmatpush3.bf16.msra.mxu1 %v8183_v49  ;;  %6491 = vmatprep.mubr.msk.f32.mxu1 %vm7523_vm1, %v7522_v8 }
0x206a   :  { %6742 = vmatprep.subr.bf16.mxu1 %v6741_v41 }
0x2086   :  { %v4215_v42 = vpop.xlane.xlu1 %4214 }
0x2087   :  { %v4219_v43 = vmul.f32 0.03125, %v4215_v42 }
0x2089   :  { %v4221_v44 = vadd.f32 1e-05, %v4219_v43 }
0x208b   :  { %6926 = vrsqrt.f32 %v4221_v44 }
0x2095   :  { %v6927_v45 = vpop.eup %6926 }
0x2096   :  { %v4225_v47 = vmul.f32 %v6927_v45, %v4209_v31 }
0x2098   :  { %v4233_v53 = vmul.f32 %v5948_v50, %v4225_v47 }
0x209a   :  { %v8234_v56 = vadd.f32 %v5949_v54, %v4233_v53 }
0x2137   :  { %v3871_v52 = vpop.f32.mrb[36].mxu1 }
0x2138   :  { %v6469_v49 = vpop.f32.mrb[37].mxu1  ;;  %6492 = vmatmul.mubr.msk.f32.vlgmr.msra.gmra.mrb[40].mxu1 %vm534_vm2, %v3871_v52 }
0x2139   :  { %6744 = vmatpush3.bf16.msra.mxu1 %v6741_v41  ;;  %6513 = vmatprep.mubr.msk.f32.mxu1 %vm444_vm0, %v8137_v12 }
0x213a   :  { %6746 = vmatprep.subr.bf16.mxu1 %v6745_v51 }
0x213b   :  { %v4037_v55 = vpop.f32.mrb[38].mxu1 }
0x213c   :  { %v6479_v57 = vpop.f32.mrb[39].mxu1  ;;  %6485 = vmatmul.mubr.msk.f32.vlgmr.msra.gmra.mrb[42].mxu0 %vm534_vm2, %v4037_v55 }
0x213d   :  { %6748 = vmatpush3.bf16.msra.mxu1 %v6745_v51  ;;  %6502 = vmatprep.mubr.msk.f32.mxu0 %vm444_vm0, %v8234_v56  ;;  %v4428_v57 = vld [vmem:[#allocation25 + $0x30] sm:$0xff] }
0x213e   :  { %6521 = vmatprep.subr.mxu1 %v7522_v8  ;;  %6736 = vmatpush3.bf16.msra.mxu0 %v6733_v21 }
0x2140   :  { %6514 = vmatmul.mubr.msk.f32.vlgmr.msra.gmra.mrb[42].mxu1 %vm444_vm0, %v8139_v13 }
0x2141   :  { %6523 = vmatprep.mubr.msk.f32.mxu1 %vm7523_vm1, %v7522_v8 }
0x220b   :  { %v4183_v12 = vpop.f32.mrb[40].mxu1 }
0x220c   :  { %v6493_v58 = vpop.f32.mrb[41].mxu1 }
0x220f   :  { %v4110_v59 = vpop.f32.mrb[42].mxu0 }
0x2210   :  { %v4184_v60 = vadd.f32 %v4183_v12, %v4110_v59  ;;  %v6486_v61 = vpop.f32.mrb[43].mxu0  ;;  %v4429_v12 = vld [vmem:[#allocation25 + $0x38] sm:$0xff] }
0x2211   :  { %v6750_v58 = vpack.c.bf16 %v4429_v12, %v4428_v57  ;;  %v4426_v61 = vld [vmem:[#allocation25 + $0x20] sm:$0xff] }
0x2212   :  { %v4194_v63 = vadd.f32 %v8212_v15, %v4184_v60  ;;  %v5973_v57 = vld [vmem:[#allocation31 + $0x1] ss:$0 sm:$0xff] }
0x2213   :  { %v6515_v0 = vpop.f32.mrb[42].mxu1 }
0x2214   :  { %v8245_v7 = vadd.f32 %v6515_v0, %v5953_v62  ;;  %v4416_v10 = vpop.f32.mrb[43].mxu1  ;;  %v4196_v1 = vadd.f32 %v4194_v63, %v8139_v13  ;;  %v4246_v13 = vld [vmem:[#allocation19 + $0x30] sm:$0xff] }
0x2215   :  { %v8248_v2 = vadd.f32 %v5953_v62, %v4416_v10  ;;  %v6737_v5 = vpack.c.bf16 %v4247_v22, %v4246_v13  ;;  %v4427_v62 = vld [vmem:[#allocation25 + $0x28] sm:$0xff] }
0x2216   :  { %v4204_v3 = vsel %vm444_vm0, %v4196_v1, 0.0  ;;  %v8293_v0 = vpack.c.bf16 %v4427_v62, %v4426_v61 }
0x2217   :  { %4598 = vrot.lane.b32.xlu1 %v8248_v2, %s7524_s27  ;;  %4205 = vadd.xlane.f32.xlu0 %v4204_v3 }
0x2218   :  { %6738 = vmatprep.subr.bf16.mxu0 %v6737_v5 }
0x2219   :  { %6740 = vmatpush3.bf16.msra.mxu0 %v6737_v5 }
0x221a   :  { %6516 = vmatprep.subr.mxu0 %v7522_v8 }
0x2289   :  { %v4599_v34 = vpop.permute.xlu1 %4598 }
0x22a4   :  { %v4206_v4 = vpop.xlane.xlu0 %4205 }
0x22a5   :  { %v4208_v6 = vmul.f32 0.03125, %v4206_v4 }
0x22a7   :  { %v4210_v16 = vsub.f32 %v4196_v1, %v4208_v6 }
0x22a9   :  { %v4212_v18 = vmul.f32 %v4210_v16, %v4210_v16 }
0x22ab   :  { %v4216_v15 = vsel %vm444_vm0, %v4212_v18, 0.0 }
0x22ac   :  { %4217 = vadd.xlane.f32.xlu0 %v4216_v15 }
0x2339   :  { %v4218_v23 = vpop.xlane.xlu0 %4217 }
0x233a   :  { %v4220_v24 = vmul.f32 0.03125, %v4218_v23 }
0x233c   :  { %v4222_v9 = vadd.f32 1e-05, %v4220_v24 }
0x233e   :  { %6928 = vrsqrt.f32 %v4222_v9 }
0x2348   :  { %v6929_v25 = vpop.eup %6928 }
0x2349   :  { %v4226_v26 = vmul.f32 %v6929_v25, %v4210_v16 }
0x234b   :  { %v4234_v27 = vmul.f32 %v5948_v50, %v4226_v26 }
0x234d   :  { %v8255_v28 = vadd.f32 %v5949_v54, %v4234_v27  ;;  %v8322_v27 = vld [vmem:[#allocation26 + $0x1] ss:$0 sm:$0xff] }
0x234f   :  { %6503 = vmatmul.mubr.msk.f32.vlgmr.msra.gmra.mrb[44].mxu0 %vm444_vm0, %v8255_v28 }
0x2350   :  { %6517 = vmatpush3.xpose.msk.msra.mxu0 %vm534_vm2, %v8248_v2  ;;  %6518 = vmatprep.mubr.msk.f32.mxu0 %vm7523_vm1, %v7522_v8 }
0x2351   :  { %6526 = vmatprep.subr.mxu0 %v7522_v8 }
0x2422   :  { %v6504_v30 = vpop.f32.mrb[44].mxu0 }
0x2423   :  { %v8264_v31 = vadd.f32 %v6504_v30, %v5950_v29  ;;  %v4328_v32 = vpop.f32.mrb[45].mxu0 }
0x2424   :  { %v4329_v33 = vadd.f32 %v5950_v29, %v4328_v32 }
0x2426   :  { %4596 = vrot.lane.b32.xlu0 %v4329_v33, %s7524_s27  ;;  %6519 = vmatmul.mubr.msk.f32.vlgmr.msra.gmra.mrb[46].mxu0 %vm534_vm2, %v4329_v33 }
0x2427   :  { %6527 = vmatpush3.xpose.msk.msra.mxu0 %vm534_vm2, %v4599_v34  ;;  %6528 = vmatprep.mubr.msk.f32.mxu0 %vm7523_vm1, %v7522_v8 }
0x2428   :  { %6749 = vmatprep.subr.bf16.mxu0 %v7529_v37 }
0x2498   :  { %v4597_v11 = vpop.permute.xlu0 %4596 }
0x2499   :  { %6529 = vmatmul.mubr.msk.f32.vlgmr.msra.gmra.mrb[48].mxu0 %vm534_vm2, %v4597_v11 }
0x249a   :  { %6540 = vmatprep.mubr.msk.f32.mxu0 %vm7523_vm1, %v7522_v8  ;;  %6751 = vmatpush3.bf16.msra.mxu0 %v6750_v58 }
0x249b   :  { %6550 = vmatprep.subr.mxu0 %v7522_v8 }
0x24f9   :  { %v4504_v35 = vpop.f32.mrb[46].mxu0 }
0x24fa   :  { %v4508_v14 = vmul.f32 0.25, %v4504_v35  ;;  %v6520_v36 = vpop.f32.mrb[47].mxu0 }
0x24fc   :  { %v4509_v38 = vsel %vm610_vm3, %v4508_v14, -inf }
0x24fd   :  { %4510 = vmax.xlane.f32.xlu1 %v4509_v38 }
0x256c   :  { %v4670_v17 = vpop.f32.mrb[48].mxu0 }
0x256d   :  { %v4674_v39 = vmul.f32 0.25, %v4670_v17  ;;  %v6530_v40 = vpop.f32.mrb[49].mxu0 }
0x256f   :  { %v4675_v41 = vsel %vm610_vm3, %v4674_v39, -inf }
0x2570   :  { %4676 = vmax.xlane.f32.xlu0 %v4675_v41 }
0x258a   :  { %v4511_v42 = vpop.xlane.xlu1 %4510 }
0x258b   :  { %v4512_v43 = vsub.f32 %v4508_v14, %v4511_v42 }
0x258d   :  { %v4513_v44 = vmul.f32 1.442695, %v4512_v43 }
0x258f   :  { %6930 = vpow2.f32 %v4513_v44 }
0x2599   :  { %v6931_v45 = vpop.eup %6930 }
0x259a   :  { %v4515_v46 = vsel %vm610_vm3, %v6931_v45, 0.0 }
0x259b   :  { %4516 = vadd.xlane.f32.xlu1 %v4515_v46 }
0x25ac   :  { %4520 = vrot.lane.b32.xlu1 %v8248_v2, %s7525_s18 }
0x25b0   :  { %5074 = vrot.lane.b32.xlu1 %v8245_v7, %s7524_s27 }
0x25b4   :  { %5072 = vrot.lane.b32.xlu1 %v8264_v31, %s7524_s27 }
0x25fd   :  { %v4677_v48 = vpop.xlane.xlu0 %4676 }
0x25fe   :  { %v4678_v47 = vsub.f32 %v4674_v39, %v4677_v48 }
0x2600   :  { %v4679_v50 = vmul.f32 1.442695, %v4678_v47 }
0x2602   :  { %6932 = vpow2.f32 %v4679_v50 }
0x260c   :  { %v6933_v51 = vpop.eup %6932 }
0x260d   :  { %v4681_v52 = vsel %vm610_vm3, %v6933_v51, 0.0 }
0x260e   :  { %4682 = vadd.xlane.f32.xlu0 %v4681_v52 }
0x2624   :  { %4686 = vrot.lane.b32.xlu0 %v8248_v2, %s7526_s6 }
0x2628   :  { %v4517_v53 = vpop.xlane.xlu1 %4516 }
0x2629   :  { %6934 = vrcp.f32 %v4517_v53 }
0x262c   :  { %v4521_v49 = vpop.permute.xlu1 %4520 }
0x262d   :  { %6522 = vmatpush3.msra.mxu1 %v4521_v49 }
0x262e   :  { %6531 = vmatprep.subr.mxu1 %v7522_v8 }
0x2630   :  { %v5075_v6 = vpop.permute.xlu1 %5074 }
0x2633   :  { %v6935_v54 = vpop.eup %6934 }
0x2634   :  { %v4519_v55 = vmul.f32 %v6935_v54, %v6931_v45  ;;  %v5073_v16 = vpop.permute.xlu1 %5072 }
0x2636   :  { %6524 = vmatmul.mubr.msk.f32.vlgmr.msra.gmra.mrb[44].mxu1 %vm610_vm3, %v4519_v55 }
0x2637   :  { %6533 = vmatprep.mubr.msk.f32.mxu1 %vm7523_vm1, %v7522_v8 }
0x269b   :  { %v4683_v59 = vpop.xlane.xlu0 %4682 }
0x269c   :  { %6936 = vrcp.f32 %v4683_v59 }
0x269f   :  { %v4687_v60 = vpop.permute.xlu0 %4686 }
0x26a0   :  { %6532 = vmatpush3.msra.mxu1 %v4687_v60 }
0x26a1   :  { %6752 = vmatprep.subr.bf16.mxu1 %v7529_v37 }
0x26a6   :  { %v6937_v63 = vpop.eup %6936 }
0x26a7   :  { %v4685_v10 = vmul.f32 %v6937_v63, %v6933_v51 }
0x26a9   :  { %6534 = vmatmul.mubr.msk.f32.vlgmr.msra.gmra.mrb[46].mxu1 %vm610_vm3, %v4685_v10 }
0x26aa   :  { %6754 = vmatpush3.bf16.msra.mxu1 %v8293_v0  ;;  %6547 = vmatprep.mubr.msk.f32.mxu1 %vm7523_vm1, %v7522_v8 }
0x26ab   :  { %6555 = vmatprep.subr.mxu1 %v7522_v8 }
0x2709   :  { %v4592_v1 = vpop.f32.mrb[44].mxu1 }
0x270a   :  { %v6525_v2 = vpop.f32.mrb[45].mxu1  ;;  %6548 = vmatmul.mubr.msk.f32.vlgmr.msra.gmra.mrb[48].mxu1 %vm534_vm2, %v4592_v1 }
0x270b   :  { %6557 = vmatprep.mubr.msk.f32.mxu1 %vm7523_vm1, %v7522_v8 }
0x277c   :  { %v4758_v3 = vpop.f32.mrb[46].mxu1 }
0x277d   :  { %v6535_v4 = vpop.f32.mrb[47].mxu1  ;;  %6541 = vmatmul.mubr.msk.f32.vlgmr.msra.gmra.mrb[50].mxu0 %vm534_vm2, %v4758_v3 }
0x277e   :  { %6551 = vmatpush3.xpose.msk.msra.mxu0 %vm534_vm2, %v8245_v7  ;;  %6552 = vmatprep.mubr.msk.f32.mxu0 %vm7523_vm1, %v7522_v8 }
0x277f   :  { %6560 = vmatprep.subr.mxu0 %v7522_v8 }
0x2781   :  { %6553 = vmatmul.mubr.msk.f32.vlgmr.msra.gmra.mrb[52].mxu0 %vm534_vm2, %v8264_v31 }
0x2782   :  { %6561 = vmatpush3.xpose.msk.msra.mxu0 %vm534_vm2, %v5075_v6  ;;  %6562 = vmatprep.mubr.msk.f32.mxu0 %vm7523_vm1, %v7522_v8 }
0x2783   :  { %6755 = vmatprep.subr.bf16.mxu0 %v7529_v37 }
0x2785   :  { %6563 = vmatmul.mubr.msk.f32.vlgmr.msra.gmra.mrb[54].mxu0 %vm534_vm2, %v5073_v16 }
0x2786   :  { %6757 = vmatpush3.bf16.msra.mxu0 %v6750_v58  ;;  %6574 = vmatprep.mubr.msk.f32.mxu0 %vm7523_vm1, %v7522_v8 }
0x27dd   :  { %v4904_v18 = vpop.f32.mrb[48].mxu1 }
0x27de   :  { %v6549_v15 = vpop.f32.mrb[49].mxu1 }
0x2850   :  { %v4831_v19 = vpop.f32.mrb[50].mxu0 }
0x2851   :  { %v4905_v20 = vadd.f32 %v4904_v18, %v4831_v19  ;;  %v6542_v21 = vpop.f32.mrb[51].mxu0 }
0x2852   :  { %v5976_v21 = vld [vmem:[%s8437_s14 + $0x28] sm:$0xff] }
0x2853   :  { %v5390_v29 = vadd.f32 %v8322_v27, %v4905_v20  ;;  %v5975_v20 = vld [vmem:[%s8437_s14 + $0x20] sm:$0xff] }
0x2854   :  { %v4980_v13 = vpop.f32.mrb[52].mxu0 }
0x2855   :  { %v4984_v22 = vmul.f32 0.25, %v4980_v13  ;;  %v6554_v5 = vpop.f32.mrb[53].mxu0  ;;  %v5392_v30 = vadd.f32 %v5390_v29, %v8234_v56  ;;  %v6761_v13 = vpack.c.bf16 %v5976_v21, %v5975_v20  ;;  %v5984_v29 = vld [vmem:[%s8438_s2 + $0x60] sm:$0xff]  ;;  %v5996_v20 = vld [vmem:[#allocation34 + $0x1] ss:$0 sm:$0xff] }
0x2857   :  { %v4985_v23 = vsel %vm610_vm3, %v4984_v22, -inf  ;;  %v5398_v31 = vsel %vm444_vm0, %v5392_v30, 0.0  ;;  %6762 = vmatprep.subr.bf16.mxu0 %v6761_v13 }
0x2858   :  { %4986 = vmax.xlane.f32.xlu0 %v4985_v23  ;;  %v5146_v24 = vpop.f32.mrb[54].mxu0  ;;  %v5980_v23 = vld [vmem:[%s8438_s2 + $0x40] sm:$0xff] }
0x2859   :  { %v5150_v9 = vmul.f32 0.25, %v5146_v24  ;;  %v6564_v25 = vpop.f32.mrb[55].mxu0  ;;  %v5981_v24 = vld [vmem:[%s8438_s2 + $0x48] sm:$0xff] }
0x285a   :  { %v6769_v25 = vpack.c.bf16 %v5981_v24, %v5980_v23 }
0x285b   :  { %v5151_v26 = vsel %vm610_vm3, %v5150_v9, -inf }
0x285c   :  { %5152 = vmax.xlane.f32.xlu1 %v5151_v26  ;;  %v5983_v26 = vld [vmem:[%s8438_s2 + $0x58] sm:$0xff] }
0x286d   :  { %4996 = vrot.lane.b32.xlu1 %v8245_v7, %s7525_s18 }
0x2891   :  { %5399 = vadd.xlane.f32.xlu1 %v5398_v31 }
0x28e5   :  { %v4987_v32 = vpop.xlane.xlu0 %4986 }
0x28e6   :  { %v4988_v33 = vsub.f32 %v4984_v22, %v4987_v32  ;;  %v5978_v22 = vld [vmem:[%s8437_s14 + $0x38] sm:$0xff] }
0x28e8   :  { %v4989_v34 = vmul.f32 1.442695, %v4988_v33 }
0x28e9   :  { %v5153_v11 = vpop.xlane.xlu1 %5152 }
0x28ea   :  { %6938 = vpow2.f32 %v4989_v34  ;;  %v5154_v35 = vsub.f32 %v5150_v9, %v5153_v11  ;;  %v5982_v9 = vld [vmem:[%s8438_s2 + $0x50] sm:$0xff] }
0x28ec   :  { %v5155_v14 = vmul.f32 1.442695, %v5154_v35 }
0x28ed   :  { %v4997_v36 = vpop.permute.xlu1 %4996 }
0x28ee   :  { %6940 = vpow2.f32 %v5155_v14  ;;  %6556 = vmatpush3.msra.mxu1 %v4997_v36 }
0x28ef   :  { %6565 = vmatprep.subr.mxu1 %v7522_v8 }
0x28f4   :  { %v6939_v38 = vpop.eup %6938 }
0x28f5   :  { %v4991_v17 = vsel %vm610_vm3, %v6939_v38, 0.0 }
0x28f6   :  { %4992 = vadd.xlane.f32.xlu0 %v4991_v17  ;;  %v5987_v17 = vld [vmem:[%s8438_s2 + $0x78] sm:$0xff] }
0x28f8   :  { %v6941_v56 = vpop.eup %6940 }
0x28f9   :  { %v5157_v39 = vsel %vm610_vm3, %v6941_v56, 0.0 }
0x28fa   :  { %5158 = vadd.xlane.f32.xlu0 %v5157_v39  ;;  %v5989_v39 = vld [vmem:[%s8439_s17 + $0x1] ss:$0 sm:$0xff] }
0x2910   :  { %5162 = vrot.lane.b32.xlu0 %v8245_v7, %s7526_s6 }
0x291e   :  { %v5400_v40 = vpop.xlane.xlu1 %5399 }
0x291f   :  { %v5404_v41 = vmul.f32 0.03125, %v5400_v40 }
0x2921   :  { %v5406_v42 = vsub.f32 %v5392_v30, %v5404_v41  ;;  %v5985_v30 = vld [vmem:[%s8438_s2 + $0x68] sm:$0xff] }
0x2922   :  { %v6777_v31 = vpack.c.bf16 %v5985_v30, %v5984_v29 }
0x2923   :  { %v5408_v43 = vmul.f32 %v5406_v42, %v5406_v42 }
0x2925   :  { %v5410_v44 = vsel %vm444_vm0, %v5408_v43, 0.0 }
0x2926   :  { %5411 = vadd.xlane.f32.xlu1 %v5410_v44 }
0x2983   :  { %v4993_v45 = vpop.xlane.xlu0 %4992 }
0x2984   :  { %6942 = vrcp.f32 %v4993_v45 }
0x2987   :  { %v5159_v46 = vpop.xlane.xlu0 %5158 }
0x2988   :  { %6944 = vrcp.f32 %v5159_v46  ;;  %v5992_v46 = vld [vmem:[%s7699_s4 + $0x1] ss:$0 sm:$0xff]  ;;  %s8440_s4 = sld [smem:[#allocation62_spill]] }
0x298b   :  { %v5163_v50 = vpop.permute.xlu0 %5162 }
0x298e   :  { %v6943_v48 = vpop.eup %6942 }
0x298f   :  { %v4995_v47 = vmul.f32 %v6943_v48, %v6939_v38  ;;  %v5986_v38 = vld [vmem:[%s8438_s2 + $0x70] sm:$0xff] }
0x2991   :  { %6558 = vmatmul.mubr.msk.f32.vlgmr.msra.gmra.mrb[50].mxu1 %vm610_vm3, %v4995_v47 }
0x2992   :  { %v6945_v51 = vpop.eup %6944  ;;  %6566 = vmatpush3.msra.mxu1 %v5163_v50  ;;  %6567 = vmatprep.mubr.msk.f32.mxu1 %vm7523_vm1, %v7522_v8 }
0x2993   :  { %v5161_v7 = vmul.f32 %v6945_v51, %v6941_v56  ;;  %6758 = vmatprep.subr.bf16.mxu1 %v7529_v37  ;;  %v5974_v37 = vld [vmem:[#allocation32 + $0x1] ss:$0 sm:$0xff]  ;;  %v6781_v56 = vpack.c.bf16 %v5987_v17, %v5986_v38 }
0x2995   :  { %6568 = vmatmul.mubr.msk.f32.vlgmr.msra.gmra.mrb[52].mxu1 %vm610_vm3, %v5161_v7 }
0x2996   :  { %6760 = vmatpush3.bf16.msra.mxu1 %v8293_v0  ;;  %6581 = vmatprep.mubr.msk.f32.mxu1 %vm7523_vm1, %v7522_v8 }
0x2997   :  { %6770 = vmatprep.subr.bf16.mxu1 %v6769_v25 }
0x29b3   :  { %v5412_v52 = vpop.xlane.xlu1 %5411 }
0x29b4   :  { %v5416_v53 = vmul.f32 0.03125, %v5412_v52 }
0x29b6   :  { %v5418_v49 = vadd.f32 1e-05, %v5416_v53 }
0x29b8   :  { %6946 = vrsqrt.f32 %v5418_v49 }
0x29c2   :  { %v6947_v54 = vpop.eup %6946 }
0x29c3   :  { %v5422_v55 = vmul.f32 %v6947_v54, %v5406_v42 }
0x29c5   :  { %v5430_v58 = vmul.f32 %v5973_v57, %v5422_v55 }
0x29c7   :  { %v8342_v61 = vadd.f32 %v5974_v37, %v5430_v58 }
0x2a64   :  { %v5068_v12 = vpop.f32.mrb[50].mxu1 }
0x2a65   :  { %v6559_v59 = vpop.f32.mrb[51].mxu1  ;;  %6582 = vmatmul.mubr.msk.f32.vlgmr.msra.gmra.mrb[54].mxu1 %vm534_vm2, %v5068_v12 }
0x2a66   :  { %6772 = vmatpush3.bf16.msra.mxu1 %v6769_v25  ;;  %v5998_v25 = vld [vmem:[%s7709_s12] ss:$0 sm:$0xff] }
0x2a68   :  { %v5234_v60 = vpop.f32.mrb[52].mxu1 }
0x2a69   :  { %v6569_v62 = vpop.f32.mrb[53].mxu1  ;;  %6575 = vmatmul.mubr.msk.f32.vlgmr.msra.gmra.mrb[56].mxu0 %vm534_vm2, %v5234_v60 }
0x2a6a   :  { %6592 = vmatprep.mubr.msk.f32.mxu0 %vm444_vm0, %v8342_v61  ;;  %6764 = vmatpush3.bf16.msra.mxu0 %v6761_v13 }
0x2b38   :  { %v5380_v8 = vpop.f32.mrb[54].mxu1 }
0x2b39   :  { %v6583_v63 = vpop.f32.mrb[55].mxu1 }
0x2b3a   :  { %v5683_v63 = vld [vmem:[%s7704_s3 + $0x8] sm:$0xff] }
0x2b3c   :  { %v5307_v0 = vpop.f32.mrb[56].mxu0 }
0x2b3d   :  { %v5381_v10 = vadd.f32 %v5380_v8, %v5307_v0  ;;  %v6576_v1 = vpop.f32.mrb[57].mxu0  ;;  %v5682_v8 = vld [vmem:[%s7704_s3] sm:$0xff] }
0x2b3e   :  { %v6785_v0 = vpack.c.bf16 %v5683_v63, %v5682_v8  ;;  %v5685_v1 = vld [vmem:[%s7704_s3 + $0x18] sm:$0xff] }
0x2b3f   :  { %v5391_v2 = vadd.f32 %v8322_v27, %v5381_v10  ;;  %v6773_v27 = vpack.c.bf16 %v5983_v26, %v5982_v9  ;;  %v5684_v10 = vld [vmem:[%s7704_s3 + $0x10] sm:$0xff]  ;;  %s7530_s3 = smov [#allocation35]  }
0x2b40   :  { %s5782_s8 = sshll.u32 %s7530_s3, 4  ;;  %s5783_s8 = int_to_ptr.vmem [resolvable:$true] %s5782_s8 }
0x2b41   :  { %v5393_v3 = vadd.f32 %v5391_v2, %v8255_v28  ;;  %v5977_v28 = vld [vmem:[%s8437_s14 + $0x30] sm:$0xff]  ;;  %6774 = vmatprep.subr.bf16.mxu1 %v6773_v27  ;;  %v6789_v2 = vpack.c.bf16 %v5685_v1, %v5684_v10  ;;  %s7416_s19 = scalar_lea.vmem %s5783_s8, 256  ;;  %p7421_p1 = scmp.lt.s32.totalorder %s5783_s8, %s5783_s8 }
0x2b42   :  { %v6765_v5 = vpack.c.bf16 %v5978_v22, %v5977_v28  ;;  %6776 = vmatpush3.bf16.msra.mxu1 %v6773_v27  ;;  %v5997_v22 = vld [vmem:[%s8440_s4 + $0x1] ss:$0 sm:$0xff]  ;;  %p7417_p0 = scmp.ne.s32.totalorder %s5783_s8, %s7416_s19  ;;  %p7422_p2 = scmp.lt.s32.totalorder %s7416_s19, %s7416_s19 }
0x2b43   :  { %v5401_v4 = vsel %vm444_vm0, %v5393_v3, 0.0  ;;  %6778 = vmatprep.subr.bf16.mxu1 %v6777_v31 }
0x2b44   :  { %5402 = vadd.xlane.f32.xlu0 %v5401_v4  ;;  %6766 = vmatprep.subr.bf16.mxu0 %v6765_v5  ;;  %p7423_p3 = por %p7422_p2, %p7421_p1 }
0x2b45   :  { %6768 = vmatpush3.bf16.msra.mxu0 %v6765_v5 }
0x2b46   :  { %6780 = vmatpush3.bf16.msra.mxu1 %v6777_v31  ;;  %6786 = vmatprep.subr.bf16.mxu0 %v6785_v0  ;;  %p7424_p4 = pnand %p7423_p3, %p7417_p0 }
0x2b47   :  { %6782 = vmatprep.subr.bf16.mxu1 %v6781_v56 }
0x2b4a   :  { %6784 = vmatpush3.bf16.msra.mxu1 %v6781_v56 }
0x2bd1   :  { %v5403_v6 = vpop.xlane.xlu0 %5402 }
0x2bd2   :  { %v5405_v16 = vmul.f32 0.03125, %v5403_v6 }
0x2bd4   :  { %v5407_v18 = vsub.f32 %v5393_v3, %v5405_v16 }
0x2bd6   :  { %v5409_v15 = vmul.f32 %v5407_v18, %v5407_v18 }
0x2bd8   :  { %v5413_v19 = vsel %vm444_vm0, %v5409_v15, 0.0 }
0x2bd9   :  { %5414 = vadd.xlane.f32.xlu0 %v5413_v19 }
0x2c66   :  { %v5415_v32 = vpop.xlane.xlu0 %5414 }
0x2c67   :  { %v5417_v33 = vmul.f32 0.03125, %v5415_v32 }
0x2c69   :  { %v5419_v34 = vadd.f32 1e-05, %v5417_v33 }
0x2c6b   :  { %6948 = vrsqrt.f32 %v5419_v34 }
0x2c75   :  { %v6949_v11 = vpop.eup %6948 }
0x2c76   :  { %v5423_v35 = vmul.f32 %v6949_v11, %v5407_v18 }
0x2c78   :  { %v5431_v14 = vmul.f32 %v5973_v57, %v5423_v35 }
0x2c7a   :  { %v5439_v36 = vadd.f32 %v5974_v37, %v5431_v14 }
0x2c7c   :  { %6593 = vmatmul.mubr.msk.f32.vlgmr.msra.gmra.mrb[58].mxu0 %vm444_vm0, %v5439_v36 }
0x2c7d   :  { %6788 = vmatpush3.bf16.msra.mxu0 %v6785_v0 }
0x2c7e   :  { %6790 = vmatprep.subr.bf16.mxu0 %v6789_v2 }
0x2c81   :  { %6792 = vmatpush3.bf16.msra.mxu0 %v6789_v2 }
0x2d4f   :  { %v6594_v40 = vpop.f32.mrb[58].mxu0 }
0x2d50   :  { %v5542_v41 = vadd.f32 %v6594_v40, %v5989_v39  ;;  %v5536_v42 = vpop.f32.mrb[59].mxu0 }
0x2d51   :  { %v5537_v43 = vadd.f32 %v5989_v39, %v5536_v42 }
0x2d52   :  { %v5546_v45 = vmax.f32 %v5542_v41, 0.0 }
0x2d53   :  { %v5545_v44 = vmax.f32 %v5537_v43, 0.0 }
0x2d55   :  { %6611 = vmatprep.mubr.msk.f32.mxu1 %vm1651_vm4, %v5545_v44 }
0x2d56   :  { %6612 = vmatmul.mubr.msk.f32.vlgmr.msra.gmra.mrb[56].mxu1 %vm1651_vm4, %v5546_v45 }
0x2e29   :  { %v6613_v48 = vpop.f32.mrb[56].mxu1 }
0x2e2a   :  { %v5631_v47 = vadd.f32 %v6613_v48, %v5992_v46  ;;  %v5625_v50 = vpop.f32.mrb[57].mxu1 }
0x2e2b   :  { %v5626_v51 = vadd.f32 %v5992_v46, %v5625_v50 }
0x2e2c   :  { %v5635_v7 = vadd.f32 %v5631_v47, %v5439_v36 }
0x2e2d   :  { %v5634_v52 = vadd.f32 %v5626_v51, %v8342_v61 }
0x2e2e   :  { %v5643_v53 = vsel %vm444_vm0, %v5635_v7, 0.0 }
0x2e2f   :  { %5644 = vadd.xlane.f32.xlu0 %v5643_v53  ;;  %v5640_v49 = vsel %vm444_vm0, %v5634_v52, 0.0 }
0x2e30   :  { %5641 = vadd.xlane.f32.xlu1 %v5640_v49 }
0x2ebc   :  { %v5645_v54 = vpop.xlane.xlu0 %5644 }
0x2ebd   :  { %v5647_v55 = vmul.f32 0.03125, %v5645_v54  ;;  %v5642_v57 = vpop.xlane.xlu1 %5641 }
0x2ebe   :  { %v5646_v12 = vmul.f32 0.03125, %v5642_v57 }
0x2ebf   :  { %v5649_v58 = vsub.f32 %v5635_v7, %v5647_v55 }
0x2ec0   :  { %v5648_v59 = vsub.f32 %v5634_v52, %v5646_v12 }
0x2ec1   :  { %v5651_v37 = vmul.f32 %v5649_v58, %v5649_v58 }
0x2ec2   :  { %v5650_v60 = vmul.f32 %v5648_v59, %v5648_v59 }
0x2ec3   :  { %v5655_v61 = vsel %vm444_vm0, %v5651_v37, 0.0 }
0x2ec4   :  { %5656 = vadd.xlane.f32.xlu0 %v5655_v61  ;;  %v5652_v62 = vsel %vm444_vm0, %v5650_v60, 0.0 }
0x2ec5   :  { %5653 = vadd.xlane.f32.xlu1 %v5652_v62 }
0x2f51   :  { %v5657_v3 = vpop.xlane.xlu0 %5656 }
0x2f52   :  { %v5659_v4 = vmul.f32 0.03125, %v5657_v3  ;;  %v5654_v6 = vpop.xlane.xlu1 %5653 }
0x2f53   :  { %v5658_v16 = vmul.f32 0.03125, %v5654_v6 }
0x2f54   :  { %v5661_v18 = vadd.f32 1e-05, %v5659_v4 }
0x2f55   :  { %v5660_v15 = vadd.f32 1e-05, %v5658_v16 }
0x2f56   :  { %6950 = vrsqrt.f32 %v5661_v18 }
0x2f57   :  { %6952 = vrsqrt.f32 %v5660_v15 }
0x2f60   :  { %v6951_v19 = vpop.eup %6950 }
0x2f61   :  { %v6953_v21 = vpop.eup %6952  ;;  %v5665_v13 = vmul.f32 %v6951_v19, %v5649_v58 }
0x2f62   :  { %v5664_v28 = vmul.f32 %v6953_v21, %v5648_v59 }
0x2f63   :  { %v5673_v5 = vmul.f32 %v5996_v20, %v5665_v13 }
0x2f64   :  { %v5672_v23 = vmul.f32 %v5996_v20, %v5664_v28 }
0x2f65   :  { %v5681_v9 = vadd.f32 %v5997_v22, %v5673_v5 }
0x2f66   :  { %v5680_v24 = vadd.f32 %v5997_v22, %v5672_v23 }
0x2f68   :  { %6622 = vmatprep.mubr.msk.f32.mxu0 %vm444_vm0, %v5680_v24 }
0x2f69   :  { %6623 = vmatmul.mubr.msk.f32.vlgmr.msra.gmra.mrb[60].mxu0 %vm444_vm0, %v5681_v9 }
0x303c   :  { %v6624_v26 = vpop.f32.mrb[60].mxu0 }
0x303d   :  { %v5771_v27 = vadd.f32 %v6624_v26, %v5998_v25  ;;  %v5765_v29 = vpop.f32.mrb[61].mxu0 }
0x303e   :  { %v5766_v30 = vadd.f32 %v5998_v25, %v5765_v29 }
0x303f   :  { %5776 = vst.msk [vmem:[#allocation35 + $0x8] sm:$0xff] %vm5774_vm5, %v5771_v27 }
0x3040   :  { %5775 = vst.msk [vmem:[#allocation35] sm:$0xff] %vm5774_vm5, %v5766_v30 }
0x3041   :  { %7427 = shalt.err (!%p7424_p4)
}
0x3042   :  { %s7428_s12 = scalar_lea.hbm %s7714_s13, 256 }
0x3043   :  { %p7429_p5 = scmp.ne.s32.totalorder %s7714_s13, %s7428_s12  ;;  %p7432_p6 = scmp.lt.u32.totalorder %s7428_s12, %s7714_s13 }
0x3045   :  { %p7434_p7 = pnand %p7432_p6, %p7429_p5 }
0x3047   :  { %7437 = shalt.err (!%p7434_p7)
}
0x3048   :  { %5788 = dma.vmem_to_hbm [thread:$0]  %s5783_s8, 256, %s7714_s13, [#allocation4], %s7510_s16, %s7510_s16, %s7511_s21  }
0x3049   :  { %7460 = dma.done.wait [#allocation4], 256  }
0x304a   :  { %7461 = vsyncadd [#allocation4], 4294967040 }
0x304b   :  { %5792 = vsyncpa [#allocation3], 1 }
0x304c   :  { %5793 = vsyncpa [#allocation6], 1 }
0x304d   :  { %5794 = vsyncpa [#allocation9], 1 }
0x304e   :  { %5795 = vsyncpa [#allocation12], 1 }
0x304f   :  { %5796 = vsyncpa [#allocation15], 1 }
0x3050   :  { %5797 = vsyncpa [#allocation18], 1 }
0x3051   :  { %5798 = vsyncpa [#allocation21], 1 }
0x3052   :  { %5799 = vsyncpa [#allocation24], 1 }
0x3053   :  { %5800 = vsyncpa [#allocation27], 1 }
0x3054   :  { %5801 = vsyncpa [#allocation30], 1 }
0x3055   :  { %5802 = vsyncpa [#allocation33], 1 }
0x3056   :  { %5803 = vsyncpa [#allocation4], 1 }

</bundles_post_ra>
